<compile_context>
chip_gen: v6e
topology: v6e:2x2x1
jax: 0.10.0
libtpu: 0.0.40
codegen_flags: <defaults>
</compile_context>

<pallas_src>
import jax
import jax.numpy as jnp
from jax.experimental import pallas as pl
from jax.experimental.pallas import tpu as pltpu


def _round_up(x, m):
    return (x + m - 1) // m * m


def mlp_kernel(x_ref,
               w1_ref, b1_ref,
               w2_ref, b2_ref,
               w3_ref, b3_ref,
               w4_ref, b4_ref,
               o_ref):
    # fc1 + ReLU: x arrives f32, cast to bf16 at the MXU boundary; f32 accumulation,
    # bias-add and ReLU stay f32 (v5e has no bf16 VALU).
    h = jnp.dot(x_ref[...].astype(jnp.bfloat16), w1_ref[...],
                preferred_element_type=jnp.float32)
    h = jnp.maximum(h + b1_ref[...], 0.0)
    # fc2 + ReLU
    h = jnp.dot(h.astype(jnp.bfloat16), w2_ref[...], preferred_element_type=jnp.float32)
    h = jnp.maximum(h + b2_ref[...], 0.0)
    # fc3 + ReLU
    h = jnp.dot(h.astype(jnp.bfloat16), w3_ref[...], preferred_element_type=jnp.float32)
    h = jnp.maximum(h + b3_ref[...], 0.0)
    # fc4 (no activation); output lane dim pre-padded to a multiple of 128 in prepare_params.
    h = jnp.dot(h.astype(jnp.bfloat16), w4_ref[...], preferred_element_type=jnp.float32)
    o_ref[...] = (h + b4_ref[...]).astype(o_ref.dtype)


def prepare_params(params):
    """One-time weight prep: cast weights to bf16 and lane-pad the last layer to a
    multiple of 128.  Call ONCE, outside the per-step / jitted forward, so the cast and
    pad do not re-run (and re-stream all weights through HBM) on every forward call."""
    (w1, b1), (w2, b2), (w3, b3), (w4, b4) = params
    f_out = w4.shape[1]
    f_out_p = _round_up(f_out, 128)
    pad = f_out_p - f_out
    return {
        "w1": w1.astype(jnp.bfloat16), "b1": b1.astype(jnp.float32),
        "w2": w2.astype(jnp.bfloat16), "b2": b2.astype(jnp.float32),
        "w3": w3.astype(jnp.bfloat16), "b3": b3.astype(jnp.float32),
        "w4": jnp.pad(w4.astype(jnp.bfloat16), ((0, 0), (0, pad))),
        "b4": jnp.pad(b4.astype(jnp.float32), ((0, 0), (0, pad))),
        "f_out": f_out,
    }


# Batch-tile cap.  At tm=512: activation scratch ~4.4 MiB + bf16 weights ~2.2 MiB
# (single-buffered) fits comfortably inside the default scoped VMEM on every generation
# (v5e 16 MiB, v6e 32 MiB, v7x 32 MiB scoped / 64 MiB physical).
_TM_MAX = 512


def _choose_tile(B):
    if B <= _TM_MAX:
        # Single grid step: v5e/v6e have one TensorCore (the grid is a serial loop with
        # ~0.35 us/step overhead), and at small B the kernel is weight-DMA bound so a
        # v7x two-core split would only duplicate weight DMA.
        return _round_up(B, 8)
    steps = pl.cdiv(B, _TM_MAX)
    if steps % 2:
        # Even step count keeps both v7x TensorCores busy under "parallel"; one extra
        # ~0.35 us step is noise on single-TC v5e/v6e.
        steps += 1
    return _round_up(pl.cdiv(B, steps), 8)


def neural_network_forward(x, prepared, *, tm=None):
    """Fused forward pass.  x: (B, input_size) f32; prepared: output of prepare_params()."""
    B, F_in = x.shape
    w1, b1 = prepared["w1"], prepared["b1"]
    w2, b2 = prepared["w2"], prepared["b2"]
    w3, b3 = prepared["w3"], prepared["b3"]
    w4, b4 = prepared["w4"], prepared["b4"]
    f_out = prepared["f_out"]
    f_out_p = w4.shape[1]

    if tm is None:
        tm = _choose_tile(B)
    tm = min(tm, _round_up(B, 8))
    grid = (pl.cdiv(B, tm),)

    def run(single_buffer_weights):
        def full_spec(shape):
            # Whole array VMEM-resident; constant index_map -> same block every grid step.
            index_map = lambda i: (0,) * len(shape)
            if single_buffer_weights:
                # Grid-invariant block: nothing to prefetch across steps, so skip the
                # default double-buffer and halve weight VMEM.
                return pl.BlockSpec(shape, index_map, pipeline_mode=pl.Buffered(1))
            return pl.BlockSpec(shape, index_map)

        return pl.pallas_call(
            mlp_kernel,
            out_shape=jax.ShapeDtypeStruct((B, f_out_p), x.dtype),
            grid_spec=pltpu.PrefetchScalarGridSpec(
                num_scalar_prefetch=0,
                grid=grid,
                in_specs=[
                    pl.BlockSpec((tm, F_in), lambda i: (i, 0)),   # x tile (f32)
                    full_spec(w1.shape), full_spec(b1.shape),
                    full_spec(w2.shape), full_spec(b2.shape),
                    full_spec(w3.shape), full_spec(b3.shape),
                    full_spec(w4.shape), full_spec(b4.shape),
                ],
                out_specs=pl.BlockSpec((tm, f_out_p), lambda i: (i, 0)),
            ),
            compiler_params=pltpu.CompilerParams(
                dimension_semantics=("parallel",),
            ),
        )(x, w1, b1, w2, b2, w3, b3, w4, b4)

    try:
        out_p = run(single_buffer_weights=True)
    except Exception:
        # Fallback for jax versions without pipeline_mode / Buffered(1) support.
        out_p = run(single_buffer_weights=False)

    # Lane-dense (128-padded) store inside the kernel; slice the padding off here.
    # (If the consumer tolerates the padded width, return out_p directly and skip this pass.)
    return out_p[:, :f_out] if f_out != f_out_p else out_p


def init_params(key, input_size, output_size):
    """Deterministic PyTorch-style (Kaiming-uniform-ish) init, shapes from __init__."""
    sizes = [(input_size, 512), (512, 1024), (1024, 512), (512, output_size)]
    params = []
    for (fan_in, fan_out) in sizes:
        key, kw, kb = jax.random.split(key, 3)
        bound = 1.0 / jnp.sqrt(fan_in)
        w = jax.random.uniform(kw, (fan_in, fan_out), jnp.float32, -bound, bound)
        b = jax.random.uniform(kb, (1, fan_out), jnp.float32, -bound, bound)
        params.append((w, b))
    return params


def reference_forward_bf16(x, params):
    """Same bf16-matmul / f32-accumulate recipe as the kernel (apples-to-apples check)."""
    (w1, b1), (w2, b2), (w3, b3), (w4, b4) = params

    def mm(a, w):
        return jnp.dot(a.astype(jnp.bfloat16), w.astype(jnp.bfloat16),
                       preferred_element_type=jnp.float32)

    h = jnp.maximum(mm(x, w1) + b1, 0.0)
    h = jnp.maximum(mm(h, w2) + b2, 0.0)
    h = jnp.maximum(mm(h, w3) + b3, 0.0)
    return mm(h, w4) + b4


def reference_forward_f32(x, params):
    (w1, b1), (w2, b2), (w3, b3), (w4, b4) = params
    h = jnp.maximum(x @ w1 + b1, 0.0)
    h = jnp.maximum(h @ w2 + b2, 0.0)
    h = jnp.maximum(h @ w3 + b3, 0.0)
    return h @ w4 + b4


if __name__ == "__main__":
    key = jax.random.PRNGKey(0)
    batch, input_size, output_size = 8, 32, 16

    key, kx = jax.random.split(key)
    x = jax.random.normal(kx, (batch, input_size), jnp.float32)
    params = init_params(key, input_size, output_size)
    prepared = prepare_params(params)   # one-time weight cast/pad, outside the forward

    out = neural_network_forward(x, prepared)
    out = jax.block_until_ready(out)
    assert out.shape == (batch, output_size)

    ref_bf16 = reference_forward_bf16(x, params)
    ref_f32 = reference_forward_f32(x, params)
    assert jnp.allclose(out, ref_bf16, atol=2e-2, rtol=2e-2)
    # bf16 matmuls vs the full-f32 PyTorch semantics: looser, semantics-preserving check.
    assert jnp.allclose(out, ref_f32, atol=1e-1, rtol=1e-1)

    print("KERNEL_OK")
</pallas_src>

<mosaic_0001>
module attributes {stable_mosaic.version = 11 : i64} {
  func.func @mlp_kernel(%arg0: i32, %arg1: memref<8x32xf32, #tpu.memory_space<vmem>>, %arg2: memref<32x512xbf16, #tpu.memory_space<vmem>>, %arg3: memref<1x512xf32, #tpu.memory_space<vmem>>, %arg4: memref<512x1024xbf16, #tpu.memory_space<vmem>>, %arg5: memref<1x1024xf32, #tpu.memory_space<vmem>>, %arg6: memref<1024x512xbf16, #tpu.memory_space<vmem>>, %arg7: memref<1x512xf32, #tpu.memory_space<vmem>>, %arg8: memref<512x128xbf16, #tpu.memory_space<vmem>>, %arg9: memref<1x128xf32, #tpu.memory_space<vmem>>, %arg10: memref<8x128xf32, #tpu.memory_space<vmem>>) attributes {dimension_semantics = [#tpu.dimension_semantics<parallel>], iteration_bounds = array<i64: 1>, scalar_prefetch = 0 : i64, scratch_operands = 0 : i64, tpu.core_type = #tpu.core_type<tc>, window_params = [{transform_indices = @transform_0, window_bounds = array<i64: 8, 32>}, {pipeline_mode = #tpu.pipeline_mode<synchronous>, transform_indices = @transform_1, window_bounds = array<i64: 32, 512>}, {pipeline_mode = #tpu.pipeline_mode<synchronous>, transform_indices = @transform_2, window_bounds = array<i64: 1, 512>}, {pipeline_mode = #tpu.pipeline_mode<synchronous>, transform_indices = @transform_3, window_bounds = array<i64: 512, 1024>}, {pipeline_mode = #tpu.pipeline_mode<synchronous>, transform_indices = @transform_4, window_bounds = array<i64: 1, 1024>}, {pipeline_mode = #tpu.pipeline_mode<synchronous>, transform_indices = @transform_5, window_bounds = array<i64: 1024, 512>}, {pipeline_mode = #tpu.pipeline_mode<synchronous>, transform_indices = @transform_6, window_bounds = array<i64: 1, 512>}, {pipeline_mode = #tpu.pipeline_mode<synchronous>, transform_indices = @transform_7, window_bounds = array<i64: 512, 128>}, {pipeline_mode = #tpu.pipeline_mode<synchronous>, transform_indices = @transform_8, window_bounds = array<i64: 1, 128>}, {transform_indices = @transform_9, window_bounds = array<i64: 8, 128>}]} {
    %c0 = arith.constant 0 : index
    %c0_0 = arith.constant 0 : index
    %0 = vector.load %arg1[%c0, %c0_0] : memref<8x32xf32, #tpu.memory_space<vmem>>, vector<8x32xf32>
    %1 = arith.truncf %0 : vector<8x32xf32> to vector<8x32xbf16>
    %c0_1 = arith.constant 0 : index
    %c0_2 = arith.constant 0 : index
    %2 = vector.load %arg2[%c0_1, %c0_2] : memref<32x512xbf16, #tpu.memory_space<vmem>>, vector<32x512xbf16>
    %cst = arith.constant dense<0.000000e+00> : vector<8x512xf32>
    %3 = tpu.matmul %1, %2, %cst {dimension_numbers = #tpu.dot_dimension_numbers<[1], [0], [0], [1], [0, 0, 1, 1], [], []>} : vector<8x32xbf16>, vector<32x512xbf16>, vector<8x512xf32> -> vector<8x512xf32>
    %c0_3 = arith.constant 0 : index
    %c0_4 = arith.constant 0 : index
    %4 = vector.load %arg3[%c0_3, %c0_4] : memref<1x512xf32, #tpu.memory_space<vmem>>, vector<1x512xf32>
    %5 = vector.broadcast %4 : vector<1x512xf32> to vector<8x512xf32>
    %6 = arith.addf %3, %5 : vector<8x512xf32>
    %cst_5 = arith.constant 0.000000e+00 : f32
    %7 = vector.broadcast %cst_5 : f32 to vector<8x512xf32>
    %8 = arith.maximumf %6, %7 : vector<8x512xf32>
    %9 = arith.truncf %8 : vector<8x512xf32> to vector<8x512xbf16>
    %c0_6 = arith.constant 0 : index
    %c0_7 = arith.constant 0 : index
    %10 = vector.load %arg4[%c0_6, %c0_7] : memref<512x1024xbf16, #tpu.memory_space<vmem>>, vector<512x1024xbf16>
    %cst_8 = arith.constant dense<0.000000e+00> : vector<8x1024xf32>
    %11 = tpu.matmul %9, %10, %cst_8 {dimension_numbers = #tpu.dot_dimension_numbers<[1], [0], [0], [1], [0, 0, 1, 1], [], []>} : vector<8x512xbf16>, vector<512x1024xbf16>, vector<8x1024xf32> -> vector<8x1024xf32>
    %c0_9 = arith.constant 0 : index
    %c0_10 = arith.constant 0 : index
    %12 = vector.load %arg5[%c0_9, %c0_10] : memref<1x1024xf32, #tpu.memory_space<vmem>>, vector<1x1024xf32>
    %13 = vector.broadcast %12 : vector<1x1024xf32> to vector<8x1024xf32>
    %14 = arith.addf %11, %13 : vector<8x1024xf32>
    %cst_11 = arith.constant 0.000000e+00 : f32
    %15 = vector.broadcast %cst_11 : f32 to vector<8x1024xf32>
    %16 = arith.maximumf %14, %15 : vector<8x1024xf32>
    %17 = arith.truncf %16 : vector<8x1024xf32> to vector<8x1024xbf16>
    %c0_12 = arith.constant 0 : index
    %c0_13 = arith.constant 0 : index
    %18 = vector.load %arg6[%c0_12, %c0_13] : memref<1024x512xbf16, #tpu.memory_space<vmem>>, vector<1024x512xbf16>
    %cst_14 = arith.constant dense<0.000000e+00> : vector<8x512xf32>
    %19 = tpu.matmul %17, %18, %cst_14 {dimension_numbers = #tpu.dot_dimension_numbers<[1], [0], [0], [1], [0, 0, 1, 1], [], []>} : vector<8x1024xbf16>, vector<1024x512xbf16>, vector<8x512xf32> -> vector<8x512xf32>
    %c0_15 = arith.constant 0 : index
    %c0_16 = arith.constant 0 : index
    %20 = vector.load %arg7[%c0_15, %c0_16] : memref<1x512xf32, #tpu.memory_space<vmem>>, vector<1x512xf32>
    %21 = vector.broadcast %20 : vector<1x512xf32> to vector<8x512xf32>
    %22 = arith.addf %19, %21 : vector<8x512xf32>
    %cst_17 = arith.constant 0.000000e+00 : f32
    %23 = vector.broadcast %cst_17 : f32 to vector<8x512xf32>
    %24 = arith.maximumf %22, %23 : vector<8x512xf32>
    %25 = arith.truncf %24 : vector<8x512xf32> to vector<8x512xbf16>
    %c0_18 = arith.constant 0 : index
    %c0_19 = arith.constant 0 : index
    %26 = vector.load %arg8[%c0_18, %c0_19] : memref<512x128xbf16, #tpu.memory_space<vmem>>, vector<512x128xbf16>
    %cst_20 = arith.constant dense<0.000000e+00> : vector<8x128xf32>
    %27 = tpu.matmul %25, %26, %cst_20 {dimension_numbers = #tpu.dot_dimension_numbers<[1], [0], [0], [1], [0, 0, 1, 1], [], []>} : vector<8x512xbf16>, vector<512x128xbf16>, vector<8x128xf32> -> vector<8x128xf32>
    %c0_21 = arith.constant 0 : index
    %c0_22 = arith.constant 0 : index
    %28 = vector.load %arg9[%c0_21, %c0_22] : memref<1x128xf32, #tpu.memory_space<vmem>>, vector<1x128xf32>
    %29 = vector.broadcast %28 : vector<1x128xf32> to vector<8x128xf32>
    %30 = arith.addf %27, %29 : vector<8x128xf32>
    %c0_23 = arith.constant 0 : index
    %c0_24 = arith.constant 0 : index
    %31 = vector.load %arg10[%c0_23, %c0_24] : memref<8x128xf32, #tpu.memory_space<vmem>>, vector<8x128xf32>
    tpu.vector_store %arg10[%c0_23, %c0_24], %30 {strides = array<i32>} : memref<8x128xf32, #tpu.memory_space<vmem>>, vector<8x128xf32>,
    return
  }
  func.func @transform_0(%arg0: i32) -> (i32, i32) {
    %c0_i32 = arith.constant 0 : i32
    %c0_i32_0 = arith.constant 0 : i32
    return %arg0, %c0_i32 : i32, i32
  }
  func.func @transform_1(%arg0: i32) -> (i32, i32) {
    %c0_i32 = arith.constant 0 : i32
    %c0_i32_0 = arith.constant 0 : i32
    %c0_i32_1 = arith.constant 0 : i32
    return %c0_i32, %c0_i32_0 : i32, i32
  }
  func.func @transform_2(%arg0: i32) -> (i32, i32) {
    %c0_i32 = arith.constant 0 : i32
    %c0_i32_0 = arith.constant 0 : i32
    %c0_i32_1 = arith.constant 0 : i32
    return %c0_i32, %c0_i32_0 : i32, i32
  }
  func.func @transform_3(%arg0: i32) -> (i32, i32) {
    %c0_i32 = arith.constant 0 : i32
    %c0_i32_0 = arith.constant 0 : i32
    %c0_i32_1 = arith.constant 0 : i32
    return %c0_i32, %c0_i32_0 : i32, i32
  }
  func.func @transform_4(%arg0: i32) -> (i32, i32) {
    %c0_i32 = arith.constant 0 : i32
    %c0_i32_0 = arith.constant 0 : i32
    %c0_i32_1 = arith.constant 0 : i32
    return %c0_i32, %c0_i32_0 : i32, i32
  }
  func.func @transform_5(%arg0: i32) -> (i32, i32) {
    %c0_i32 = arith.constant 0 : i32
    %c0_i32_0 = arith.constant 0 : i32
    %c0_i32_1 = arith.constant 0 : i32
    return %c0_i32, %c0_i32_0 : i32, i32
  }
  func.func @transform_6(%arg0: i32) -> (i32, i32) {
    %c0_i32 = arith.constant 0 : i32
    %c0_i32_0 = arith.constant 0 : i32
    %c0_i32_1 = arith.constant 0 : i32
    return %c0_i32, %c0_i32_0 : i32, i32
  }
  func.func @transform_7(%arg0: i32) -> (i32, i32) {
    %c0_i32 = arith.constant 0 : i32
    %c0_i32_0 = arith.constant 0 : i32
    %c0_i32_1 = arith.constant 0 : i32
    return %c0_i32, %c0_i32_0 : i32, i32
  }
  func.func @transform_8(%arg0: i32) -> (i32, i32) {
    %c0_i32 = arith.constant 0 : i32
    %c0_i32_0 = arith.constant 0 : i32
    %c0_i32_1 = arith.constant 0 : i32
    return %c0_i32, %c0_i32_0 : i32, i32
  }
  func.func @transform_9(%arg0: i32) -> (i32, i32) {
    %c0_i32 = arith.constant 0 : i32
    %c0_i32_0 = arith.constant 0 : i32
    return %arg0, %c0_i32 : i32, i32
  }
}

module attributes {stable_mosaic.version = 11 : i64} {
  func.func @mlp_kernel(%arg0: i32, %arg1: memref<8x32xf32, #tpu.memory_space<vmem>>, %arg2: memref<32x512xbf16, #tpu.memory_space<vmem>>, %arg3: memref<1x512xf32, #tpu.memory_space<vmem>>, %arg4: memref<512x1024xbf16, #tpu.memory_space<vmem>>, %arg5: memref<1x1024xf32, #tpu.memory_space<vmem>>, %arg6: memref<1024x512xbf16, #tpu.memory_space<vmem>>, %arg7: memref<1x512xf32, #tpu.memory_space<vmem>>, %arg8: memref<512x128xbf16, #tpu.memory_space<vmem>>, %arg9: memref<1x128xf32, #tpu.memory_space<vmem>>, %arg10: memref<8x128xf32, #tpu.memory_space<vmem>>) attributes {dimension_semantics = [#tpu.dimension_semantics<parallel>], iteration_bounds = array<i64: 1>, scalar_prefetch = 0 : i64, scratch_operands = 0 : i64, tpu.core_type = #tpu.core_type<tc>, window_params = [{transform_indices = @transform_0, window_bounds = array<i64: 8, 32>}, {pipeline_mode = #tpu.pipeline_mode<synchronous>, transform_indices = @transform_1, window_bounds = array<i64: 32, 512>}, {pipeline_mode = #tpu.pipeline_mode<synchronous>, transform_indices = @transform_2, window_bounds = array<i64: 1, 512>}, {pipeline_mode = #tpu.pipeline_mode<synchronous>, transform_indices = @transform_3, window_bounds = array<i64: 512, 1024>}, {pipeline_mode = #tpu.pipeline_mode<synchronous>, transform_indices = @transform_4, window_bounds = array<i64: 1, 1024>}, {pipeline_mode = #tpu.pipeline_mode<synchronous>, transform_indices = @transform_5, window_bounds = array<i64: 1024, 512>}, {pipeline_mode = #tpu.pipeline_mode<synchronous>, transform_indices = @transform_6, window_bounds = array<i64: 1, 512>}, {pipeline_mode = #tpu.pipeline_mode<synchronous>, transform_indices = @transform_7, window_bounds = array<i64: 512, 128>}, {pipeline_mode = #tpu.pipeline_mode<synchronous>, transform_indices = @transform_8, window_bounds = array<i64: 1, 128>}, {transform_indices = @transform_9, window_bounds = array<i64: 8, 128>}]} {
    %c0 = arith.constant 0 : index
    %c0_0 = arith.constant 0 : index
    %0 = vector.load %arg1[%c0, %c0_0] : memref<8x32xf32, #tpu.memory_space<vmem>>, vector<8x32xf32>
    %1 = arith.truncf %0 : vector<8x32xf32> to vector<8x32xbf16>
    %c0_1 = arith.constant 0 : index
    %c0_2 = arith.constant 0 : index
    %2 = vector.load %arg2[%c0_1, %c0_2] : memref<32x512xbf16, #tpu.memory_space<vmem>>, vector<32x512xbf16>
    %cst = arith.constant dense<0.000000e+00> : vector<8x512xf32>
    %3 = tpu.matmul %1, %2, %cst {dimension_numbers = #tpu.dot_dimension_numbers<[1], [0], [0], [1], [0, 0, 1, 1], [], []>} : vector<8x32xbf16>, vector<32x512xbf16>, vector<8x512xf32> -> vector<8x512xf32>
    %c0_3 = arith.constant 0 : index
    %c0_4 = arith.constant 0 : index
    %4 = vector.load %arg3[%c0_3, %c0_4] : memref<1x512xf32, #tpu.memory_space<vmem>>, vector<1x512xf32>
    %5 = vector.broadcast %4 : vector<1x512xf32> to vector<8x512xf32>
    %6 = arith.addf %3, %5 : vector<8x512xf32>
    %cst_5 = arith.constant 0.000000e+00 : f32
    %7 = vector.broadcast %cst_5 : f32 to vector<8x512xf32>
    %8 = arith.maximumf %6, %7 : vector<8x512xf32>
    %9 = arith.truncf %8 : vector<8x512xf32> to vector<8x512xbf16>
    %c0_6 = arith.constant 0 : index
    %c0_7 = arith.constant 0 : index
    %10 = vector.load %arg4[%c0_6, %c0_7] : memref<512x1024xbf16, #tpu.memory_space<vmem>>, vector<512x1024xbf16>
    %cst_8 = arith.constant dense<0.000000e+00> : vector<8x1024xf32>
    %11 = tpu.matmul %9, %10, %cst_8 {dimension_numbers = #tpu.dot_dimension_numbers<[1], [0], [0], [1], [0, 0, 1, 1], [], []>} : vector<8x512xbf16>, vector<512x1024xbf16>, vector<8x1024xf32> -> vector<8x1024xf32>
    %c0_9 = arith.constant 0 : index
    %c0_10 = arith.constant 0 : index
    %12 = vector.load %arg5[%c0_9, %c0_10] : memref<1x1024xf32, #tpu.memory_space<vmem>>, vector<1x1024xf32>
    %13 = vector.broadcast %12 : vector<1x1024xf32> to vector<8x1024xf32>
    %14 = arith.addf %11, %13 : vector<8x1024xf32>
    %cst_11 = arith.constant 0.000000e+00 : f32
    %15 = vector.broadcast %cst_11 : f32 to vector<8x1024xf32>
    %16 = arith.maximumf %14, %15 : vector<8x1024xf32>
    %17 = arith.truncf %16 : vector<8x1024xf32> to vector<8x1024xbf16>
    %c0_12 = arith.constant 0 : index
    %c0_13 = arith.constant 0 : index
    %18 = vector.load %arg6[%c0_12, %c0_13] : memref<1024x512xbf16, #tpu.memory_space<vmem>>, vector<1024x512xbf16>
    %cst_14 = arith.constant dense<0.000000e+00> : vector<8x512xf32>
    %19 = tpu.matmul %17, %18, %cst_14 {dimension_numbers = #tpu.dot_dimension_numbers<[1], [0], [0], [1], [0, 0, 1, 1], [], []>} : vector<8x1024xbf16>, vector<1024x512xbf16>, vector<8x512xf32> -> vector<8x512xf32>
    %c0_15 = arith.constant 0 : index
    %c0_16 = arith.constant 0 : index
    %20 = vector.load %arg7[%c0_15, %c0_16] : memref<1x512xf32, #tpu.memory_space<vmem>>, vector<1x512xf32>
    %21 = vector.broadcast %20 : vector<1x512xf32> to vector<8x512xf32>
    %22 = arith.addf %19, %21 : vector<8x512xf32>
    %cst_17 = arith.constant 0.000000e+00 : f32
    %23 = vector.broadcast %cst_17 : f32 to vector<8x512xf32>
    %24 = arith.maximumf %22, %23 : vector<8x512xf32>
    %25 = arith.truncf %24 : vector<8x512xf32> to vector<8x512xbf16>
    %c0_18 = arith.constant 0 : index
    %c0_19 = arith.constant 0 : index
    %26 = vector.load %arg8[%c0_18, %c0_19] : memref<512x128xbf16, #tpu.memory_space<vmem>>, vector<512x128xbf16>
    %cst_20 = arith.constant dense<0.000000e+00> : vector<8x128xf32>
    %27 = tpu.matmul %25, %26, %cst_20 {dimension_numbers = #tpu.dot_dimension_numbers<[1], [0], [0], [1], [0, 0, 1, 1], [], []>} : vector<8x512xbf16>, vector<512x128xbf16>, vector<8x128xf32> -> vector<8x128xf32>
    %c0_21 = arith.constant 0 : index
    %c0_22 = arith.constant 0 : index
    %28 = vector.load %arg9[%c0_21, %c0_22] : memref<1x128xf32, #tpu.memory_space<vmem>>, vector<1x128xf32>
    %29 = vector.broadcast %28 : vector<1x128xf32> to vector<8x128xf32>
    %30 = arith.addf %27, %29 : vector<8x128xf32>
    %c0_23 = arith.constant 0 : index
    %c0_24 = arith.constant 0 : index
    %31 = vector.load %arg10[%c0_23, %c0_24] : memref<8x128xf32, #tpu.memory_space<vmem>>, vector<8x128xf32>
    tpu.vector_store %arg10[%c0_23, %c0_24], %30 {strides = array<i32>} : memref<8x128xf32, #tpu.memory_space<vmem>>, vector<8x128xf32>,
    return
  }
  func.func @transform_0(%arg0: i32) -> (i32, i32) {
    %c0_i32 = arith.constant 0 : i32
    %c0_i32_0 = arith.constant 0 : i32
    return %arg0, %c0_i32 : i32, i32
  }
  func.func @transform_1(%arg0: i32) -> (i32, i32) {
    %c0_i32 = arith.constant 0 : i32
    %c0_i32_0 = arith.constant 0 : i32
    %c0_i32_1 = arith.constant 0 : i32
    return %c0_i32, %c0_i32_0 : i32, i32
  }
  func.func @transform_2(%arg0: i32) -> (i32, i32) {
    %c0_i32 = arith.constant 0 : i32
    %c0_i32_0 = arith.constant 0 : i32
    %c0_i32_1 = arith.constant 0 : i32
    return %c0_i32, %c0_i32_0 : i32, i32
  }
  func.func @transform_3(%arg0: i32) -> (i32, i32) {
    %c0_i32 = arith.constant 0 : i32
    %c0_i32_0 = arith.constant 0 : i32
    %c0_i32_1 = arith.constant 0 : i32
    return %c0_i32, %c0_i32_0 : i32, i32
  }
  func.func @transform_4(%arg0: i32) -> (i32, i32) {
    %c0_i32 = arith.constant 0 : i32
    %c0_i32_0 = arith.constant 0 : i32
    %c0_i32_1 = arith.constant 0 : i32
    return %c0_i32, %c0_i32_0 : i32, i32
  }
  func.func @transform_5(%arg0: i32) -> (i32, i32) {
    %c0_i32 = arith.constant 0 : i32
    %c0_i32_0 = arith.constant 0 : i32
    %c0_i32_1 = arith.constant 0 : i32
    return %c0_i32, %c0_i32_0 : i32, i32
  }
  func.func @transform_6(%arg0: i32) -> (i32, i32) {
    %c0_i32 = arith.constant 0 : i32
    %c0_i32_0 = arith.constant 0 : i32
    %c0_i32_1 = arith.constant 0 : i32
    return %c0_i32, %c0_i32_0 : i32, i32
  }
  func.func @transform_7(%arg0: i32) -> (i32, i32) {
    %c0_i32 = arith.constant 0 : i32
    %c0_i32_0 = arith.constant 0 : i32
    %c0_i32_1 = arith.constant 0 : i32
    return %c0_i32, %c0_i32_0 : i32, i32
  }
  func.func @transform_8(%arg0: i32) -> (i32, i32) {
    %c0_i32 = arith.constant 0 : i32
    %c0_i32_0 = arith.constant 0 : i32
    %c0_i32_1 = arith.constant 0 : i32
    return %c0_i32, %c0_i32_0 : i32, i32
  }
  func.func @transform_9(%arg0: i32) -> (i32, i32) {
    %c0_i32 = arith.constant 0 : i32
    %c0_i32_0 = arith.constant 0 : i32
    return %arg0, %c0_i32 : i32, i32
  }
}

</mosaic_0001>

<bundles_post_ra>
// kernel: tpu_custom_call.1
= control target key start
LH: loop header
LB: loop body
LE: loop exit
PB: predicated region body
PF: predicated region fallthrough
CT: control target
= control target key end

     0   :  { %14 = vsyncpa [#allocation3], 0  ;;  %s5894_s0 = inlined_call_operand.hbm [shape: f32[8,32], index: 0, kind: input, shape index: {}]   ;;  %s5895_s1 = inlined_call_operand.hbm [shape: bf16[32,512], index: 1, kind: input, shape index: {}]   ;;  %s5896_s2 = inlined_call_operand.hbm [shape: f32[1,512], index: 2, kind: input, shape index: {}]   ;;  %s5897_s3 = inlined_call_operand.hbm [shape: bf16[512,1024], index: 3, kind: input, shape index: {}]   ;;  %s5898_s4 = inlined_call_operand.hbm [shape: f32[1,1024], index: 4, kind: input, shape index: {}]   ;;  %s5899_s5 = inlined_call_operand.hbm [shape: bf16[1024,512], index: 5, kind: input, shape index: {}]   ;;  %s5900_s6 = inlined_call_operand.vmem [shape: f32[1,512], index: 6, kind: input, shape index: {}]   ;;  %s5901_s7 = inlined_call_operand.hbm [shape: bf16[512,128], index: 7, kind: input, shape index: {}]   ;;  %s5902_s8 = inlined_call_operand.vmem [shape: f32[1,128], index: 8, kind: input, shape index: {}]   ;;  %s5903_s9 = inlined_call_operand.hbm [shape: f32[8,128], index: 9, kind: output, shape index: {}]  }
   0x1   :  { %15 = vsyncpa [#allocation6], 0 }
   0x2   :  { %16 = vsyncpa [#allocation9], 0 }
   0x3   :  { %17 = vsyncpa [#allocation12], 0 }
   0x4   :  { %18 = vsyncpa [#allocation4], 0  ;;  %s5679_s30 = smov [#allocation5]  }
   0x5   :  { %s34_s10 = sshll.u32 %s5679_s30, 4  ;;  %s35_s10 = int_to_ptr.vmem [resolvable:$true] %s34_s10 }
   0x6   :  { %s5517_s11 = scalar_lea.vmem %s35_s10, 1024  ;;  %p5522_p1 = scmp.lt.s32.totalorder %s35_s10, %s35_s10 }
   0x7   :  { %p5518_p0 = scmp.ne.s32.totalorder %s35_s10, %s5517_s11  ;;  %p5523_p2 = scmp.lt.s32.totalorder %s5517_s11, %s5517_s11 }
   0x9   :  { %p5524_p3 = por %p5523_p2, %p5522_p1 }
   0xb   :  { %p5525_p4 = pnand %p5524_p3, %p5518_p0 }
   0xd   :  { %5528 = shalt.err (!%p5525_p4)
}
   0xe   :  { %s5680_s12 = smov 256   ;;  %s5681_s13 = smov 16  }
   0xf   :  { %40 = dma.hbm_to_vmem [thread:$0]  %s5895_s1, 1024, %s35_s10, [#allocation6], %s5680_s12, %s5680_s12, %s5681_s13  }
  0x10   :  { %s5682_s16 = smov [#allocation8]  }
  0x11   :  { %s56_s17 = sshll.u32 %s5682_s16, 4  ;;  %s57_s17 = int_to_ptr.vmem [resolvable:$true] %s56_s17 }
  0x12   :  { %s5537_s18 = scalar_lea.vmem %s57_s17, 32768  ;;  %p5542_p6 = scmp.lt.s32.totalorder %s57_s17, %s57_s17 }
  0x13   :  { %p5538_p5 = scmp.ne.s32.totalorder %s57_s17, %s5537_s18  ;;  %p5543_p7 = scmp.lt.s32.totalorder %s5537_s18, %s5537_s18 }
  0x15   :  { %p5544_p8 = por %p5543_p7, %p5542_p6 }
  0x17   :  { %p5545_p9 = pnand %p5544_p8, %p5538_p5 }
  0x19   :  { %5548 = shalt.err (!%p5545_p9)
}
  0x1a   :  { %s5683_s19 = smov 512   ;;  %s5684_s20 = smov 32  }
  0x1b   :  { %62 = dma.hbm_to_vmem [thread:$0]  %s5897_s3, 32768, %s57_s17, [#allocation9], %s5683_s19, %s5683_s19, %s5684_s20  }
  0x1c   :  { %s5685_s23 = smov [#allocation11]   ;;  %s5686_s25 = smov [#allocation2]  }
  0x1d   :  { %s78_s24 = sshll.u32 %s5685_s23, 4  ;;  %s25_s1 = sshll.u32 %s5686_s25, 4  ;;  %s79_s24 = int_to_ptr.vmem [resolvable:$true] %s78_s24  ;;  %s26_s1 = int_to_ptr.vmem [resolvable:$true] %s25_s1 }
  0x1e   :  { %s5557_s26 = scalar_lea.vmem %s79_s24, 32768  ;;  %p5562_p11 = scmp.lt.s32.totalorder %s79_s24, %s79_s24 }
  0x1f   :  { %p5558_p10 = scmp.ne.s32.totalorder %s79_s24, %s5557_s26  ;;  %p5563_p12 = scmp.lt.s32.totalorder %s5557_s26, %s5557_s26 }
  0x21   :  { %p5564_p13 = por %p5563_p12, %p5562_p11 }
  0x23   :  { %p5565_p0 = pnand %p5564_p13, %p5558_p10 }
  0x25   :  { %5568 = shalt.err (!%p5565_p0)
}
  0x26   :  { %84 = dma.hbm_to_vmem [thread:$0]  %s5899_s5, 32768, %s79_s24, [#allocation12], %s5680_s12, %s5680_s12, %s5681_s13  }
  0x27   :  { %s5577_s3 = scalar_lea.vmem %s26_s1, 128  ;;  %p5582_p2 = scmp.lt.s32.totalorder %s26_s1, %s26_s1 }
  0x28   :  { %p5578_p1 = scmp.ne.s32.totalorder %s26_s1, %s5577_s3  ;;  %p5583_p3 = scmp.lt.s32.totalorder %s5577_s3, %s5577_s3 }
  0x2a   :  { %p5584_p4 = por %p5583_p3, %p5582_p2 }
  0x2c   :  { %p5585_p5 = pnand %p5584_p4, %p5578_p1 }
  0x2e   :  { %5588 = shalt.err (!%p5585_p5)
}
  0x2f   :  { %28 = dma.hbm_to_vmem [thread:$0]  %s5894_s0, 128, %s26_s1, [#allocation3]  }
  0x30   :  { %s5687_s10 = smov [#allocation7]   ;;  %s5688_s14 = smov [#allocation10]  }
  0x31   :  { %s47_s11 = sshll.u32 %s5687_s10, 4  ;;  %s69_s15 = sshll.u32 %s5688_s14, 4  ;;  %s48_s11 = int_to_ptr.vmem [resolvable:$true] %s47_s11  ;;  %s70_s15 = int_to_ptr.vmem [resolvable:$true] %s69_s15 }
  0x32   :  { %s5597_s16 = scalar_lea.vmem %s48_s11, 64  ;;  %p5602_p7 = scmp.lt.s32.totalorder %s48_s11, %s48_s11 }
  0x33   :  { %p5598_p6 = scmp.ne.s32.totalorder %s48_s11, %s5597_s16  ;;  %p5603_p8 = scmp.lt.s32.totalorder %s5597_s16, %s5597_s16 }
  0x35   :  { %p5604_p9 = por %p5603_p8, %p5602_p7 }
  0x37   :  { %p5605_p10 = pnand %p5604_p9, %p5598_p6 }
  0x39   :  { %5608 = shalt.err (!%p5605_p10)
}
  0x3a   :  { %50 = dma.hbm_to_vmem [thread:$0]  %s5896_s2, 64, %s48_s11, [#allocation6]  }
  0x3b   :  { %s5617_s13 = scalar_lea.vmem %s70_s15, 128  ;;  %p5622_p12 = scmp.lt.s32.totalorder %s70_s15, %s70_s15 }
  0x3c   :  { %p5618_p11 = scmp.ne.s32.totalorder %s70_s15, %s5617_s13  ;;  %p5623_p13 = scmp.lt.s32.totalorder %s5617_s13, %s5617_s13 }
  0x3e   :  { %p5624_p0 = por %p5623_p13, %p5622_p12 }
  0x40   :  { %p5625_p1 = pnand %p5624_p0, %p5618_p11 }
  0x42   :  { %5628 = shalt.err (!%p5625_p1)
}
  0x43   :  { %72 = dma.hbm_to_vmem [thread:$0]  %s5898_s4, 128, %s70_s15, [#allocation9]  }
  0x44   :  { %s5689_s18 = smov [#allocation13]  }
  0x45   :  { %s92_s19 = sshll.u32 %s5689_s18, 4  ;;  %s93_s19 = int_to_ptr.vmem [resolvable:$true] %s92_s19 }
  0x46   :  { %s5637_s20 = scalar_lea.vmem %s93_s19, 4096  ;;  %p5642_p3 = scmp.lt.s32.totalorder %s93_s19, %s93_s19 }
  0x47   :  { %p5638_p2 = scmp.ne.s32.totalorder %s93_s19, %s5637_s20  ;;  %p5643_p4 = scmp.lt.s32.totalorder %s5637_s20, %s5637_s20 }
  0x49   :  { %p5644_p5 = por %p5643_p4, %p5642_p3 }
  0x4b   :  { %p5645_p6 = pnand %p5644_p5, %p5638_p2 }
  0x4d   :  { %5648 = shalt.err (!%p5645_p6)
}
  0x4e   :  { %s5690_s2 = smov 64   ;;  %s5691_s21 = smov 4  }
  0x4f   :  { %98 = dma.hbm_to_vmem [thread:$0]  %s5901_s7, 4096, %s93_s19, [#allocation12], %s5690_s2, %s5690_s2, %s5691_s21  }
  0x50   :  { %5669 = dma.done.wait [#allocation3], 128  }
  0x51   :  { %5670 = vsyncadd [#allocation3], 4294967168 }
  0x52   :  { %5671 = dma.done.wait [#allocation6], 1088  }
  0x53   :  { %5672 = vsyncadd [#allocation6], 4294966208 }
  0x54   :  { %5673 = dma.done.wait [#allocation9], 32896  }
  0x55   :  { %5674 = vsyncadd [#allocation9], 4294934400 }
  0x56   :  { %5675 = dma.done.wait [#allocation12], 36864  }
  0x57   :  { %5676 = vsyncadd [#allocation12], 4294930432  ;;  %v5692_v0 = vmov 0   ;;  %v5081_v1 = vld [vmem:[#allocation5 + $0x24] ss:$16 sps:$4 sm:$0xff]   ;;  %v123_v9 = vld [vmem:[#allocation2] sm:$0xff] }
  0x58   :  { %231 = vmatprep.mubr.bf16.mxu0 %v5692_v0  ;;  %272 = vmatprep.mubr.bf16.mxu1 %v5692_v0  ;;  %v5083_v2 = vld [vmem:[#allocation5 + $0x2c] ss:$16 sps:$4 sm:$0xff]   ;;  %v5085_v3 = vld [vmem:[#allocation5 + $0x20] ss:$16 sps:$4 sm:$0xff]   ;;  %v5086_v4 = vld [vmem:[#allocation5 + $0x28] ss:$16 sps:$4 sm:$0xff]   ;;  %v124_v14 = vpack.c.bf16 %v123_v9, %v123_v9 }
  0x59   :  { %211 = vmatprep.subr.bf16.mxu0 %v5081_v1  ;;  %252 = vmatprep.subr.bf16.mxu1 %v5083_v2  ;;  %v5087_v5 = vld [vmem:[#allocation5 + $0x4] ss:$16 sps:$4 sm:$0xff]   ;;  %v5089_v6 = vld [vmem:[#allocation5 + $0xc] ss:$16 sps:$4 sm:$0xff]   ;;  %v5091_v7 = vld [vmem:[#allocation5] ss:$16 sps:$4 sm:$0xff]  }
  0x5a   :  { %212 = vmatpush1.bf16.msra.mxu0 %v5085_v3  ;;  %253 = vmatpush1.bf16.msra.mxu1 %v5086_v4  ;;  %v5092_v8 = vld [vmem:[#allocation5 + $0x8] ss:$16 sps:$4 sm:$0xff]   ;;  %vm195_vm0 = vcmask 261120   ;;  %s5693_s25 = smov [#allocation14]  }
  0x5b   :  { %213 = vmatprep.subr.bf16.mxu0 %v5087_v5  ;;  %v345_v10 = vld [vmem:[#allocation8 + $0x1c0] sm:$0xff]  ;;  %254 = vmatprep.subr.bf16.mxu1 %v5089_v6  ;;  %s4455_s1 = sshll.u32 %s5693_s25, 4  ;;  %s4456_s1 = int_to_ptr.vmem [resolvable:$true] %s4455_s1 }
  0x5c   :  { %v349_v11 = vld [vmem:[#allocation8 + $0x1e0] sm:$0xff]  ;;  %s5649_s26 = scalar_lea.vmem %s4456_s1, 128  ;;  %p5654_p8 = scmp.lt.s32.totalorder %s4456_s1, %s4456_s1 }
  0x5d   :  { %v473_v12 = vld [vmem:[#allocation8 + $0x5c0] sm:$0xff]  ;;  %v4534_v15 = vcombine.high %v345_v10, %v349_v11  ;;  %v4533_v20 = vcombine.low %v345_v10, %v349_v11  ;;  %p5650_p7 = scmp.ne.s32.totalorder %s4456_s1, %s5649_s26  ;;  %p5655_p9 = scmp.lt.s32.totalorder %s5649_s26, %s5649_s26 }
  0x5e   :  { %v477_v13 = vld [vmem:[#allocation8 + $0x5e0] sm:$0xff]  ;;  %214 = vmatpush1.bf16.msra.mxu0 %v5091_v7  ;;  %255 = vmatpush1.bf16.msra.mxu1 %v5092_v8 }
  0x5f   :  { %v4662_v16 = vcombine.high %v473_v12, %v477_v13  ;;  %v337_v17 = vld [vmem:[#allocation8 + $0x180] sm:$0xff]  ;;  %v4661_v21 = vcombine.low %v473_v12, %v477_v13  ;;  %1867 = vmatprep.subr.bf16.mxu0 %v4534_v15  ;;  %p5656_p10 = por %p5655_p9, %p5654_p8 }
  0x60   :  { %v341_v18 = vld [vmem:[#allocation8 + $0x1a0] sm:$0xff] }
  0x61   :  { %v465_v19 = vld [vmem:[#allocation8 + $0x580] sm:$0xff]  ;;  %1908 = vmatprep.subr.bf16.mxu1 %v4662_v16  ;;  %v4526_v23 = vcombine.high %v337_v17, %v341_v18  ;;  %4475 = vmatmul.mubr.msk.bf16.vlgmr.msra.gmra.mxu0 %vm195_vm0, %v124_v14  ;;  %v4525_v29 = vcombine.low %v337_v17, %v341_v18  ;;  %p5657_p11 = pnand %p5656_p10, %p5650_p7 }
  0x62   :  { %v469_v22 = vld [vmem:[#allocation8 + $0x5a0] sm:$0xff]  ;;  %4476 = vmatmul.mubr.msk.bf16.vlgmr.msra.gmra.mxu1 %vm195_vm0, %v124_v14  ;;  %1868 = vmatpush1.bf16.msra.mxu0 %v4533_v20 }
  0x63   :  { %v4654_v24 = vcombine.high %v465_v19, %v469_v22  ;;  %v329_v25 = vld [vmem:[#allocation8 + $0x140] sm:$0xff]  ;;  %1909 = vmatpush1.bf16.msra.mxu1 %v4661_v21  ;;  %v4653_v30 = vcombine.low %v465_v19, %v469_v22  ;;  %1869 = vmatprep.subr.bf16.mxu0 %v4526_v23 }
  0x64   :  { %v333_v26 = vld [vmem:[#allocation8 + $0x160] sm:$0xff] }
  0x65   :  { %v457_v27 = vld [vmem:[#allocation8 + $0x540] sm:$0xff]  ;;  %1910 = vmatprep.subr.bf16.mxu1 %v4654_v24  ;;  %v4518_v31 = vcombine.high %v329_v25, %v333_v26  ;;  %v4517_v37 = vcombine.low %v329_v25, %v333_v26 }
  0x66   :  { %v461_v28 = vld [vmem:[#allocation8 + $0x560] sm:$0xff]  ;;  %1870 = vmatpush1.bf16.msra.mxu0 %v4525_v29 }
  0x67   :  { %v4646_v32 = vcombine.high %v457_v27, %v461_v28  ;;  %v321_v33 = vld [vmem:[#allocation8 + $0x100] sm:$0xff]  ;;  %1911 = vmatpush1.bf16.msra.mxu1 %v4653_v30  ;;  %v4645_v38 = vcombine.low %v457_v27, %v461_v28  ;;  %1871 = vmatprep.subr.bf16.mxu0 %v4518_v31 }
  0x68   :  { %v325_v34 = vld [vmem:[#allocation8 + $0x120] sm:$0xff] }
  0x69   :  { %v449_v35 = vld [vmem:[#allocation8 + $0x500] sm:$0xff]  ;;  %1912 = vmatprep.subr.bf16.mxu1 %v4646_v32  ;;  %v4510_v39 = vcombine.high %v321_v33, %v325_v34  ;;  %v4509_v45 = vcombine.low %v321_v33, %v325_v34 }
  0x6a   :  { %v453_v36 = vld [vmem:[#allocation8 + $0x520] sm:$0xff]  ;;  %1872 = vmatpush1.bf16.msra.mxu0 %v4517_v37 }
  0x6b   :  { %v4638_v40 = vcombine.high %v449_v35, %v453_v36  ;;  %v313_v41 = vld [vmem:[#allocation8 + $0xc0] sm:$0xff]  ;;  %1913 = vmatpush1.bf16.msra.mxu1 %v4645_v38  ;;  %v4637_v46 = vcombine.low %v449_v35, %v453_v36  ;;  %1873 = vmatprep.subr.bf16.mxu0 %v4510_v39 }
  0x6c   :  { %v317_v42 = vld [vmem:[#allocation8 + $0xe0] sm:$0xff] }
  0x6d   :  { %v441_v43 = vld [vmem:[#allocation8 + $0x4c0] sm:$0xff]  ;;  %1914 = vmatprep.subr.bf16.mxu1 %v4638_v40  ;;  %v4502_v47 = vcombine.high %v313_v41, %v317_v42  ;;  %v4501_v53 = vcombine.low %v313_v41, %v317_v42 }
  0x6e   :  { %v445_v44 = vld [vmem:[#allocation8 + $0x4e0] sm:$0xff]  ;;  %1874 = vmatpush1.bf16.msra.mxu0 %v4509_v45 }
  0x6f   :  { %v4630_v48 = vcombine.high %v441_v43, %v445_v44  ;;  %v305_v49 = vld [vmem:[#allocation8 + $0x80] sm:$0xff]  ;;  %1915 = vmatpush1.bf16.msra.mxu1 %v4637_v46  ;;  %v4629_v54 = vcombine.low %v441_v43, %v445_v44  ;;  %1875 = vmatprep.subr.bf16.mxu0 %v4502_v47 }
  0x70   :  { %v309_v50 = vld [vmem:[#allocation8 + $0xa0] sm:$0xff] }
  0x71   :  { %v433_v51 = vld [vmem:[#allocation8 + $0x480] sm:$0xff]  ;;  %1916 = vmatprep.subr.bf16.mxu1 %v4630_v48  ;;  %v4494_v59 = vcombine.high %v305_v49, %v309_v50  ;;  %v4493_v61 = vcombine.low %v305_v49, %v309_v50 }
  0x72   :  { %v437_v52 = vld [vmem:[#allocation8 + $0x4a0] sm:$0xff]  ;;  %1876 = vmatpush1.bf16.msra.mxu0 %v4501_v53 }
  0x73   :  { %v297_v55 = vld [vmem:[#allocation8 + $0x40] sm:$0xff]  ;;  %v4622_v60 = vcombine.high %v433_v51, %v437_v52  ;;  %1917 = vmatpush1.bf16.msra.mxu1 %v4629_v54  ;;  %v4621_v62 = vcombine.low %v433_v51, %v437_v52  ;;  %1877 = vmatprep.subr.bf16.mxu0 %v4494_v59 }
  0x74   :  { %v301_v56 = vld [vmem:[#allocation8 + $0x60] sm:$0xff] }
  0x75   :  { %v425_v57 = vld [vmem:[#allocation8 + $0x440] sm:$0xff]  ;;  %1918 = vmatprep.subr.bf16.mxu1 %v4622_v60  ;;  %v4486_v3 = vcombine.high %v297_v55, %v301_v56  ;;  %v4485_v5 = vcombine.low %v297_v55, %v301_v56 }
  0x76   :  { %v429_v58 = vld [vmem:[#allocation8 + $0x460] sm:$0xff]  ;;  %1878 = vmatpush1.bf16.msra.mxu0 %v4493_v61 }
  0x77   :  { %v289_v63 = vld [vmem:[#allocation8] sm:$0xff]  ;;  %v4614_v4 = vcombine.high %v425_v57, %v429_v58  ;;  %1919 = vmatpush1.bf16.msra.mxu1 %v4621_v62  ;;  %v4613_v6 = vcombine.low %v425_v57, %v429_v58  ;;  %1879 = vmatprep.subr.bf16.mxu0 %v4486_v3 }
  0x78   :  { %v293_v0 = vld [vmem:[#allocation8 + $0x20] sm:$0xff] }
  0x79   :  { %v417_v1 = vld [vmem:[#allocation8 + $0x400] sm:$0xff]  ;;  %1920 = vmatprep.subr.bf16.mxu1 %v4614_v4  ;;  %v4478_v11 = vcombine.high %v289_v63, %v293_v0  ;;  %v4477_v13 = vcombine.low %v289_v63, %v293_v0 }
  0x7a   :  { %v421_v2 = vld [vmem:[#allocation8 + $0x420] sm:$0xff]  ;;  %1880 = vmatpush1.bf16.msra.mxu0 %v4485_v5 }
  0x7b   :  { %v409_v7 = vld [vmem:[#allocation8 + $0x3c0] sm:$0xff]  ;;  %v4606_v12 = vcombine.high %v417_v1, %v421_v2  ;;  %1921 = vmatpush1.bf16.msra.mxu1 %v4613_v6  ;;  %v4605_v14 = vcombine.low %v417_v1, %v421_v2  ;;  %1881 = vmatprep.subr.bf16.mxu0 %v4478_v11  ;;  %v346_v11 = vld [vmem:[#allocation8 + $0x1c8] sm:$0xff] }
  0x7c   :  { %v413_v8 = vld [vmem:[#allocation8 + $0x3e0] sm:$0xff] }
  0x7d   :  { %v537_v9 = vld [vmem:[#allocation8 + $0x7c0] sm:$0xff]  ;;  %1922 = vmatprep.subr.bf16.mxu1 %v4606_v12  ;;  %v4598_v19 = vcombine.high %v409_v7, %v413_v8  ;;  %v4597_v21 = vcombine.low %v409_v7, %v413_v8  ;;  %v350_v12 = vld [vmem:[#allocation8 + $0x1e8] sm:$0xff] }
  0x7e   :  { %v541_v10 = vld [vmem:[#allocation8 + $0x7e0] sm:$0xff]  ;;  %1882 = vmatpush1.bf16.msra.mxu0 %v4477_v13  ;;  %v474_v13 = vld [vmem:[#allocation8 + $0x5c8] sm:$0xff] }
  0x7f   :  { %v401_v15 = vld [vmem:[#allocation8 + $0x380] sm:$0xff]  ;;  %v4726_v20 = vcombine.high %v537_v9, %v541_v10  ;;  %1923 = vmatpush1.bf16.msra.mxu1 %v4605_v14  ;;  %v4725_v22 = vcombine.low %v537_v9, %v541_v10  ;;  %1883 = vmatprep.subr.bf16.mxu0 %v4598_v19  ;;  %v4536_v14 = vcombine.high %v346_v11, %v350_v12  ;;  %v135_v19 = vlaneseq }
  0x80   :  { %v405_v16 = vld [vmem:[#allocation8 + $0x3a0] sm:$0xff] }
  0x81   :  { %v529_v17 = vld [vmem:[#allocation8 + $0x780] sm:$0xff]  ;;  %1924 = vmatprep.subr.bf16.mxu1 %v4726_v20  ;;  %v4590_v27 = vcombine.high %v401_v15, %v405_v16  ;;  %v4589_v29 = vcombine.low %v401_v15, %v405_v16  ;;  %v478_v15 = vld [vmem:[#allocation8 + $0x5e8] sm:$0xff]  ;;  %v4535_v16 = vcombine.low %v346_v11, %v350_v12  ;;  %v5771_v20 = vshrl.u32 %v135_v19, 7 }
  0x82   :  { %v533_v18 = vld [vmem:[#allocation8 + $0x7a0] sm:$0xff]  ;;  %1884 = vmatpush2.bf16.msra.mxu0 %v4597_v21  ;;  %v446_v11 = vld [vmem:[#allocation8 + $0x4e8] sm:$0xff] }
  0x83   :  { %v393_v23 = vld [vmem:[#allocation8 + $0x340] sm:$0xff]  ;;  %v4718_v28 = vcombine.high %v529_v17, %v533_v18  ;;  %1925 = vmatpush2.bf16.msra.mxu1 %v4725_v22  ;;  %v4717_v30 = vcombine.low %v529_v17, %v533_v18  ;;  %1885 = vmatprep.subr.bf16.mxu0 %v4590_v27  ;;  %v4663_v17 = vcombine.low %v474_v13, %v478_v15  ;;  %v5774_v21 = vsub.s32 0, %v5771_v20  ;;  %v438_v19 = vld [vmem:[#allocation8 + $0x4a8] sm:$0xff] }
  0x84   :  { %v397_v24 = vld [vmem:[#allocation8 + $0x360] sm:$0xff]  ;;  %v4664_v18 = vcombine.high %v474_v13, %v478_v15  ;;  %v5777_v22 = vsub.s32 2, %v5771_v20 }
  0x85   :  { %v521_v25 = vld [vmem:[#allocation8 + $0x740] sm:$0xff]  ;;  %1926 = vmatprep.subr.bf16.mxu1 %v4718_v28  ;;  %v4582_v35 = vcombine.high %v393_v23, %v397_v24  ;;  %v4581_v37 = vcombine.low %v393_v23, %v397_v24  ;;  %v133_v23 = vld [vmem:[#allocation7] sm:$0xf]  ;;  %v5780_v24 = vsub.s32 1, %v5771_v20 }
  0x86   :  { %v525_v26 = vld [vmem:[#allocation8 + $0x760] sm:$0xff]  ;;  %1886 = vmatpush2.bf16.msra.mxu0 %v4589_v29  ;;  %v146_v27 = vrot.slane %v133_v23, %v5777_v22 }
  0x87   :  { %v385_v31 = vld [vmem:[#allocation8 + $0x300] sm:$0xff]  ;;  %v4710_v36 = vcombine.high %v521_v25, %v525_v26  ;;  %1927 = vmatpush2.bf16.msra.mxu1 %v4717_v30  ;;  %v4709_v38 = vcombine.low %v521_v25, %v525_v26  ;;  %1887 = vmatprep.subr.bf16.mxu0 %v4582_v35  ;;  %v5783_v25 = vsub.s32 3, %v5771_v20  ;;  %v138_v26 = vrot.slane %v133_v23, %v5774_v21 }
  0x88   :  { %v389_v32 = vld [vmem:[#allocation8 + $0x320] sm:$0xff]  ;;  %v142_v28 = vrot.slane %v133_v23, %v5780_v24 }
  0x89   :  { %v513_v33 = vld [vmem:[#allocation8 + $0x700] sm:$0xff]  ;;  %1928 = vmatprep.subr.bf16.mxu1 %v4710_v36  ;;  %v4574_v43 = vcombine.high %v385_v31, %v389_v32  ;;  %v4573_v45 = vcombine.low %v385_v31, %v389_v32  ;;  %v150_v29 = vrot.slane %v133_v23, %v5783_v25 }
  0x8a   :  { %v517_v34 = vld [vmem:[#allocation8 + $0x720] sm:$0xff]  ;;  %1888 = vmatpush2.bf16.msra.mxu0 %v4581_v37 }
  0x8b   :  { %v377_v39 = vld [vmem:[#allocation8 + $0x2c0] sm:$0xff]  ;;  %v4702_v44 = vcombine.high %v513_v33, %v517_v34  ;;  %1929 = vmatpush2.bf16.msra.mxu1 %v4709_v38  ;;  %v4701_v46 = vcombine.low %v513_v33, %v517_v34  ;;  %1889 = vmatprep.subr.bf16.mxu0 %v4574_v43 }
  0x8c   :  { %v381_v40 = vld [vmem:[#allocation8 + $0x2e0] sm:$0xff] }
  0x8d   :  { %v505_v41 = vld [vmem:[#allocation8 + $0x6c0] sm:$0xff]  ;;  %1930 = vmatprep.subr.bf16.mxu1 %v4702_v44  ;;  %v4566_v51 = vcombine.high %v377_v39, %v381_v40  ;;  %v4565_v53 = vcombine.low %v377_v39, %v381_v40  ;;  %v338_v44 = vld [vmem:[#allocation8 + $0x188] sm:$0xff] }
  0x8e   :  { %v509_v42 = vld [vmem:[#allocation8 + $0x6e0] sm:$0xff]  ;;  %1890 = vmatpush2.bf16.msra.mxu0 %v4573_v45 }
  0x8f   :  { %v369_v47 = vld [vmem:[#allocation8 + $0x280] sm:$0xff]  ;;  %v4694_v52 = vcombine.high %v505_v41, %v509_v42  ;;  %1931 = vmatpush2.bf16.msra.mxu1 %v4701_v46  ;;  %v4693_v54 = vcombine.low %v505_v41, %v509_v42  ;;  %1891 = vmatprep.subr.bf16.mxu0 %v4566_v51 }
  0x90   :  { %v373_v48 = vld [vmem:[#allocation8 + $0x2a0] sm:$0xff] }
  0x91   :  { %v497_v49 = vld [vmem:[#allocation8 + $0x680] sm:$0xff]  ;;  %1932 = vmatprep.subr.bf16.mxu1 %v4694_v52  ;;  %v4558_v55 = vcombine.high %v369_v47, %v373_v48  ;;  %v4557_v57 = vcombine.low %v369_v47, %v373_v48  ;;  %v342_v48 = vld [vmem:[#allocation8 + $0x1a8] sm:$0xff] }
  0x92   :  { %v501_v50 = vld [vmem:[#allocation8 + $0x6a0] sm:$0xff]  ;;  %1892 = vmatpush2.bf16.msra.mxu0 %v4565_v53 }
  0x93   :  { %v4686_v56 = vcombine.high %v497_v49, %v501_v50  ;;  %1933 = vmatpush2.bf16.msra.mxu1 %v4693_v54  ;;  %v4685_v58 = vcombine.low %v497_v49, %v501_v50  ;;  %1893 = vmatprep.subr.bf16.mxu0 %v4558_v55  ;;  %v361_v59 = vld [vmem:[#allocation8 + $0x240] sm:$0xff]  ;;  %v466_v49 = vld [vmem:[#allocation8 + $0x588] sm:$0xff]  ;;  %v4528_v55 = vcombine.high %v338_v44, %v342_v48 }
  0x94   :  { %v365_v60 = vld [vmem:[#allocation8 + $0x260] sm:$0xff]  ;;  %v470_v50 = vld [vmem:[#allocation8 + $0x5a8] sm:$0xff] }
  0x95   :  { %1934 = vmatprep.subr.bf16.mxu1 %v4686_v56  ;;  %v489_v61 = vld [vmem:[#allocation8 + $0x640] sm:$0xff]  ;;  %v4550_v62 = vcombine.high %v361_v59, %v365_v60  ;;  %v4549_v0 = vcombine.low %v361_v59, %v365_v60  ;;  %v330_v54 = vld [vmem:[#allocation8 + $0x148] sm:$0xff]  ;;  %v4656_v56 = vcombine.high %v466_v49, %v470_v50  ;;  %v4527_v60 = vcombine.low %v338_v44, %v342_v48 }
  0x96   :  { %1894 = vmatpush2.bf16.msra.mxu0 %v4557_v57  ;;  %v493_v63 = vld [vmem:[#allocation8 + $0x660] sm:$0xff]  ;;  %v334_v57 = vld [vmem:[#allocation8 + $0x168] sm:$0xff] }
  0x97   :  { %1935 = vmatpush2.bf16.msra.mxu1 %v4685_v58  ;;  %v4677_v1 = vcombine.low %v489_v61, %v493_v63  ;;  %v4678_v2 = vcombine.high %v489_v61, %v493_v63  ;;  %1895 = vmatprep.subr.bf16.mxu0 %v4550_v62  ;;  %v353_v3 = vld [vmem:[#allocation8 + $0x200] sm:$0xff]  ;;  %v458_v58 = vld [vmem:[#allocation8 + $0x548] sm:$0xff]  ;;  %v4655_v61 = vcombine.low %v466_v49, %v470_v50 }
  0x98   :  { %v357_v4 = vld [vmem:[#allocation8 + $0x220] sm:$0xff]  ;;  %v462_v59 = vld [vmem:[#allocation8 + $0x568] sm:$0xff]  ;;  %v4520_v62 = vcombine.high %v330_v54, %v334_v57 }
  0x99   :  { %1936 = vmatprep.subr.bf16.mxu1 %v4678_v2  ;;  %v481_v5 = vld [vmem:[#allocation8 + $0x600] sm:$0xff]  ;;  %v4542_v6 = vcombine.high %v353_v3, %v357_v4  ;;  %v4541_v8 = vcombine.low %v353_v3, %v357_v4  ;;  %v4648_v63 = vcombine.high %v458_v58, %v462_v59  ;;  %v450_v2 = vld [vmem:[#allocation8 + $0x508] sm:$0xff]  ;;  %v4519_v4 = vcombine.low %v330_v54, %v334_v57 }
  0x9a   :  { %1896 = vmatpush2.bf16.msra.mxu0 %v4549_v0  ;;  %v485_v7 = vld [vmem:[#allocation8 + $0x620] sm:$0xff]  ;;  %v322_v0 = vld [vmem:[#allocation8 + $0x108] sm:$0xff] }
  0x9b   :  { %1937 = vmatpush2.bf16.msra.mxu1 %v4677_v1  ;;  %v4669_v9 = vcombine.low %v481_v5, %v485_v7  ;;  %v4670_v10 = vcombine.high %v481_v5, %v485_v7  ;;  %1897 = vmatprep.subr.bf16.mxu0 %v4542_v6  ;;  %v326_v1 = vld [vmem:[#allocation8 + $0x128] sm:$0xff]  ;;  %v4647_v5 = vcombine.low %v458_v58, %v462_v59 }
  0x9c   :  { %v454_v3 = vld [vmem:[#allocation8 + $0x528] sm:$0xff]  ;;  %v4512_v6 = vcombine.high %v322_v0, %v326_v1  ;;  %v4511_v12 = vcombine.low %v322_v0, %v326_v1 }
  0x9d   :  { %1938 = vmatprep.subr.bf16.mxu1 %v4670_v10  ;;  %v4640_v7 = vcombine.high %v450_v2, %v454_v3  ;;  %v442_v10 = vld [vmem:[#allocation8 + $0x4c8] sm:$0xff]  ;;  %v4639_v13 = vcombine.low %v450_v2, %v454_v3 }
  0x9e   :  { %1898 = vmatpush2.bf16.msra.mxu0 %v4541_v8  ;;  %v314_v8 = vld [vmem:[#allocation8 + $0xc8] sm:$0xff]  ;;  %v4632_v15 = vcombine.high %v442_v10, %v446_v11 }
  0x9f   :  { %1939 = vmatpush2.bf16.msra.mxu1 %v4669_v9  ;;  %1949 = vmatprep.subr.bf16.mxu0 %v4536_v14  ;;  %v318_v9 = vld [vmem:[#allocation8 + $0xe8] sm:$0xff] }
  0xa0   :  { %1990 = vmatprep.subr.bf16.mxu1 %v4664_v18  ;;  %v4504_v14 = vcombine.high %v314_v8, %v318_v9  ;;  %v434_v18 = vld [vmem:[#allocation8 + $0x488] sm:$0xff]  ;;  %v4503_v23 = vcombine.low %v314_v8, %v318_v9 }
  0xa1   :  { %v538_v48 = vld [vmem:[#allocation8 + $0x7c8] sm:$0xff] }
  0xa2   :  { %v542_v49 = vld [vmem:[#allocation8 + $0x7e8] sm:$0xff] }
  0xa3   :  { %v402_v57 = vld [vmem:[#allocation8 + $0x388] sm:$0xff] }
  0xa4   :  { %v406_v58 = vld [vmem:[#allocation8 + $0x3a8] sm:$0xff] }
  0xa5   :  { %v530_v59 = vld [vmem:[#allocation8 + $0x788] sm:$0xff] }
  0xa6   :  { %v394_v1 = vld [vmem:[#allocation8 + $0x348] sm:$0xff] }
  0xa7   :  { %v398_v2 = vld [vmem:[#allocation8 + $0x368] sm:$0xff] }
  0xa8   :  { %v522_v3 = vld [vmem:[#allocation8 + $0x748] sm:$0xff] }
  0xa9   :  { %v386_v9 = vld [vmem:[#allocation8 + $0x308] sm:$0xff] }
 0x121   :  { %v233_v30 = vpop.f32.mrf.mxu0 }
 0x122   :  { %v274_v31 = vpop.f32.mrf.mxu1  ;;  %v234_v32 = vadd.f32 %v233_v30, %v138_v26  ;;  %v4631_v26 = vcombine.low %v442_v10, %v446_v11  ;;  %v302_v30 = vld [vmem:[#allocation8 + $0x68] sm:$0xff] }
 0x123   :  { %v275_v33 = vadd.f32 %v274_v31, %v146_v27  ;;  %v235_v34 = vpop.f32.mrf.mxu0  ;;  %v426_v31 = vld [vmem:[#allocation8 + $0x448] sm:$0xff] }
 0x124   :  { %v276_v35 = vpop.f32.mrf.mxu1  ;;  %v236_v37 = vadd.f32 %v235_v34, %v142_v28  ;;  %v281_v39 = vmax.f32 %v234_v32, 0.0  ;;  %v4624_v28 = vcombine.high %v434_v18, %v438_v19  ;;  %v430_v32 = vld [vmem:[#allocation8 + $0x468] sm:$0xff]  ;;  %v4623_v34 = vcombine.low %v434_v18, %v438_v19 }
 0x125   :  { %v283_v36 = vmax.f32 %v275_v33, 0.0  ;;  %v277_v38 = vadd.f32 %v276_v35, %v150_v29  ;;  %v237_v40 = vpop.f32.mrf.mxu0  ;;  %v298_v29 = vld [vmem:[#allocation8 + $0x48] sm:$0xff] }
 0x126   :  { %v278_v41 = vpop.f32.mrf.mxu1  ;;  %v282_v42 = vmax.f32 %v236_v37, 0.0  ;;  %v5795_v53 = vpack.c.bf16 %v281_v39, %v281_v39  ;;  %v4488_v35 = vcombine.high %v298_v29, %v302_v30  ;;  %v290_v37 = vld [vmem:[#allocation8 + $0x8] sm:$0xff] }
 0x127   :  { %v284_v43 = vmax.f32 %v277_v38, 0.0  ;;  %v5789_v45 = vpack.c.bf16 %v283_v36, %v283_v36  ;;  %v238_v46 = vpop.f32.mrf.mxu0  ;;  %v4616_v36 = vcombine.high %v426_v31, %v430_v32  ;;  %v294_v38 = vld [vmem:[#allocation8 + $0x28] sm:$0xff]  ;;  %v4487_v41 = vcombine.low %v298_v29, %v302_v30 }
 0x128   :  { %v279_v47 = vpop.f32.mrf.mxu1  ;;  %v5791_v51 = vpack.c.bf16 %v282_v42, %v282_v42  ;;  %v418_v39 = vld [vmem:[#allocation8 + $0x408] sm:$0xff]  ;;  %v4615_v42 = vcombine.low %v426_v31, %v430_v32  ;;  %v4479_v50 = vcombine.low %v290_v37, %v294_v38 }
 0x129   :  { %v5793_v52 = vpack.c.bf16 %v284_v43, %v284_v43  ;;  %v422_v40 = vld [vmem:[#allocation8 + $0x428] sm:$0xff]  ;;  %v4480_v43 = vcombine.high %v290_v37, %v294_v38 }
 0x12a   :  { %1899 = vmatprep.mubr.bf16.mxu0 %v5791_v51  ;;  %v4608_v44 = vcombine.high %v418_v39, %v422_v40  ;;  %v410_v46 = vld [vmem:[#allocation8 + $0x3c8] sm:$0xff]  ;;  %v4607_v54 = vcombine.low %v418_v39, %v422_v40 }
 0x12b   :  { %1940 = vmatprep.mubr.bf16.mxu1 %v5793_v52  ;;  %1900 = vmatmul.mubr.bf16.vlgmr.msra.gmra.mxu0 %v5795_v53  ;;  %v414_v47 = vld [vmem:[#allocation8 + $0x3e8] sm:$0xff] }
 0x12c   :  { %1941 = vmatmul.mubr.bf16.vlgmr.msra.gmra.mxu1 %v5789_v45  ;;  %1950 = vmatpush1.bf16.msra.mxu0 %v4535_v16  ;;  %v306_v16 = vld [vmem:[#allocation8 + $0x88] sm:$0xff] }
 0x12d   :  { %1991 = vmatpush1.bf16.msra.mxu1 %v4663_v17  ;;  %1981 = vmatprep.mubr.bf16.mxu0 %v5791_v51  ;;  %v310_v17 = vld [vmem:[#allocation8 + $0xa8] sm:$0xff] }
 0x12e   :  { %2022 = vmatprep.mubr.bf16.mxu1 %v5793_v52  ;;  %1951 = vmatprep.subr.bf16.mxu0 %v4528_v55  ;;  %v4496_v27 = vcombine.high %v306_v16, %v310_v17  ;;  %v4495_v33 = vcombine.low %v306_v16, %v310_v17  ;;  %v4600_v55 = vcombine.high %v410_v46, %v414_v47  ;;  %v390_v10 = vld [vmem:[#allocation8 + $0x328] sm:$0xff] }
 0x12f   :  { %1992 = vmatprep.subr.bf16.mxu1 %v4656_v56  ;;  %v4728_v56 = vcombine.high %v538_v48, %v542_v49  ;;  %v514_v11 = vld [vmem:[#allocation8 + $0x708] sm:$0xff] }
 0x130   :  { %1952 = vmatpush1.bf16.msra.mxu0 %v4527_v60  ;;  %v534_v60 = vld [vmem:[#allocation8 + $0x7a8] sm:$0xff] }
 0x131   :  { %1993 = vmatpush1.bf16.msra.mxu1 %v4655_v61  ;;  %1953 = vmatprep.subr.bf16.mxu0 %v4520_v62  ;;  %v4599_v61 = vcombine.low %v410_v46, %v414_v47  ;;  %v4727_v62 = vcombine.low %v538_v48, %v542_v49  ;;  %v4720_v0 = vcombine.high %v530_v59, %v534_v60  ;;  %v378_v17 = vld [vmem:[#allocation8 + $0x2c8] sm:$0xff] }
 0x132   :  { %1994 = vmatprep.subr.bf16.mxu1 %v4648_v63  ;;  %v4592_v63 = vcombine.high %v402_v57, %v406_v58  ;;  %v382_v18 = vld [vmem:[#allocation8 + $0x2e8] sm:$0xff] }
 0x133   :  { %v506_v19 = vld [vmem:[#allocation8 + $0x6c8] sm:$0xff] }
 0x134   :  { %1954 = vmatpush1.bf16.msra.mxu0 %v4519_v4  ;;  %v526_v4 = vld [vmem:[#allocation8 + $0x768] sm:$0xff] }
 0x135   :  { %1995 = vmatpush1.bf16.msra.mxu1 %v4647_v5  ;;  %1955 = vmatprep.subr.bf16.mxu0 %v4512_v6  ;;  %v4591_v5 = vcombine.low %v402_v57, %v406_v58  ;;  %v4719_v6 = vcombine.low %v530_v59, %v534_v60  ;;  %v4712_v8 = vcombine.high %v522_v3, %v526_v4  ;;  %v370_v30 = vld [vmem:[#allocation8 + $0x288] sm:$0xff]  ;;  %v347_v58 = vld [vmem:[#allocation8 + $0x1d0] sm:$0xff] }
 0x136   :  { %1996 = vmatprep.subr.bf16.mxu1 %v4640_v7  ;;  %v4584_v7 = vcombine.high %v394_v1, %v398_v2  ;;  %v374_v31 = vld [vmem:[#allocation8 + $0x2a8] sm:$0xff]  ;;  %v351_v59 = vld [vmem:[#allocation8 + $0x1f0] sm:$0xff] }
 0x137   :  { %v498_v32 = vld [vmem:[#allocation8 + $0x688] sm:$0xff]  ;;  %v475_v60 = vld [vmem:[#allocation8 + $0x5d0] sm:$0xff] }
 0x138   :  { %1956 = vmatpush1.bf16.msra.mxu0 %v4511_v12  ;;  %v518_v12 = vld [vmem:[#allocation8 + $0x728] sm:$0xff] }
 0x139   :  { %1997 = vmatpush1.bf16.msra.mxu1 %v4639_v13  ;;  %1957 = vmatprep.subr.bf16.mxu0 %v4504_v14  ;;  %v4583_v13 = vcombine.low %v394_v1, %v398_v2  ;;  %v4711_v14 = vcombine.low %v522_v3, %v526_v4  ;;  %v4704_v16 = vcombine.high %v514_v11, %v518_v12  ;;  %v362_v38 = vld [vmem:[#allocation8 + $0x248] sm:$0xff]  ;;  %v339_v2 = vld [vmem:[#allocation8 + $0x190] sm:$0xff] }
 0x13a   :  { %1998 = vmatprep.subr.bf16.mxu1 %v4632_v15  ;;  %v4576_v15 = vcombine.high %v386_v9, %v390_v10  ;;  %v366_v39 = vld [vmem:[#allocation8 + $0x268] sm:$0xff]  ;;  %v343_v3 = vld [vmem:[#allocation8 + $0x1b0] sm:$0xff] }
 0x13b   :  { %v490_v40 = vld [vmem:[#allocation8 + $0x648] sm:$0xff]  ;;  %v467_v4 = vld [vmem:[#allocation8 + $0x590] sm:$0xff] }
 0x13c   :  { %1958 = vmatpush1.bf16.msra.mxu0 %v4503_v23  ;;  %v510_v23 = vld [vmem:[#allocation8 + $0x6e8] sm:$0xff] }
 0x13d   :  { %1999 = vmatpush1.bf16.msra.mxu1 %v4631_v26  ;;  %1959 = vmatprep.subr.bf16.mxu0 %v4496_v27  ;;  %v4575_v26 = vcombine.low %v386_v9, %v390_v10  ;;  %v4703_v27 = vcombine.low %v514_v11, %v518_v12  ;;  %v4696_v29 = vcombine.high %v506_v19, %v510_v23  ;;  %v354_v47 = vld [vmem:[#allocation8 + $0x208] sm:$0xff]  ;;  %v331_v10 = vld [vmem:[#allocation8 + $0x150] sm:$0xff] }
 0x13e   :  { %2000 = vmatprep.subr.bf16.mxu1 %v4624_v28  ;;  %v4568_v28 = vcombine.high %v378_v17, %v382_v18  ;;  %v358_v48 = vld [vmem:[#allocation8 + $0x228] sm:$0xff]  ;;  %v335_v11 = vld [vmem:[#allocation8 + $0x170] sm:$0xff] }
 0x13f   :  { %v482_v49 = vld [vmem:[#allocation8 + $0x608] sm:$0xff]  ;;  %v459_v12 = vld [vmem:[#allocation8 + $0x550] sm:$0xff] }
 0x140   :  { %1960 = vmatpush1.bf16.msra.mxu0 %v4495_v33  ;;  %v502_v33 = vld [vmem:[#allocation8 + $0x6a8] sm:$0xff] }
 0x141   :  { %2001 = vmatpush1.bf16.msra.mxu1 %v4623_v34  ;;  %1961 = vmatprep.subr.bf16.mxu0 %v4488_v35  ;;  %v4567_v34 = vcombine.low %v378_v17, %v382_v18  ;;  %v4695_v35 = vcombine.low %v506_v19, %v510_v23  ;;  %v4688_v37 = vcombine.high %v498_v32, %v502_v33  ;;  %v323_v18 = vld [vmem:[#allocation8 + $0x110] sm:$0xff] }
 0x142   :  { %2002 = vmatprep.subr.bf16.mxu1 %v4616_v36  ;;  %v4560_v36 = vcombine.high %v370_v30, %v374_v31  ;;  %v327_v19 = vld [vmem:[#allocation8 + $0x130] sm:$0xff] }
 0x143   :  { %v451_v23 = vld [vmem:[#allocation8 + $0x510] sm:$0xff] }
 0x144   :  { %1962 = vmatpush1.bf16.msra.mxu0 %v4487_v41  ;;  %v494_v41 = vld [vmem:[#allocation8 + $0x668] sm:$0xff] }
 0x145   :  { %2003 = vmatpush1.bf16.msra.mxu1 %v4615_v42  ;;  %1963 = vmatprep.subr.bf16.mxu0 %v4480_v43  ;;  %v4559_v42 = vcombine.low %v370_v30, %v374_v31  ;;  %v4687_v43 = vcombine.low %v498_v32, %v502_v33  ;;  %v4680_v46 = vcombine.high %v490_v40, %v494_v41  ;;  %v315_v31 = vld [vmem:[#allocation8 + $0xd0] sm:$0xff] }
 0x146   :  { %2004 = vmatprep.subr.bf16.mxu1 %v4608_v44  ;;  %v4552_v44 = vcombine.high %v362_v38, %v366_v39  ;;  %v319_v32 = vld [vmem:[#allocation8 + $0xf0] sm:$0xff] }
 0x147   :  { %v443_v33 = vld [vmem:[#allocation8 + $0x4d0] sm:$0xff] }
 0x148   :  { %1964 = vmatpush1.bf16.msra.mxu0 %v4479_v50  ;;  %v486_v50 = vld [vmem:[#allocation8 + $0x628] sm:$0xff] }
 0x149   :  { %2005 = vmatpush1.bf16.msra.mxu1 %v4607_v54  ;;  %1965 = vmatprep.subr.bf16.mxu0 %v4600_v55  ;;  %v4551_v54 = vcombine.low %v362_v38, %v366_v39  ;;  %v4679_v55 = vcombine.low %v490_v40, %v494_v41  ;;  %v4672_v57 = vcombine.high %v482_v49, %v486_v50  ;;  %v307_v39 = vld [vmem:[#allocation8 + $0x90] sm:$0xff] }
 0x14a   :  { %2006 = vmatprep.subr.bf16.mxu1 %v4728_v56  ;;  %v4544_v56 = vcombine.high %v354_v47, %v358_v48  ;;  %v311_v40 = vld [vmem:[#allocation8 + $0xb0] sm:$0xff] }
 0x14b   :  { %v435_v41 = vld [vmem:[#allocation8 + $0x490] sm:$0xff] }
 0x14c   :  { %1966 = vmatpush2.bf16.msra.mxu0 %v4599_v61  ;;  %v479_v61 = vld [vmem:[#allocation8 + $0x5f0] sm:$0xff] }
 0x14d   :  { %2007 = vmatpush2.bf16.msra.mxu1 %v4727_v62  ;;  %1967 = vmatprep.subr.bf16.mxu0 %v4592_v63  ;;  %v4543_v62 = vcombine.low %v354_v47, %v358_v48  ;;  %v4671_v63 = vcombine.low %v482_v49, %v486_v50  ;;  %v4666_v1 = vcombine.high %v475_v60, %v479_v61  ;;  %v299_v48 = vld [vmem:[#allocation8 + $0x50] sm:$0xff] }
 0x14e   :  { %2008 = vmatprep.subr.bf16.mxu1 %v4720_v0  ;;  %v4538_v0 = vcombine.high %v347_v58, %v351_v59  ;;  %v303_v49 = vld [vmem:[#allocation8 + $0x70] sm:$0xff] }
 0x14f   :  { %v427_v50 = vld [vmem:[#allocation8 + $0x450] sm:$0xff] }
 0x150   :  { %1968 = vmatpush2.bf16.msra.mxu0 %v4591_v5  ;;  %v471_v5 = vld [vmem:[#allocation8 + $0x5b0] sm:$0xff] }
 0x151   :  { %2009 = vmatpush2.bf16.msra.mxu1 %v4719_v6  ;;  %1969 = vmatprep.subr.bf16.mxu0 %v4584_v7  ;;  %v4537_v6 = vcombine.low %v347_v58, %v351_v59  ;;  %v4665_v7 = vcombine.low %v475_v60, %v479_v61  ;;  %v4658_v9 = vcombine.high %v467_v4, %v471_v5  ;;  %v291_v59 = vld [vmem:[#allocation8 + $0x10] sm:$0xff] }
 0x152   :  { %2010 = vmatprep.subr.bf16.mxu1 %v4712_v8  ;;  %v4530_v8 = vcombine.high %v339_v2, %v343_v3  ;;  %v295_v60 = vld [vmem:[#allocation8 + $0x30] sm:$0xff] }
 0x153   :  { %v419_v61 = vld [vmem:[#allocation8 + $0x410] sm:$0xff] }
 0x154   :  { %1970 = vmatpush2.bf16.msra.mxu0 %v4583_v13  ;;  %v463_v13 = vld [vmem:[#allocation8 + $0x570] sm:$0xff] }
 0x155   :  { %2011 = vmatpush2.bf16.msra.mxu1 %v4711_v14  ;;  %1971 = vmatprep.subr.bf16.mxu0 %v4576_v15  ;;  %v4529_v14 = vcombine.low %v339_v2, %v343_v3  ;;  %v4657_v15 = vcombine.low %v467_v4, %v471_v5  ;;  %v4650_v17 = vcombine.high %v459_v12, %v463_v13  ;;  %v411_v3 = vld [vmem:[#allocation8 + $0x3d0] sm:$0xff] }
 0x156   :  { %2012 = vmatprep.subr.bf16.mxu1 %v4704_v16  ;;  %v4522_v16 = vcombine.high %v331_v10, %v335_v11  ;;  %v415_v4 = vld [vmem:[#allocation8 + $0x3f0] sm:$0xff] }
 0x157   :  { %v539_v5 = vld [vmem:[#allocation8 + $0x7d0] sm:$0xff] }
 0x158   :  { %1972 = vmatpush2.bf16.msra.mxu0 %v4575_v26  ;;  %v455_v26 = vld [vmem:[#allocation8 + $0x530] sm:$0xff] }
 0x159   :  { %2013 = vmatpush2.bf16.msra.mxu1 %v4703_v27  ;;  %1973 = vmatprep.subr.bf16.mxu0 %v4568_v28  ;;  %v4521_v27 = vcombine.low %v331_v10, %v335_v11  ;;  %v4649_v28 = vcombine.low %v459_v12, %v463_v13  ;;  %v4642_v30 = vcombine.high %v451_v23, %v455_v26  ;;  %v403_v11 = vld [vmem:[#allocation8 + $0x390] sm:$0xff] }
 0x15a   :  { %2014 = vmatprep.subr.bf16.mxu1 %v4696_v29  ;;  %v4514_v29 = vcombine.high %v323_v18, %v327_v19  ;;  %v407_v12 = vld [vmem:[#allocation8 + $0x3b0] sm:$0xff] }
 0x15b   :  { %v531_v13 = vld [vmem:[#allocation8 + $0x790] sm:$0xff] }
 0x15c   :  { %1974 = vmatpush2.bf16.msra.mxu0 %v4567_v34  ;;  %v447_v34 = vld [vmem:[#allocation8 + $0x4f0] sm:$0xff] }
 0x15d   :  { %2015 = vmatpush2.bf16.msra.mxu1 %v4695_v35  ;;  %1975 = vmatprep.subr.bf16.mxu0 %v4560_v36  ;;  %v4513_v35 = vcombine.low %v323_v18, %v327_v19  ;;  %v4641_v36 = vcombine.low %v451_v23, %v455_v26  ;;  %v4634_v38 = vcombine.high %v443_v33, %v447_v34  ;;  %v395_v19 = vld [vmem:[#allocation8 + $0x350] sm:$0xff] }
 0x15e   :  { %2016 = vmatprep.subr.bf16.mxu1 %v4688_v37  ;;  %v4506_v37 = vcombine.high %v315_v31, %v319_v32  ;;  %v399_v23 = vld [vmem:[#allocation8 + $0x370] sm:$0xff] }
 0x15f   :  { %v523_v26 = vld [vmem:[#allocation8 + $0x750] sm:$0xff] }
 0x160   :  { %1976 = vmatpush2.bf16.msra.mxu0 %v4559_v42  ;;  %v439_v42 = vld [vmem:[#allocation8 + $0x4b0] sm:$0xff] }
 0x161   :  { %2017 = vmatpush2.bf16.msra.mxu1 %v4687_v43  ;;  %1977 = vmatprep.subr.bf16.mxu0 %v4552_v44  ;;  %v4505_v43 = vcombine.low %v315_v31, %v319_v32  ;;  %v4633_v44 = vcombine.low %v443_v33, %v447_v34  ;;  %v4626_v47 = vcombine.high %v435_v41, %v439_v42  ;;  %v387_v32 = vld [vmem:[#allocation8 + $0x310] sm:$0xff] }
 0x162   :  { %2018 = vmatprep.subr.bf16.mxu1 %v4680_v46  ;;  %v4498_v46 = vcombine.high %v307_v39, %v311_v40  ;;  %v391_v33 = vld [vmem:[#allocation8 + $0x330] sm:$0xff] }
 0x163   :  { %v515_v34 = vld [vmem:[#allocation8 + $0x710] sm:$0xff] }
 0x164   :  { %1978 = vmatpush2.bf16.msra.mxu0 %v4551_v54  ;;  %v431_v54 = vld [vmem:[#allocation8 + $0x470] sm:$0xff] }
 0x165   :  { %2019 = vmatpush2.bf16.msra.mxu1 %v4679_v55  ;;  %1979 = vmatprep.subr.bf16.mxu0 %v4544_v56  ;;  %v4497_v55 = vcombine.low %v307_v39, %v311_v40  ;;  %v4625_v56 = vcombine.low %v435_v41, %v439_v42  ;;  %v4618_v58 = vcombine.high %v427_v50, %v431_v54  ;;  %v379_v40 = vld [vmem:[#allocation8 + $0x2d0] sm:$0xff] }
 0x166   :  { %2020 = vmatprep.subr.bf16.mxu1 %v4672_v57  ;;  %v4490_v57 = vcombine.high %v299_v48, %v303_v49  ;;  %v383_v41 = vld [vmem:[#allocation8 + $0x2f0] sm:$0xff] }
 0x167   :  { %v507_v42 = vld [vmem:[#allocation8 + $0x6d0] sm:$0xff] }
 0x168   :  { %1980 = vmatpush2.bf16.msra.mxu0 %v4543_v62  ;;  %v423_v62 = vld [vmem:[#allocation8 + $0x430] sm:$0xff] }
 0x169   :  { %2021 = vmatpush2.bf16.msra.mxu1 %v4671_v63  ;;  %2031 = vmatprep.subr.bf16.mxu0 %v4538_v0  ;;  %v4489_v63 = vcombine.low %v299_v48, %v303_v49  ;;  %v4617_v0 = vcombine.low %v427_v50, %v431_v54  ;;  %v4610_v2 = vcombine.high %v419_v61, %v423_v62  ;;  %v371_v49 = vld [vmem:[#allocation8 + $0x290] sm:$0xff] }
 0x16a   :  { %2072 = vmatprep.subr.bf16.mxu1 %v4666_v1  ;;  %v4482_v1 = vcombine.high %v291_v59, %v295_v60  ;;  %v375_v50 = vld [vmem:[#allocation8 + $0x2b0] sm:$0xff] }
 0x16b   :  { %1982 = vmatmul.mubr.bf16.vlgmr.msra.gmra.mxu0 %v5795_v53  ;;  %v499_v54 = vld [vmem:[#allocation8 + $0x690] sm:$0xff] }
 0x16c   :  { %2023 = vmatmul.mubr.bf16.vlgmr.msra.gmra.mxu1 %v5789_v45  ;;  %2032 = vmatpush1.bf16.msra.mxu0 %v4537_v6  ;;  %v543_v6 = vld [vmem:[#allocation8 + $0x7f0] sm:$0xff] }
 0x16d   :  { %2063 = vmatprep.mubr.bf16.mxu0 %v5791_v51  ;;  %2073 = vmatpush1.bf16.msra.mxu1 %v4665_v7  ;;  %v4481_v7 = vcombine.low %v291_v59, %v295_v60  ;;  %v4730_v10 = vcombine.high %v539_v5, %v543_v6  ;;  %v363_v60 = vld [vmem:[#allocation8 + $0x250] sm:$0xff] }
 0x16e   :  { %2104 = vmatprep.mubr.bf16.mxu1 %v5793_v52  ;;  %2033 = vmatprep.subr.bf16.mxu0 %v4530_v8  ;;  %v4609_v8 = vcombine.low %v419_v61, %v423_v62  ;;  %v367_v61 = vld [vmem:[#allocation8 + $0x270] sm:$0xff] }
 0x16f   :  { %2074 = vmatprep.subr.bf16.mxu1 %v4658_v9  ;;  %v4602_v9 = vcombine.high %v411_v3, %v415_v4  ;;  %v491_v62 = vld [vmem:[#allocation8 + $0x650] sm:$0xff] }
 0x170   :  { %2034 = vmatpush1.bf16.msra.mxu0 %v4529_v14  ;;  %v535_v14 = vld [vmem:[#allocation8 + $0x7b0] sm:$0xff] }
 0x171   :  { %2075 = vmatpush1.bf16.msra.mxu1 %v4657_v15  ;;  %2035 = vmatprep.subr.bf16.mxu0 %v4522_v16  ;;  %v4601_v15 = vcombine.low %v411_v3, %v415_v4  ;;  %v4729_v16 = vcombine.low %v539_v5, %v543_v6  ;;  %v4722_v18 = vcombine.high %v531_v13, %v535_v14  ;;  %v355_v4 = vld [vmem:[#allocation8 + $0x210] sm:$0xff] }
 0x172   :  { %2076 = vmatprep.subr.bf16.mxu1 %v4650_v17  ;;  %v4594_v17 = vcombine.high %v403_v11, %v407_v12  ;;  %v359_v5 = vld [vmem:[#allocation8 + $0x230] sm:$0xff] }
 0x173   :  { %v483_v6 = vld [vmem:[#allocation8 + $0x610] sm:$0xff] }
 0x174   :  { %2036 = vmatpush1.bf16.msra.mxu0 %v4521_v27  ;;  %v527_v27 = vld [vmem:[#allocation8 + $0x770] sm:$0xff] }
 0x175   :  { %2077 = vmatpush1.bf16.msra.mxu1 %v4649_v28  ;;  %2037 = vmatprep.subr.bf16.mxu0 %v4514_v29  ;;  %v4593_v28 = vcombine.low %v403_v11, %v407_v12  ;;  %v4721_v29 = vcombine.low %v531_v13, %v535_v14  ;;  %v4714_v31 = vcombine.high %v523_v26, %v527_v27  ;;  %v348_v12 = vld [vmem:[#allocation8 + $0x1d8] sm:$0xff] }
 0x176   :  { %2078 = vmatprep.subr.bf16.mxu1 %v4642_v30  ;;  %v4586_v30 = vcombine.high %v395_v19, %v399_v23  ;;  %v352_v13 = vld [vmem:[#allocation8 + $0x1f8] sm:$0xff] }
 0x177   :  { %v476_v14 = vld [vmem:[#allocation8 + $0x5d8] sm:$0xff] }
 0x178   :  { %2038 = vmatpush1.bf16.msra.mxu0 %v4513_v35  ;;  %v519_v35 = vld [vmem:[#allocation8 + $0x730] sm:$0xff] }
 0x179   :  { %2079 = vmatpush1.bf16.msra.mxu1 %v4641_v36  ;;  %2039 = vmatprep.subr.bf16.mxu0 %v4506_v37  ;;  %v4585_v36 = vcombine.low %v395_v19, %v399_v23  ;;  %v4713_v37 = vcombine.low %v523_v26, %v527_v27  ;;  %v4706_v39 = vcombine.high %v515_v34, %v519_v35  ;;  %v340_v23 = vld [vmem:[#allocation8 + $0x198] sm:$0xff] }
 0x17a   :  { %2080 = vmatprep.subr.bf16.mxu1 %v4634_v38  ;;  %v4578_v38 = vcombine.high %v387_v32, %v391_v33  ;;  %v344_v26 = vld [vmem:[#allocation8 + $0x1b8] sm:$0xff]  ;;  %v4539_v27 = vcombine.low %v348_v12, %v352_v13 }
 0x17c   :  { %2040 = vmatpush1.bf16.msra.mxu0 %v4505_v43  ;;  %v511_v43 = vld [vmem:[#allocation8 + $0x6f0] sm:$0xff] }
 0x17d   :  { %2081 = vmatpush1.bf16.msra.mxu1 %v4633_v44  ;;  %2041 = vmatprep.subr.bf16.mxu0 %v4498_v46  ;;  %v4577_v44 = vcombine.low %v387_v32, %v391_v33  ;;  %v4705_v46 = vcombine.low %v515_v34, %v519_v35  ;;  %v4698_v48 = vcombine.high %v507_v42, %v511_v43  ;;  %v332_v32 = vld [vmem:[#allocation8 + $0x158] sm:$0xff] }
 0x17e   :  { %2082 = vmatprep.subr.bf16.mxu1 %v4626_v47  ;;  %v4570_v47 = vcombine.high %v379_v40, %v383_v41  ;;  %v336_v33 = vld [vmem:[#allocation8 + $0x178] sm:$0xff] }
 0x17f   :  { %v460_v35 = vld [vmem:[#allocation8 + $0x558] sm:$0xff] }
 0x180   :  { %2042 = vmatpush1.bf16.msra.mxu0 %v4497_v55  ;;  %v503_v55 = vld [vmem:[#allocation8 + $0x6b0] sm:$0xff] }
 0x181   :  { %2083 = vmatpush1.bf16.msra.mxu1 %v4625_v56  ;;  %2043 = vmatprep.subr.bf16.mxu0 %v4490_v57  ;;  %v4569_v56 = vcombine.low %v379_v40, %v383_v41  ;;  %v4697_v57 = vcombine.low %v507_v42, %v511_v43  ;;  %v4690_v59 = vcombine.high %v499_v54, %v503_v55  ;;  %v324_v41 = vld [vmem:[#allocation8 + $0x118] sm:$0xff] }
 0x182   :  { %2084 = vmatprep.subr.bf16.mxu1 %v4618_v58  ;;  %v4562_v58 = vcombine.high %v371_v49, %v375_v50  ;;  %v328_v42 = vld [vmem:[#allocation8 + $0x138] sm:$0xff] }
 0x183   :  { %v452_v43 = vld [vmem:[#allocation8 + $0x518] sm:$0xff] }
 0x184   :  { %2044 = vmatpush1.bf16.msra.mxu0 %v4489_v63  ;;  %v495_v63 = vld [vmem:[#allocation8 + $0x670] sm:$0xff] }
 0x185   :  { %2085 = vmatpush1.bf16.msra.mxu1 %v4617_v0  ;;  %2045 = vmatprep.subr.bf16.mxu0 %v4482_v1  ;;  %v4561_v0 = vcombine.low %v371_v49, %v375_v50  ;;  %v4689_v1 = vcombine.low %v499_v54, %v503_v55  ;;  %v4682_v3 = vcombine.high %v491_v62, %v495_v63  ;;  %v316_v49 = vld [vmem:[#allocation8 + $0xd8] sm:$0xff] }
 0x186   :  { %2086 = vmatprep.subr.bf16.mxu1 %v4610_v2  ;;  %v4554_v2 = vcombine.high %v363_v60, %v367_v61  ;;  %v320_v50 = vld [vmem:[#allocation8 + $0xf8] sm:$0xff] }
 0x187   :  { %v444_v54 = vld [vmem:[#allocation8 + $0x4d8] sm:$0xff] }
 0x188   :  { %2046 = vmatpush1.bf16.msra.mxu0 %v4481_v7  ;;  %v487_v7 = vld [vmem:[#allocation8 + $0x630] sm:$0xff]  ;;  %v448_v55 = vld [vmem:[#allocation8 + $0x4f8] sm:$0xff] }
 0x189   :  { %2087 = vmatpush1.bf16.msra.mxu1 %v4609_v8  ;;  %2047 = vmatprep.subr.bf16.mxu0 %v4602_v9  ;;  %v4553_v8 = vcombine.low %v363_v60, %v367_v61  ;;  %v4681_v9 = vcombine.low %v491_v62, %v495_v63  ;;  %v4674_v11 = vcombine.high %v483_v6, %v487_v7  ;;  %v312_v60 = vld [vmem:[#allocation8 + $0xb8] sm:$0xff] }
 0x18a   :  { %2088 = vmatprep.subr.bf16.mxu1 %v4730_v10  ;;  %v4546_v10 = vcombine.high %v355_v4, %v359_v5  ;;  %v436_v61 = vld [vmem:[#allocation8 + $0x498] sm:$0xff]  ;;  %v4507_v63 = vcombine.low %v316_v49, %v320_v50 }
 0x18b   :  { %v440_v62 = vld [vmem:[#allocation8 + $0x4b8] sm:$0xff] }
 0x18c   :  { %2048 = vmatpush2.bf16.msra.mxu0 %v4601_v15  ;;  %v480_v15 = vld [vmem:[#allocation8 + $0x5f8] sm:$0xff] }
 0x18d   :  { %2089 = vmatpush2.bf16.msra.mxu1 %v4729_v16  ;;  %2049 = vmatprep.subr.bf16.mxu0 %v4594_v17  ;;  %v4545_v16 = vcombine.low %v355_v4, %v359_v5  ;;  %v4673_v17 = vcombine.low %v483_v6, %v487_v7  ;;  %v4668_v19 = vcombine.high %v476_v14, %v480_v15  ;;  %v304_v4 = vld [vmem:[#allocation8 + $0x78] sm:$0xff] }
 0x18e   :  { %2090 = vmatprep.subr.bf16.mxu1 %v4722_v18  ;;  %v4540_v18 = vcombine.high %v348_v12, %v352_v13  ;;  %v428_v5 = vld [vmem:[#allocation8 + $0x458] sm:$0xff] }
 0x18f   :  { %v432_v6 = vld [vmem:[#allocation8 + $0x478] sm:$0xff] }
 0x190   :  { %2050 = vmatpush2.bf16.msra.mxu0 %v4593_v28  ;;  %v468_v28 = vld [vmem:[#allocation8 + $0x598] sm:$0xff] }
 0x191   :  { %2091 = vmatpush2.bf16.msra.mxu1 %v4721_v29  ;;  %2051 = vmatprep.subr.bf16.mxu0 %v4586_v30  ;;  %v472_v29 = vld [vmem:[#allocation8 + $0x5b8] sm:$0xff]  ;;  %v4667_v30 = vcombine.low %v476_v14, %v480_v15 }
 0x192   :  { %2092 = vmatprep.subr.bf16.mxu1 %v4714_v31  ;;  %v4532_v31 = vcombine.high %v340_v23, %v344_v26  ;;  %v4660_v34 = vcombine.high %v468_v28, %v472_v29  ;;  %v296_v12 = vld [vmem:[#allocation8 + $0x38] sm:$0xff] }
 0x193   :  { %v420_v13 = vld [vmem:[#allocation8 + $0x418] sm:$0xff] }
 0x194   :  { %2052 = vmatpush2.bf16.msra.mxu0 %v4585_v36  ;;  %v464_v36 = vld [vmem:[#allocation8 + $0x578] sm:$0xff] }
 0x195   :  { %2093 = vmatpush2.bf16.msra.mxu1 %v4713_v37  ;;  %2053 = vmatprep.subr.bf16.mxu0 %v4578_v38  ;;  %v4531_v37 = vcombine.low %v340_v23, %v344_v26  ;;  %v4659_v38 = vcombine.low %v468_v28, %v472_v29  ;;  %v4652_v40 = vcombine.high %v460_v35, %v464_v36  ;;  %v424_v14 = vld [vmem:[#allocation8 + $0x438] sm:$0xff] }
 0x196   :  { %2094 = vmatprep.subr.bf16.mxu1 %v4706_v39  ;;  %v4524_v39 = vcombine.high %v332_v32, %v336_v33  ;;  %v416_v23 = vld [vmem:[#allocation8 + $0x3f8] sm:$0xff]  ;;  %v4611_v29 = vcombine.low %v420_v13, %v424_v14 }
 0x197   :  { %v540_v26 = vld [vmem:[#allocation8 + $0x7d8] sm:$0xff] }
 0x198   :  { %2054 = vmatpush2.bf16.msra.mxu0 %v4577_v44  ;;  %v456_v44 = vld [vmem:[#allocation8 + $0x538] sm:$0xff] }
 0x199   :  { %2095 = vmatpush2.bf16.msra.mxu1 %v4705_v46  ;;  %2055 = vmatprep.subr.bf16.mxu0 %v4570_v47  ;;  %v4523_v46 = vcombine.low %v332_v32, %v336_v33  ;;  %v4651_v47 = vcombine.low %v460_v35, %v464_v36  ;;  %v404_v32 = vld [vmem:[#allocation8 + $0x398] sm:$0xff] }
 0x19a   :  { %2096 = vmatprep.subr.bf16.mxu1 %v4698_v48  ;;  %v4516_v48 = vcombine.high %v324_v41, %v328_v42  ;;  %v408_v33 = vld [vmem:[#allocation8 + $0x3b8] sm:$0xff] }
 0x19b   :  { %v536_v35 = vld [vmem:[#allocation8 + $0x7b8] sm:$0xff] }
 0x19c   :  { %2056 = vmatpush2.bf16.msra.mxu0 %v4569_v56  ;;  %v4643_v56 = vcombine.low %v452_v43, %v456_v44 }
 0x19d   :  { %2097 = vmatpush2.bf16.msra.mxu1 %v4697_v57  ;;  %2057 = vmatprep.subr.bf16.mxu0 %v4562_v58  ;;  %v4508_v57 = vcombine.high %v316_v49, %v320_v50  ;;  %v4636_v58 = vcombine.high %v444_v54, %v448_v55  ;;  %v392_v49 = vld [vmem:[#allocation8 + $0x338] sm:$0xff] }
 0x19e   :  { %2098 = vmatprep.subr.bf16.mxu1 %v4690_v59  ;;  %v308_v59 = vld [vmem:[#allocation8 + $0x98] sm:$0xff] }
 0x19f   :  { %v4499_v7 = vcombine.low %v308_v59, %v312_v60  ;;  %v516_v50 = vld [vmem:[#allocation8 + $0x718] sm:$0xff] }
 0x1a0   :  { %2058 = vmatpush2.bf16.msra.mxu0 %v4561_v0  ;;  %v4635_v0 = vcombine.low %v444_v54, %v448_v55  ;;  %v520_v54 = vld [vmem:[#allocation8 + $0x738] sm:$0xff] }
 0x1a1   :  { %2099 = vmatpush2.bf16.msra.mxu1 %v4689_v1  ;;  %2059 = vmatprep.subr.bf16.mxu0 %v4554_v2  ;;  %v4500_v1 = vcombine.high %v308_v59, %v312_v60  ;;  %v4628_v2 = vcombine.high %v436_v61, %v440_v62  ;;  %v384_v59 = vld [vmem:[#allocation8 + $0x2f8] sm:$0xff] }
 0x1a2   :  { %2100 = vmatprep.subr.bf16.mxu1 %v4682_v3  ;;  %v300_v3 = vld [vmem:[#allocation8 + $0x58] sm:$0xff] }
 0x1a3   :  { %v4491_v15 = vcombine.low %v300_v3, %v304_v4  ;;  %v508_v60 = vld [vmem:[#allocation8 + $0x6d8] sm:$0xff] }
 0x1a4   :  { %2060 = vmatpush2.bf16.msra.mxu0 %v4553_v8  ;;  %v4627_v8 = vcombine.low %v436_v61, %v440_v62  ;;  %v512_v61 = vld [vmem:[#allocation8 + $0x6f8] sm:$0xff] }
 0x1a5   :  { %2101 = vmatpush2.bf16.msra.mxu1 %v4681_v9  ;;  %2061 = vmatprep.subr.bf16.mxu0 %v4546_v10  ;;  %v4492_v9 = vcombine.high %v300_v3, %v304_v4  ;;  %v4620_v10 = vcombine.high %v428_v5, %v432_v6  ;;  %v376_v3 = vld [vmem:[#allocation8 + $0x2b8] sm:$0xff] }
 0x1a6   :  { %2102 = vmatprep.subr.bf16.mxu1 %v4674_v11  ;;  %v292_v11 = vld [vmem:[#allocation8 + $0x18] sm:$0xff] }
 0x1a7   :  { %v4483_v28 = vcombine.low %v292_v11, %v296_v12  ;;  %v500_v4 = vld [vmem:[#allocation8 + $0x698] sm:$0xff] }
 0x1a8   :  { %2062 = vmatpush2.bf16.msra.mxu0 %v4545_v16  ;;  %v4619_v16 = vcombine.low %v428_v5, %v432_v6  ;;  %v504_v5 = vld [vmem:[#allocation8 + $0x6b8] sm:$0xff] }
 0x1a9   :  { %2103 = vmatpush2.bf16.msra.mxu1 %v4673_v17  ;;  %2113 = vmatprep.subr.bf16.mxu0 %v4540_v18  ;;  %v4484_v17 = vcombine.high %v292_v11, %v296_v12  ;;  %v4612_v18 = vcombine.high %v420_v13, %v424_v14  ;;  %v368_v11 = vld [vmem:[#allocation8 + $0x278] sm:$0xff] }
 0x1aa   :  { %2154 = vmatprep.subr.bf16.mxu1 %v4668_v19  ;;  %v412_v19 = vld [vmem:[#allocation8 + $0x3d8] sm:$0xff] }
 0x1ab   :  { %2064 = vmatmul.mubr.bf16.vlgmr.msra.gmra.mxu0 %v5795_v53  ;;  %v4603_v36 = vcombine.low %v412_v19, %v416_v23  ;;  %v492_v12 = vld [vmem:[#allocation8 + $0x658] sm:$0xff] }
 0x1ac   :  { %2105 = vmatmul.mubr.bf16.vlgmr.msra.gmra.mxu1 %v5789_v45  ;;  %2114 = vmatpush1.bf16.msra.mxu0 %v4539_v27  ;;  %v544_v27 = vld [vmem:[#allocation8 + $0x7f8] sm:$0xff] }
 0x1ad   :  { %2145 = vmatprep.mubr.bf16.mxu0 %v5791_v51  ;;  %2155 = vmatpush1.bf16.msra.mxu1 %v4667_v30  ;;  %v4644_v51 = vcombine.high %v452_v43, %v456_v44  ;;  %v4604_v30 = vcombine.high %v412_v19, %v416_v23  ;;  %v528_v43 = vld [vmem:[#allocation8 + $0x778] sm:$0xff]  ;;  %v4595_v44 = vcombine.low %v404_v32, %v408_v33 }
 0x1ae   :  { %2186 = vmatprep.mubr.bf16.mxu1 %v5793_v52  ;;  %2115 = vmatprep.subr.bf16.mxu0 %v4532_v31  ;;  %v4515_v52 = vcombine.low %v324_v41, %v328_v42  ;;  %v4732_v31 = vcombine.high %v540_v26, %v544_v27  ;;  %v400_v41 = vld [vmem:[#allocation8 + $0x378] sm:$0xff] }
 0x1af   :  { %2156 = vmatprep.subr.bf16.mxu1 %v4660_v34  ;;  %v532_v34 = vld [vmem:[#allocation8 + $0x798] sm:$0xff] }
 0x1b0   :  { %2116 = vmatpush1.bf16.msra.mxu0 %v4531_v37  ;;  %v4731_v37 = vcombine.low %v540_v26, %v544_v27  ;;  %v524_v42 = vld [vmem:[#allocation8 + $0x758] sm:$0xff] }
 0x1b1   :  { %2157 = vmatpush1.bf16.msra.mxu1 %v4659_v38  ;;  %2117 = vmatprep.subr.bf16.mxu0 %v4524_v39  ;;  %v4596_v38 = vcombine.high %v404_v32, %v408_v33  ;;  %v4724_v39 = vcombine.high %v532_v34, %v536_v35  ;;  %v496_v13 = vld [vmem:[#allocation8 + $0x678] sm:$0xff] }
 0x1b2   :  { %2158 = vmatprep.subr.bf16.mxu1 %v4652_v40  ;;  %v396_v40 = vld [vmem:[#allocation8 + $0x358] sm:$0xff] }
 0x1b3   :  { %v4587_v55 = vcombine.low %v396_v40, %v400_v41  ;;  %v360_v19 = vld [vmem:[#allocation8 + $0x238] sm:$0xff] }
 0x1b4   :  { %2118 = vmatpush1.bf16.msra.mxu0 %v4523_v46  ;;  %v4723_v46 = vcombine.low %v532_v34, %v536_v35  ;;  %v484_v23 = vld [vmem:[#allocation8 + $0x618] sm:$0xff] }
 0x1b5   :  { %2159 = vmatpush1.bf16.msra.mxu1 %v4651_v47  ;;  %2119 = vmatprep.subr.bf16.mxu0 %v4516_v48  ;;  %v4588_v47 = vcombine.high %v396_v40, %v400_v41  ;;  %v4716_v48 = vcombine.high %v524_v42, %v528_v43  ;;  %v488_v26 = vld [vmem:[#allocation8 + $0x638] sm:$0xff] }
 0x1b6   :  { %2160 = vmatprep.subr.bf16.mxu1 %v4644_v51  ;;  %v388_v51 = vld [vmem:[#allocation8 + $0x318] sm:$0xff]  ;;  %v4675_v32 = vcombine.low %v484_v23, %v488_v26 }
 0x1b7   :  { %v4579_v62 = vcombine.low %v388_v51, %v392_v49  ;;  %v5095_v33 = vld [vmem:[#allocation11 + $0xe4] ss:$16 sps:$4 sm:$0xff]   ;;  %v5093_v35 = vld [vmem:[#allocation11 + $0xe0] ss:$16 sps:$4 sm:$0xff]  }
 0x1b8   :  { %2120 = vmatpush1.bf16.msra.mxu0 %v4515_v52  ;;  %v4715_v52 = vcombine.low %v524_v42, %v528_v43  ;;  %v5107_v34 = vld [vmem:[#allocation11 + $0x2e4] ss:$16 sps:$4 sm:$0xff]   ;;  %v5096_v43 = vld [vmem:[#allocation11 + $0xc0] ss:$16 sps:$4 sm:$0xff]  }
 0x1b9   :  { %2161 = vmatpush1.bf16.msra.mxu1 %v4643_v56  ;;  %2121 = vmatprep.subr.bf16.mxu0 %v4508_v57  ;;  %v4580_v56 = vcombine.high %v388_v51, %v392_v49  ;;  %v4708_v57 = vcombine.high %v516_v50, %v520_v54  ;;  %v5113_v40 = vld [vmem:[#allocation11 + $0x2c4] ss:$16 sps:$4 sm:$0xff]  }
 0x1ba   :  { %2162 = vmatprep.subr.bf16.mxu1 %v4636_v58  ;;  %v380_v58 = vld [vmem:[#allocation8 + $0x2d8] sm:$0xff] }
 0x1bb   :  { %v4571_v6 = vcombine.low %v380_v58, %v384_v59  ;;  %v5119_v49 = vld [vmem:[#allocation11 + $0x2a4] ss:$16 sps:$4 sm:$0xff]  }
 0x1bc   :  { %2122 = vmatpush1.bf16.msra.mxu0 %v4507_v63  ;;  %v4707_v63 = vcombine.low %v516_v50, %v520_v54 }
 0x1bd   :  { %2163 = vmatpush1.bf16.msra.mxu1 %v4635_v0  ;;  %2123 = vmatprep.subr.bf16.mxu0 %v4500_v1  ;;  %v4572_v0 = vcombine.high %v380_v58, %v384_v59  ;;  %v4700_v1 = vcombine.high %v508_v60, %v512_v61  ;;  %v5125_v59 = vld [vmem:[#allocation11 + $0x284] ss:$16 sps:$4 sm:$0xff]  }
 0x1be   :  { %2164 = vmatprep.subr.bf16.mxu1 %v4628_v2  ;;  %v372_v2 = vld [vmem:[#allocation8 + $0x298] sm:$0xff] }
 0x1bf   :  { %v4563_v14 = vcombine.low %v372_v2, %v376_v3 }
 0x1c0   :  { %2124 = vmatpush1.bf16.msra.mxu0 %v4499_v7  ;;  %v4699_v7 = vcombine.low %v508_v60, %v512_v61  ;;  %v5102_v61 = vld [vmem:[#allocation11 + $0x80] ss:$16 sps:$4 sm:$0xff]  }
 0x1c1   :  { %2165 = vmatpush1.bf16.msra.mxu1 %v4627_v8  ;;  %2125 = vmatprep.subr.bf16.mxu0 %v4492_v9  ;;  %v4564_v8 = vcombine.high %v372_v2, %v376_v3  ;;  %v4692_v9 = vcombine.high %v500_v4, %v504_v5  ;;  %v5116_v2 = vld [vmem:[#allocation11 + $0x44] ss:$16 sps:$4 sm:$0xff]   ;;  %v5129_v3 = vld [vmem:[#allocation11 + $0x260] ss:$16 sps:$4 sm:$0xff]  }
 0x1c2   :  { %2166 = vmatprep.subr.bf16.mxu1 %v4620_v10  ;;  %v364_v10 = vld [vmem:[#allocation8 + $0x258] sm:$0xff] }
 0x1c3   :  { %v4555_v27 = vcombine.low %v364_v10, %v368_v11 }
 0x1c4   :  { %2126 = vmatpush1.bf16.msra.mxu0 %v4491_v15  ;;  %v4691_v15 = vcombine.low %v500_v4, %v504_v5  ;;  %v5137_v4 = vld [vmem:[#allocation11 + $0x244] ss:$16 sps:$4 sm:$0xff]   ;;  %v5114_v5 = vld [vmem:[#allocation11 + $0x40] ss:$16 sps:$4 sm:$0xff]  }
 0x1c5   :  { %2167 = vmatpush1.bf16.msra.mxu1 %v4619_v16  ;;  %2127 = vmatprep.subr.bf16.mxu0 %v4484_v17  ;;  %v4556_v16 = vcombine.high %v364_v10, %v368_v11  ;;  %v4684_v17 = vcombine.high %v492_v12, %v496_v13  ;;  %v5128_v10 = vld [vmem:[#allocation11 + $0x4] ss:$16 sps:$4 sm:$0xff]   ;;  %v5141_v11 = vld [vmem:[#allocation11 + $0x220] ss:$16 sps:$4 sm:$0xff]  }
 0x1c6   :  { %2168 = vmatprep.subr.bf16.mxu1 %v4612_v18  ;;  %v356_v18 = vld [vmem:[#allocation8 + $0x218] sm:$0xff] }
 0x1c8   :  { %2128 = vmatpush1.bf16.msra.mxu0 %v4483_v28  ;;  %v4683_v28 = vcombine.low %v492_v12, %v496_v13  ;;  %v5149_v12 = vld [vmem:[#allocation11 + $0x204] ss:$16 sps:$4 sm:$0xff]   ;;  %v5126_v13 = vld [vmem:[#allocation11] ss:$16 sps:$4 sm:$0xff]  }
 0x1c9   :  { %2169 = vmatpush1.bf16.msra.mxu1 %v4611_v29  ;;  %2129 = vmatprep.subr.bf16.mxu0 %v4604_v30  ;;  %v4548_v29 = vcombine.high %v356_v18, %v360_v19  ;;  %v4676_v30 = vcombine.high %v484_v23, %v488_v26  ;;  %v5161_v23 = vld [vmem:[#allocation11 + $0x3c4] ss:$16 sps:$4 sm:$0xff]   ;;  %v5138_v26 = vld [vmem:[#allocation11 + $0x1c0] ss:$16 sps:$4 sm:$0xff]  }
 0x1ca   :  { %2170 = vmatprep.subr.bf16.mxu1 %v4732_v31  ;;  %v4547_v31 = vcombine.low %v356_v18, %v360_v19  ;;  %v5140_v18 = vld [vmem:[#allocation11 + $0x1c4] ss:$16 sps:$4 sm:$0xff]   ;;  %v5153_v19 = vld [vmem:[#allocation11 + $0x3e0] ss:$16 sps:$4 sm:$0xff]  }
 0x1cc   :  { %2130 = vmatpush2.bf16.msra.mxu0 %v4603_v36  ;;  %v5811_v36 = vld [vmem:[#allocation10] sm:$0xff] }
 0x1cd   :  { %2171 = vmatpush2.bf16.msra.mxu1 %v4731_v37  ;;  %2131 = vmatprep.subr.bf16.mxu0 %v4596_v38  ;;  %v5098_v37 = vld [vmem:[#allocation11 + $0xc4] ss:$16 sps:$4 sm:$0xff]   ;;  %v5105_v38 = vld [vmem:[#allocation11 + $0x2e0] ss:$16 sps:$4 sm:$0xff]  }
 0x1ce   :  { %2172 = vmatprep.subr.bf16.mxu1 %v4724_v39  ;;  %v554_v39 = vrot.slane %v5811_v36, %v5780_v24 }
 0x1d0   :  { %2132 = vmatpush2.bf16.msra.mxu0 %v4595_v44 }
 0x1d1   :  { %2173 = vmatpush2.bf16.msra.mxu1 %v4723_v46  ;;  %2133 = vmatprep.subr.bf16.mxu0 %v4588_v47  ;;  %v5101_v47 = vld [vmem:[#allocation11 + $0xa4] ss:$16 sps:$4 sm:$0xff]  }
 0x1d2   :  { %2174 = vmatprep.subr.bf16.mxu1 %v4716_v48  ;;  %v5111_v48 = vld [vmem:[#allocation11 + $0x2c0] ss:$16 sps:$4 sm:$0xff]  }
 0x1d4   :  { %2134 = vmatpush2.bf16.msra.mxu0 %v4587_v55  ;;  %v5099_v55 = vld [vmem:[#allocation11 + $0xa0] ss:$16 sps:$4 sm:$0xff]  }
 0x1d5   :  { %2175 = vmatpush2.bf16.msra.mxu1 %v4715_v52  ;;  %2135 = vmatprep.subr.bf16.mxu0 %v4580_v56 }
 0x1d6   :  { %2176 = vmatprep.subr.bf16.mxu1 %v4708_v57  ;;  %v5117_v57 = vld [vmem:[#allocation11 + $0x2a0] ss:$16 sps:$4 sm:$0xff]  }
 0x1d8   :  { %2136 = vmatpush2.bf16.msra.mxu0 %v4579_v62  ;;  %v5110_v62 = vld [vmem:[#allocation11 + $0x64] ss:$16 sps:$4 sm:$0xff]  }
 0x1d9   :  { %2177 = vmatpush2.bf16.msra.mxu1 %v4707_v63  ;;  %2137 = vmatprep.subr.bf16.mxu0 %v4572_v0  ;;  %v5123_v63 = vld [vmem:[#allocation11 + $0x280] ss:$16 sps:$4 sm:$0xff]   ;;  %v5131_v0 = vld [vmem:[#allocation11 + $0x264] ss:$16 sps:$4 sm:$0xff]  }
 0x1da   :  { %2178 = vmatprep.subr.bf16.mxu1 %v4700_v1  ;;  %v5108_v1 = vld [vmem:[#allocation11 + $0x60] ss:$16 sps:$4 sm:$0xff]  }
 0x1dc   :  { %2138 = vmatpush2.bf16.msra.mxu0 %v4571_v6  ;;  %v5122_v6 = vld [vmem:[#allocation11 + $0x24] ss:$16 sps:$4 sm:$0xff]  }
 0x1dd   :  { %2179 = vmatpush2.bf16.msra.mxu1 %v4699_v7  ;;  %2139 = vmatprep.subr.bf16.mxu0 %v4564_v8  ;;  %v5135_v7 = vld [vmem:[#allocation11 + $0x240] ss:$16 sps:$4 sm:$0xff]   ;;  %v5143_v8 = vld [vmem:[#allocation11 + $0x224] ss:$16 sps:$4 sm:$0xff]  }
 0x1de   :  { %2180 = vmatprep.subr.bf16.mxu1 %v4692_v9  ;;  %v5120_v9 = vld [vmem:[#allocation11 + $0x20] ss:$16 sps:$4 sm:$0xff]  }
 0x1e0   :  { %2140 = vmatpush2.bf16.msra.mxu0 %v4563_v14  ;;  %v5134_v14 = vld [vmem:[#allocation11 + $0x1e4] ss:$16 sps:$4 sm:$0xff]  }
 0x1e1   :  { %2181 = vmatpush2.bf16.msra.mxu1 %v4691_v15  ;;  %2141 = vmatprep.subr.bf16.mxu0 %v4556_v16  ;;  %v5147_v15 = vld [vmem:[#allocation11 + $0x200] ss:$16 sps:$4 sm:$0xff]   ;;  %v5155_v16 = vld [vmem:[#allocation11 + $0x3e4] ss:$16 sps:$4 sm:$0xff]  }
 0x1e2   :  { %2182 = vmatprep.subr.bf16.mxu1 %v4684_v17  ;;  %v5132_v17 = vld [vmem:[#allocation11 + $0x1e0] ss:$16 sps:$4 sm:$0xff]  }
 0x1e4   :  { %2142 = vmatpush2.bf16.msra.mxu0 %v4555_v27  ;;  %v5146_v27 = vld [vmem:[#allocation11 + $0x1a4] ss:$16 sps:$4 sm:$0xff]  }
 0x1e5   :  { %2183 = vmatpush2.bf16.msra.mxu1 %v4683_v28  ;;  %2143 = vmatprep.subr.bf16.mxu0 %v4548_v29  ;;  %v5159_v28 = vld [vmem:[#allocation11 + $0x3c0] ss:$16 sps:$4 sm:$0xff]   ;;  %v5167_v29 = vld [vmem:[#allocation11 + $0x3a4] ss:$16 sps:$4 sm:$0xff]  }
 0x1e6   :  { %2184 = vmatprep.subr.bf16.mxu1 %v4676_v30  ;;  %v5144_v30 = vld [vmem:[#allocation11 + $0x1a0] ss:$16 sps:$4 sm:$0xff]  }
 0x1e8   :  { %2144 = vmatpush2.bf16.msra.mxu0 %v4547_v31  ;;  %v5152_v31 = vld [vmem:[#allocation11 + $0x184] ss:$16 sps:$4 sm:$0xff]  }
 0x1e9   :  { %2185 = vmatpush2.bf16.msra.mxu1 %v4675_v32  ;;  %3769 = vmatprep.subr.bf16.mxu0 %v5095_v33  ;;  %v5165_v32 = vld [vmem:[#allocation11 + $0x3a0] ss:$16 sps:$4 sm:$0xff]   ;;  %v5173_v33 = vld [vmem:[#allocation11 + $0x384] ss:$16 sps:$4 sm:$0xff]  }
 0x1ea   :  { %3810 = vmatprep.subr.bf16.mxu1 %v5107_v34  ;;  %v5150_v34 = vld [vmem:[#allocation11 + $0x180] ss:$16 sps:$4 sm:$0xff]  }
 0x1eb   :  { %2146 = vmatmul.mubr.bf16.vlgmr.msra.gmra.mxu0 %v5795_v53  ;;  %v5816_v41 = vpop.f32.mrf.mxu0 }
 0x1ec   :  { %v5818_v42 = vpop.f32.mrf.mxu1  ;;  %2187 = vmatmul.mubr.bf16.vlgmr.msra.gmra.mxu1 %v5789_v45  ;;  %3770 = vmatpush1.bf16.msra.mxu0 %v5093_v35  ;;  %v5104_v45 = vld [vmem:[#allocation11 + $0x84] ss:$16 sps:$4 sm:$0xff]  }
 0x1ed   :  { %v1903_v44 = vpop.f32.mrf.mxu0  ;;  %3771 = vmatprep.subr.bf16.mxu0 %v5098_v37  ;;  %3811 = vmatpush1.bf16.msra.mxu1 %v5105_v38  ;;  %v5158_v35 = vld [vmem:[#allocation11 + $0x164] ss:$16 sps:$4 sm:$0xff]   ;;  %v5171_v37 = vld [vmem:[#allocation11 + $0x380] ss:$16 sps:$4 sm:$0xff]  }
 0x1ee   :  { %v1944_v46 = vpop.f32.mrf.mxu1  ;;  %v1904_v51 = vadd.f32 %v1903_v44, %v554_v39  ;;  %3812 = vmatprep.subr.bf16.mxu1 %v5113_v40  ;;  %v5179_v38 = vld [vmem:[#allocation11 + $0x364] ss:$16 sps:$4 sm:$0xff]   ;;  %v5156_v39 = vld [vmem:[#allocation11 + $0x160] ss:$16 sps:$4 sm:$0xff]   ;;  %v550_v40 = vrot.slane %v5811_v36, %v5774_v21 }
 0x1ef   :  { %v1905_v50 = vpop.f32.mrf.mxu0  ;;  %v5177_v44 = vld [vmem:[#allocation11 + $0x360] ss:$16 sps:$4 sm:$0xff]  }
 0x1f0   :  { %v1946_v54 = vpop.f32.mrf.mxu1  ;;  %v1945_v53 = vadd.f32 %v1944_v46, %v1904_v51  ;;  %3772 = vmatpush1.bf16.msra.mxu0 %v5096_v43  ;;  %v5164_v43 = vld [vmem:[#allocation11 + $0x144] ss:$16 sps:$4 sm:$0xff]  }
 0x1f1   :  { %v1906_v52 = vpop.f32.mrf.mxu0  ;;  %3773 = vmatprep.subr.bf16.mxu0 %v5101_v47  ;;  %3813 = vmatpush1.bf16.msra.mxu1 %v5111_v48  ;;  %v5182_v46 = vld [vmem:[#allocation11 + $0x344] ss:$16 sps:$4 sm:$0xff]   ;;  %v5162_v47 = vld [vmem:[#allocation11 + $0x140] ss:$16 sps:$4 sm:$0xff]   ;;  %v1902_v48 = vadd.f32 %v5816_v41, %v550_v40 }
 0x1f2   :  { %v1947_v56 = vpop.f32.mrf.mxu1  ;;  %v2196_v58 = vmax.f32 %v1945_v53, 0.0  ;;  %3814 = vmatprep.subr.bf16.mxu1 %v5119_v49  ;;  %v5170_v51 = vld [vmem:[#allocation11 + $0x124] ss:$16 sps:$4 sm:$0xff]   ;;  %v5180_v49 = vld [vmem:[#allocation11 + $0x340] ss:$16 sps:$4 sm:$0xff]  }
 0x1f3   :  { %v5185_v50 = vld [vmem:[#allocation11 + $0x324] ss:$16 sps:$4 sm:$0xff]   ;;  %v5168_v54 = vld [vmem:[#allocation11 + $0x120] ss:$16 sps:$4 sm:$0xff]   ;;  %v1943_v53 = vadd.f32 %v5818_v42, %v1902_v48 }
 0x1f4   :  { %v5821_v60 = vpack.c.bf16 %v2196_v58, %v2196_v58  ;;  %3774 = vmatpush1.bf16.msra.mxu0 %v5099_v55  ;;  %v5176_v55 = vld [vmem:[#allocation11 + $0x104] ss:$16 sps:$4 sm:$0xff]   ;;  %v5183_v52 = vld [vmem:[#allocation11 + $0x320] ss:$16 sps:$4 sm:$0xff]  }
 0x1f5   :  { %3775 = vmatprep.subr.bf16.mxu0 %v5104_v45  ;;  %3815 = vmatpush1.bf16.msra.mxu1 %v5117_v57  ;;  %v5188_v56 = vld [vmem:[#allocation11 + $0x304] ss:$16 sps:$4 sm:$0xff]   ;;  %v5174_v45 = vld [vmem:[#allocation11 + $0x100] ss:$16 sps:$4 sm:$0xff]   ;;  %v2195_v57 = vmax.f32 %v1943_v53, 0.0 }
 0x1f6   :  { %3801 = vmatprep.mubr.bf16.mxu0 %v5821_v60  ;;  %3816 = vmatprep.subr.bf16.mxu1 %v5125_v59  ;;  %v5186_v41 = vld [vmem:[#allocation11 + $0x300] ss:$16 sps:$4 sm:$0xff]   ;;  %v5191_v58 = vld [vmem:[#allocation11 + $0x4e4] ss:$16 sps:$4 sm:$0xff]  }
 0x1f7   :  { %v5239_v59 = vld [vmem:[#allocation11 + $0x6e4] ss:$16 sps:$4 sm:$0xff]   ;;  %v5189_v42 = vld [vmem:[#allocation11 + $0x4e0] ss:$16 sps:$4 sm:$0xff]  }
 0x1f8   :  { %3776 = vmatpush1.bf16.msra.mxu0 %v5102_v61  ;;  %v558_v61 = vrot.slane %v5811_v36, %v5777_v22  ;;  %v5255_v40 = vld [vmem:[#allocation11 + $0x680] ss:$16 sps:$4 sm:$0xff]   ;;  %v5215_v48 = vld [vmem:[#allocation11 + $0x5e4] ss:$16 sps:$4 sm:$0xff]  }
 0x1f9   :  { %3777 = vmatprep.subr.bf16.mxu0 %v5110_v62  ;;  %3817 = vmatpush1.bf16.msra.mxu1 %v5123_v63  ;;  %v5830_v62 = vpack.c.bf16 %v2195_v57, %v2195_v57  ;;  %v5194_v63 = vld [vmem:[#allocation11 + $0x4c4] ss:$16 sps:$4 sm:$0xff]   ;;  %v5219_v57 = vld [vmem:[#allocation11 + $0x5a0] ss:$16 sps:$4 sm:$0xff]  }
 0x1fa   :  { %3818 = vmatprep.subr.bf16.mxu1 %v5131_v0  ;;  %v562_v0 = vrot.slane %v5811_v36, %v5783_v25  ;;  %v5275_v53 = vld [vmem:[#allocation11 + $0x624] ss:$16 sps:$4 sm:$0xff]  }
 0x1fc   :  { %3778 = vmatpush1.bf16.msra.mxu0 %v5108_v1 }
 0x1fd   :  { %3779 = vmatprep.subr.bf16.mxu0 %v5116_v2  ;;  %3819 = vmatpush1.bf16.msra.mxu1 %v5129_v3 }
 0x1fe   :  { %3820 = vmatprep.subr.bf16.mxu1 %v5137_v4  ;;  %v5192_v4 = vld [vmem:[#allocation11 + $0x4c0] ss:$16 sps:$4 sm:$0xff]  }
 0x200   :  { %3780 = vmatpush1.bf16.msra.mxu0 %v5114_v5 }
 0x201   :  { %3781 = vmatprep.subr.bf16.mxu0 %v5122_v6  ;;  %3821 = vmatpush1.bf16.msra.mxu1 %v5135_v7  ;;  %v5197_v7 = vld [vmem:[#allocation11 + $0x4a4] ss:$16 sps:$4 sm:$0xff]  }
 0x202   :  { %3822 = vmatprep.subr.bf16.mxu1 %v5143_v8 }
 0x204   :  { %3782 = vmatpush1.bf16.msra.mxu0 %v5120_v9 }
 0x205   :  { %3783 = vmatprep.subr.bf16.mxu0 %v5128_v10  ;;  %3823 = vmatpush1.bf16.msra.mxu1 %v5141_v11 }
 0x206   :  { %3824 = vmatprep.subr.bf16.mxu1 %v5149_v12 }
 0x208   :  { %3784 = vmatpush1.bf16.msra.mxu0 %v5126_v13  ;;  %v5195_v13 = vld [vmem:[#allocation11 + $0x4a0] ss:$16 sps:$4 sm:$0xff]  }
 0x209   :  { %3785 = vmatprep.subr.bf16.mxu0 %v5134_v14  ;;  %3825 = vmatpush1.bf16.msra.mxu1 %v5147_v15 }
 0x20a   :  { %3826 = vmatprep.subr.bf16.mxu1 %v5155_v16 }
 0x20c   :  { %3786 = vmatpush2.bf16.msra.mxu0 %v5132_v17  ;;  %v5200_v17 = vld [vmem:[#allocation11 + $0x484] ss:$16 sps:$4 sm:$0xff]  }
 0x20d   :  { %3787 = vmatprep.subr.bf16.mxu0 %v5140_v18  ;;  %3827 = vmatpush2.bf16.msra.mxu1 %v5153_v19 }
 0x20e   :  { %3828 = vmatprep.subr.bf16.mxu1 %v5161_v23  ;;  %v5198_v23 = vld [vmem:[#allocation11 + $0x480] ss:$16 sps:$4 sm:$0xff]  }
 0x210   :  { %3788 = vmatpush2.bf16.msra.mxu0 %v5138_v26  ;;  %v5237_v26 = vld [vmem:[#allocation11 + $0x6e0] ss:$16 sps:$4 sm:$0xff]  }
 0x211   :  { %3789 = vmatprep.subr.bf16.mxu0 %v5146_v27  ;;  %3829 = vmatpush2.bf16.msra.mxu1 %v5159_v28  ;;  %v5203_v28 = vld [vmem:[#allocation11 + $0x464] ss:$16 sps:$4 sm:$0xff]  }
 0x212   :  { %3830 = vmatprep.subr.bf16.mxu1 %v5167_v29  ;;  %v5245_v29 = vld [vmem:[#allocation11 + $0x6c4] ss:$16 sps:$4 sm:$0xff]  }
 0x214   :  { %3790 = vmatpush2.bf16.msra.mxu0 %v5144_v30  ;;  %v5201_v30 = vld [vmem:[#allocation11 + $0x460] ss:$16 sps:$4 sm:$0xff]  }
 0x215   :  { %3791 = vmatprep.subr.bf16.mxu0 %v5152_v31  ;;  %3831 = vmatpush2.bf16.msra.mxu1 %v5165_v32  ;;  %v5243_v31 = vld [vmem:[#allocation11 + $0x6c0] ss:$16 sps:$4 sm:$0xff]   ;;  %v5206_v32 = vld [vmem:[#allocation11 + $0x444] ss:$16 sps:$4 sm:$0xff]  }
 0x216   :  { %3832 = vmatprep.subr.bf16.mxu1 %v5173_v33  ;;  %v5251_v33 = vld [vmem:[#allocation11 + $0x6a4] ss:$16 sps:$4 sm:$0xff]  }
 0x218   :  { %3792 = vmatpush2.bf16.msra.mxu0 %v5150_v34  ;;  %v5204_v34 = vld [vmem:[#allocation11 + $0x440] ss:$16 sps:$4 sm:$0xff]  }
 0x219   :  { %3793 = vmatprep.subr.bf16.mxu0 %v5158_v35  ;;  %3833 = vmatpush2.bf16.msra.mxu1 %v5171_v37  ;;  %v5249_v35 = vld [vmem:[#allocation11 + $0x6a0] ss:$16 sps:$4 sm:$0xff]   ;;  %v5209_v37 = vld [vmem:[#allocation11 + $0x424] ss:$16 sps:$4 sm:$0xff]  }
 0x21a   :  { %3834 = vmatprep.subr.bf16.mxu1 %v5179_v38  ;;  %v5257_v38 = vld [vmem:[#allocation11 + $0x684] ss:$16 sps:$4 sm:$0xff]  }
 0x21c   :  { %3794 = vmatpush2.bf16.msra.mxu0 %v5156_v39  ;;  %v5207_v39 = vld [vmem:[#allocation11 + $0x420] ss:$16 sps:$4 sm:$0xff]  }
 0x21d   :  { %3795 = vmatprep.subr.bf16.mxu0 %v5164_v43  ;;  %3835 = vmatpush2.bf16.msra.mxu1 %v5177_v44  ;;  %v5212_v43 = vld [vmem:[#allocation11 + $0x404] ss:$16 sps:$4 sm:$0xff]  }
 0x21e   :  { %3836 = vmatprep.subr.bf16.mxu1 %v5182_v46  ;;  %v5263_v44 = vld [vmem:[#allocation11 + $0x664] ss:$16 sps:$4 sm:$0xff]   ;;  %v5210_v46 = vld [vmem:[#allocation11 + $0x400] ss:$16 sps:$4 sm:$0xff]  }
 0x220   :  { %3796 = vmatpush2.bf16.msra.mxu0 %v5162_v47  ;;  %v5261_v47 = vld [vmem:[#allocation11 + $0x660] ss:$16 sps:$4 sm:$0xff]  }
 0x221   :  { %3797 = vmatprep.subr.bf16.mxu0 %v5170_v51  ;;  %3837 = vmatpush2.bf16.msra.mxu1 %v5180_v49  ;;  %v5269_v51 = vld [vmem:[#allocation11 + $0x644] ss:$16 sps:$4 sm:$0xff]   ;;  %v5213_v49 = vld [vmem:[#allocation11 + $0x5e0] ss:$16 sps:$4 sm:$0xff]  }
 0x222   :  { %3838 = vmatprep.subr.bf16.mxu1 %v5185_v50  ;;  %v5267_v50 = vld [vmem:[#allocation11 + $0x640] ss:$16 sps:$4 sm:$0xff]  }
 0x224   :  { %3798 = vmatpush2.bf16.msra.mxu0 %v5168_v54  ;;  %v5218_v54 = vld [vmem:[#allocation11 + $0x5c4] ss:$16 sps:$4 sm:$0xff]  }
 0x225   :  { %3799 = vmatprep.subr.bf16.mxu0 %v5176_v55  ;;  %3839 = vmatpush2.bf16.msra.mxu1 %v5183_v52  ;;  %v5216_v55 = vld [vmem:[#allocation11 + $0x5c0] ss:$16 sps:$4 sm:$0xff]  }
 0x226   :  { %3840 = vmatprep.subr.bf16.mxu1 %v5188_v56  ;;  %v5273_v52 = vld [vmem:[#allocation11 + $0x620] ss:$16 sps:$4 sm:$0xff]   ;;  %v5221_v56 = vld [vmem:[#allocation11 + $0x5a4] ss:$16 sps:$4 sm:$0xff]  }
 0x228   :  { %3800 = vmatpush2.bf16.msra.mxu0 %v5174_v45  ;;  %v5281_v45 = vld [vmem:[#allocation11 + $0x604] ss:$16 sps:$4 sm:$0xff]  }
 0x229   :  { %3841 = vmatpush2.bf16.msra.mxu1 %v5186_v41  ;;  %3851 = vmatprep.subr.bf16.mxu0 %v5191_v58  ;;  %v5279_v41 = vld [vmem:[#allocation11 + $0x600] ss:$16 sps:$4 sm:$0xff]   ;;  %v5224_v58 = vld [vmem:[#allocation11 + $0x584] ss:$16 sps:$4 sm:$0xff]  }
 0x22a   :  { %3892 = vmatprep.subr.bf16.mxu1 %v5239_v59  ;;  %v5287_v59 = vld [vmem:[#allocation11 + $0x7e4] ss:$16 sps:$4 sm:$0xff]  }
 0x22b   :  { %v1983_v1 = vpop.f32.mrf.mxu0  ;;  %3802 = vmatmul.mubr.bf16.vlgmr.msra.gmra.mxu0 %v5830_v62 }
 0x22c   :  { %v2024_v2 = vpop.f32.mrf.mxu1  ;;  %v1984_v3 = vadd.f32 %v1983_v1, %v558_v61  ;;  %3852 = vmatpush1.bf16.msra.mxu0 %v5189_v42  ;;  %v5222_v61 = vld [vmem:[#allocation11 + $0x580] ss:$16 sps:$4 sm:$0xff]  }
 0x22d   :  { %v1985_v5 = vpop.f32.mrf.mxu0  ;;  %3853 = vmatprep.subr.bf16.mxu0 %v5194_v63  ;;  %v5285_v42 = vld [vmem:[#allocation11 + $0x7e0] ss:$16 sps:$4 sm:$0xff]   ;;  %v5227_v63 = vld [vmem:[#allocation11 + $0x564] ss:$16 sps:$4 sm:$0xff]  }
 0x22e   :  { %v2026_v6 = vpop.f32.mrf.mxu1  ;;  %v2025_v8 = vadd.f32 %v2024_v2, %v1984_v3  ;;  %v1986_v9 = vadd.f32 %v1985_v5, %v562_v0  ;;  %v5293_v0 = vld [vmem:[#allocation11 + $0x7c4] ss:$16 sps:$4 sm:$0xff]   ;;  %v5225_v1 = vld [vmem:[#allocation11 + $0x560] ss:$16 sps:$4 sm:$0xff]  }
 0x22f   :  { %v1987_v10 = vpop.f32.mrf.mxu0  ;;  %v5291_v2 = vld [vmem:[#allocation11 + $0x7c0] ss:$16 sps:$4 sm:$0xff]   ;;  %v5230_v3 = vld [vmem:[#allocation11 + $0x544] ss:$16 sps:$4 sm:$0xff]  }
 0x230   :  { %v2028_v11 = vpop.f32.mrf.mxu1  ;;  %v2027_v12 = vadd.f32 %v2026_v6, %v1986_v9  ;;  %3854 = vmatpush1.bf16.msra.mxu0 %v5192_v4  ;;  %v2197_v14 = vmax.f32 %v2025_v8, 0.0  ;;  %v5299_v4 = vld [vmem:[#allocation11 + $0x7a4] ss:$16 sps:$4 sm:$0xff]   ;;  %v5228_v5 = vld [vmem:[#allocation11 + $0x540] ss:$16 sps:$4 sm:$0xff]  }
 0x231   :  { %v1988_v15 = vpop.f32.mrf.mxu0  ;;  %3855 = vmatprep.subr.bf16.mxu0 %v5197_v7  ;;  %v5297_v6 = vld [vmem:[#allocation11 + $0x7a0] ss:$16 sps:$4 sm:$0xff]   ;;  %v5233_v7 = vld [vmem:[#allocation11 + $0x524] ss:$16 sps:$4 sm:$0xff]  }
 0x232   :  { %v2029_v16 = vpop.f32.mrf.mxu1  ;;  %v2198_v18 = vmax.f32 %v2027_v12, 0.0  ;;  %v5837_v27 = vpack.c.bf16 %v2197_v14, %v2197_v14  ;;  %v5305_v8 = vld [vmem:[#allocation11 + $0x784] ss:$16 sps:$4 sm:$0xff]   ;;  %v5231_v9 = vld [vmem:[#allocation11 + $0x520] ss:$16 sps:$4 sm:$0xff]  }
 0x233   :  { %v5303_v10 = vld [vmem:[#allocation11 + $0x780] ss:$16 sps:$4 sm:$0xff]   ;;  %v5236_v11 = vld [vmem:[#allocation11 + $0x504] ss:$16 sps:$4 sm:$0xff]   ;;  %v5242_v16 = vld [vmem:[#allocation11 + $0xec] ss:$16 sps:$4 sm:$0xff]  }
 0x234   :  { %v5835_v19 = vpack.c.bf16 %v2198_v18, %v2198_v18  ;;  %3856 = vmatpush1.bf16.msra.mxu0 %v5195_v13  ;;  %v5311_v12 = vld [vmem:[#allocation11 + $0x764] ss:$16 sps:$4 sm:$0xff]   ;;  %v565_v13 = vsub.s32 4, %v5771_v20  ;;  %v5234_v14 = vld [vmem:[#allocation11 + $0x500] ss:$16 sps:$4 sm:$0xff]   ;;  %v569_v18 = vsub.s32 5, %v5771_v20 }
 0x235   :  { %3857 = vmatprep.subr.bf16.mxu0 %v5200_v17  ;;  %v5309_v15 = vld [vmem:[#allocation11 + $0x760] ss:$16 sps:$4 sm:$0xff]   ;;  %v5317_v17 = vld [vmem:[#allocation11 + $0x744] ss:$16 sps:$4 sm:$0xff]  }
 0x236   :  { %3842 = vmatprep.mubr.bf16.mxu1 %v5835_v19 }
 0x237   :  { %3843 = vmatmul.mubr.bf16.vlgmr.msra.gmra.mxu1 %v5837_v27 }
 0x238   :  { %3858 = vmatpush1.bf16.msra.mxu0 %v5198_v23  ;;  %3893 = vmatpush1.bf16.msra.mxu1 %v5237_v26  ;;  %v566_v23 = vrot.slane %v5811_v36, %v565_v13  ;;  %v5315_v26 = vld [vmem:[#allocation11 + $0x740] ss:$16 sps:$4 sm:$0xff]   ;;  %v573_v13 = vsub.s32 6, %v5771_v20 }
 0x239   :  { %3859 = vmatprep.subr.bf16.mxu0 %v5203_v28  ;;  %3894 = vmatprep.subr.bf16.mxu1 %v5245_v29  ;;  %v5323_v28 = vld [vmem:[#allocation11 + $0x724] ss:$16 sps:$4 sm:$0xff]   ;;  %v570_v29 = vrot.slane %v5811_v36, %v569_v18  ;;  %v5326_v18 = vld [vmem:[#allocation11 + $0x12c] ss:$16 sps:$4 sm:$0xff]  }
 0x23c   :  { %3860 = vmatpush1.bf16.msra.mxu0 %v5201_v30  ;;  %3895 = vmatpush1.bf16.msra.mxu1 %v5243_v31 }
 0x23d   :  { %3861 = vmatprep.subr.bf16.mxu0 %v5206_v32  ;;  %3896 = vmatprep.subr.bf16.mxu1 %v5251_v33  ;;  %v5321_v33 = vld [vmem:[#allocation11 + $0x720] ss:$16 sps:$4 sm:$0xff]  }
 0x240   :  { %3862 = vmatpush1.bf16.msra.mxu0 %v5204_v34  ;;  %3897 = vmatpush1.bf16.msra.mxu1 %v5249_v35  ;;  %v5329_v35 = vld [vmem:[#allocation11 + $0x704] ss:$16 sps:$4 sm:$0xff]  }
 0x241   :  { %3863 = vmatprep.subr.bf16.mxu0 %v5209_v37  ;;  %3898 = vmatprep.subr.bf16.mxu1 %v5257_v38 }
 0x244   :  { %3864 = vmatpush1.bf16.msra.mxu0 %v5207_v39  ;;  %3899 = vmatpush1.bf16.msra.mxu1 %v5255_v40 }
 0x245   :  { %3865 = vmatprep.subr.bf16.mxu0 %v5212_v43  ;;  %3900 = vmatprep.subr.bf16.mxu1 %v5263_v44 }
 0x248   :  { %3866 = vmatpush1.bf16.msra.mxu0 %v5210_v46  ;;  %3901 = vmatpush1.bf16.msra.mxu1 %v5261_v47  ;;  %v5327_v46 = vld [vmem:[#allocation11 + $0x700] ss:$16 sps:$4 sm:$0xff]  }
 0x249   :  { %3867 = vmatprep.subr.bf16.mxu0 %v5215_v48  ;;  %3902 = vmatprep.subr.bf16.mxu1 %v5269_v51  ;;  %v5335_v51 = vld [vmem:[#allocation11 + $0x2ec] ss:$16 sps:$4 sm:$0xff]  }
 0x24c   :  { %3868 = vmatpush2.bf16.msra.mxu0 %v5213_v49  ;;  %3903 = vmatpush1.bf16.msra.mxu1 %v5267_v50 }
 0x24d   :  { %3869 = vmatprep.subr.bf16.mxu0 %v5218_v54  ;;  %3904 = vmatprep.subr.bf16.mxu1 %v5275_v53  ;;  %v5240_v53 = vld [vmem:[#allocation11 + $0xe8] ss:$16 sps:$4 sm:$0xff]  }
 0x250   :  { %3870 = vmatpush2.bf16.msra.mxu0 %v5216_v55  ;;  %3905 = vmatpush1.bf16.msra.mxu1 %v5273_v52  ;;  %v5248_v52 = vld [vmem:[#allocation11 + $0xcc] ss:$16 sps:$4 sm:$0xff]  }
 0x251   :  { %3871 = vmatprep.subr.bf16.mxu0 %v5221_v56  ;;  %3906 = vmatprep.subr.bf16.mxu1 %v5281_v45  ;;  %v5246_v56 = vld [vmem:[#allocation11 + $0xc8] ss:$16 sps:$4 sm:$0xff]   ;;  %v5254_v45 = vld [vmem:[#allocation11 + $0xac] ss:$16 sps:$4 sm:$0xff]  }
 0x254   :  { %3872 = vmatpush2.bf16.msra.mxu0 %v5219_v57  ;;  %3907 = vmatpush1.bf16.msra.mxu1 %v5279_v41  ;;  %v5252_v57 = vld [vmem:[#allocation11 + $0xa8] ss:$16 sps:$4 sm:$0xff]   ;;  %v5260_v41 = vld [vmem:[#allocation11 + $0x8c] ss:$16 sps:$4 sm:$0xff]  }
 0x255   :  { %3873 = vmatprep.subr.bf16.mxu0 %v5224_v58  ;;  %3908 = vmatprep.subr.bf16.mxu1 %v5287_v59  ;;  %v5258_v58 = vld [vmem:[#allocation11 + $0x88] ss:$16 sps:$4 sm:$0xff]   ;;  %v5266_v59 = vld [vmem:[#allocation11 + $0x6c] ss:$16 sps:$4 sm:$0xff]  }
 0x258   :  { %3874 = vmatpush2.bf16.msra.mxu0 %v5222_v61  ;;  %3909 = vmatpush2.bf16.msra.mxu1 %v5285_v42  ;;  %v5264_v61 = vld [vmem:[#allocation11 + $0x68] ss:$16 sps:$4 sm:$0xff]   ;;  %v5272_v42 = vld [vmem:[#allocation11 + $0x4c] ss:$16 sps:$4 sm:$0xff]  }
 0x259   :  { %3875 = vmatprep.subr.bf16.mxu0 %v5227_v63  ;;  %3910 = vmatprep.subr.bf16.mxu1 %v5293_v0  ;;  %v5270_v63 = vld [vmem:[#allocation11 + $0x48] ss:$16 sps:$4 sm:$0xff]   ;;  %v5278_v0 = vld [vmem:[#allocation11 + $0x2c] ss:$16 sps:$4 sm:$0xff]  }
 0x25c   :  { %3876 = vmatpush2.bf16.msra.mxu0 %v5225_v1  ;;  %3911 = vmatpush2.bf16.msra.mxu1 %v5291_v2  ;;  %v5284_v1 = vld [vmem:[#allocation11 + $0xc] ss:$16 sps:$4 sm:$0xff]   ;;  %v5282_v2 = vld [vmem:[#allocation11 + $0x8] ss:$16 sps:$4 sm:$0xff]  }
 0x25d   :  { %3877 = vmatprep.subr.bf16.mxu0 %v5230_v3  ;;  %3912 = vmatprep.subr.bf16.mxu1 %v5299_v4  ;;  %v5290_v3 = vld [vmem:[#allocation11 + $0x1ec] ss:$16 sps:$4 sm:$0xff]   ;;  %v5288_v4 = vld [vmem:[#allocation11 + $0x1e8] ss:$16 sps:$4 sm:$0xff]  }
 0x260   :  { %3878 = vmatpush2.bf16.msra.mxu0 %v5228_v5  ;;  %3913 = vmatpush2.bf16.msra.mxu1 %v5297_v6  ;;  %v5296_v5 = vld [vmem:[#allocation11 + $0x1cc] ss:$16 sps:$4 sm:$0xff]   ;;  %v5294_v6 = vld [vmem:[#allocation11 + $0x1c8] ss:$16 sps:$4 sm:$0xff]  }
 0x261   :  { %3879 = vmatprep.subr.bf16.mxu0 %v5233_v7  ;;  %3914 = vmatprep.subr.bf16.mxu1 %v5305_v8  ;;  %v5302_v7 = vld [vmem:[#allocation11 + $0x1ac] ss:$16 sps:$4 sm:$0xff]   ;;  %v5300_v8 = vld [vmem:[#allocation11 + $0x1a8] ss:$16 sps:$4 sm:$0xff]  }
 0x264   :  { %3880 = vmatpush2.bf16.msra.mxu0 %v5231_v9  ;;  %3915 = vmatpush2.bf16.msra.mxu1 %v5303_v10  ;;  %v5308_v9 = vld [vmem:[#allocation11 + $0x18c] ss:$16 sps:$4 sm:$0xff]   ;;  %v5306_v10 = vld [vmem:[#allocation11 + $0x188] ss:$16 sps:$4 sm:$0xff]  }
 0x265   :  { %3881 = vmatprep.subr.bf16.mxu0 %v5236_v11  ;;  %3916 = vmatprep.subr.bf16.mxu1 %v5311_v12  ;;  %v5314_v11 = vld [vmem:[#allocation11 + $0x16c] ss:$16 sps:$4 sm:$0xff]   ;;  %v5312_v12 = vld [vmem:[#allocation11 + $0x168] ss:$16 sps:$4 sm:$0xff]  }
 0x268   :  { %3882 = vmatpush2.bf16.msra.mxu0 %v5234_v14  ;;  %3917 = vmatpush2.bf16.msra.mxu1 %v5309_v15  ;;  %v5320_v14 = vld [vmem:[#allocation11 + $0x14c] ss:$16 sps:$4 sm:$0xff]   ;;  %v577_v15 = vsub.s32 7, %v5771_v20 }
 0x269   :  { %3933 = vmatprep.subr.bf16.mxu0 %v5242_v16  ;;  %3918 = vmatprep.subr.bf16.mxu1 %v5317_v17  ;;  %v5318_v16 = vld [vmem:[#allocation11 + $0x148] ss:$16 sps:$4 sm:$0xff]   ;;  %v574_v17 = vrot.slane %v5811_v36, %v573_v13  ;;  %v5386_v13 = vld [vmem:[#allocation11 + $0x5ec] ss:$16 sps:$4 sm:$0xff]  }
 0x26b   :  { %v2065_v30 = vpop.f32.mrf.mxu0 }
 0x26c   :  { %v2066_v31 = vadd.f32 %v2065_v30, %v566_v23  ;;  %v2106_v32 = vpop.f32.mrf.mxu1  ;;  %3919 = vmatpush2.bf16.msra.mxu1 %v5315_v26  ;;  %v578_v23 = vrot.slane %v5811_v36, %v577_v15  ;;  %v5324_v30 = vld [vmem:[#allocation11 + $0x128] ss:$16 sps:$4 sm:$0xff]   ;;  %v5338_v36 = vld [vmem:[#allocation11 + $0x4ec] ss:$16 sps:$4 sm:$0xff]  }
 0x26d   :  { %v2067_v34 = vpop.f32.mrf.mxu0  ;;  %3920 = vmatprep.subr.bf16.mxu1 %v5323_v28  ;;  %v5384_v15 = vld [vmem:[#allocation11 + $0x5e8] ss:$16 sps:$4 sm:$0xff]  }
 0x26e   :  { %v2107_v37 = vadd.f32 %v2106_v32, %v2066_v31  ;;  %v2068_v38 = vadd.f32 %v2067_v34, %v570_v29  ;;  %v2108_v39 = vpop.f32.mrf.mxu1  ;;  %v5332_v32 = vld [vmem:[#allocation11 + $0x10c] ss:$16 sps:$4 sm:$0xff]  }
 0x26f   :  { %v2069_v40 = vpop.f32.mrf.mxu0 }
 0x270   :  { %v2109_v43 = vadd.f32 %v2108_v39, %v2068_v38  ;;  %v2110_v44 = vpop.f32.mrf.mxu1  ;;  %3921 = vmatpush2.bf16.msra.mxu1 %v5321_v33  ;;  %v2199_v47 = vmax.f32 %v2107_v37, 0.0  ;;  %v5330_v39 = vld [vmem:[#allocation11 + $0x108] ss:$16 sps:$4 sm:$0xff]  }
 0x271   :  { %v2070_v48 = vpop.f32.mrf.mxu0  ;;  %3922 = vmatprep.subr.bf16.mxu1 %v5329_v35 }
 0x272   :  { %v2200_v49 = vmax.f32 %v2109_v43, 0.0  ;;  %v2111_v50 = vpop.f32.mrf.mxu1  ;;  %v5847_v55 = vpack.c.bf16 %v2199_v47, %v2199_v47  ;;  %v5333_v48 = vld [vmem:[#allocation11 + $0x2e8] ss:$16 sps:$4 sm:$0xff]  }
 0x273   :  { %v5341_v50 = vld [vmem:[#allocation11 + $0x2cc] ss:$16 sps:$4 sm:$0xff]  }
 0x274   :  { %v5845_v54 = vpack.c.bf16 %v2200_v49, %v2200_v49  ;;  %3923 = vmatpush2.bf16.msra.mxu1 %v5327_v46 }
 0x275   :  { %3974 = vmatprep.subr.bf16.mxu1 %v5335_v51  ;;  %v5336_v51 = vld [vmem:[#allocation11 + $0x4e8] ss:$16 sps:$4 sm:$0xff]  }
 0x276   :  { %3883 = vmatprep.mubr.bf16.mxu0 %v5845_v54 }
 0x277   :  { %3884 = vmatmul.mubr.bf16.vlgmr.msra.gmra.mxu0 %v5847_v55 }
 0x278   :  { %3934 = vmatpush1.bf16.msra.mxu0 %v5240_v53  ;;  %3965 = vmatprep.mubr.bf16.mxu0 %v5821_v60  ;;  %v5276_v60 = vld [vmem:[#allocation11 + $0x28] ss:$16 sps:$4 sm:$0xff]   ;;  %v5344_v53 = vld [vmem:[#allocation11 + $0x4cc] ss:$16 sps:$4 sm:$0xff]  }
 0x279   :  { %3935 = vmatprep.subr.bf16.mxu0 %v5248_v52  ;;  %v5339_v52 = vld [vmem:[#allocation11 + $0x2c8] ss:$16 sps:$4 sm:$0xff]  }
 0x27c   :  { %3936 = vmatpush1.bf16.msra.mxu0 %v5246_v56  ;;  %v5342_v56 = vld [vmem:[#allocation11 + $0x4c8] ss:$16 sps:$4 sm:$0xff]  }
 0x27d   :  { %3937 = vmatprep.subr.bf16.mxu0 %v5254_v45  ;;  %v5347_v45 = vld [vmem:[#allocation11 + $0x2ac] ss:$16 sps:$4 sm:$0xff]  }
 0x280   :  { %3938 = vmatpush1.bf16.msra.mxu0 %v5252_v57  ;;  %v5350_v57 = vld [vmem:[#allocation11 + $0x4ac] ss:$16 sps:$4 sm:$0xff]  }
 0x281   :  { %3939 = vmatprep.subr.bf16.mxu0 %v5260_v41  ;;  %v5345_v41 = vld [vmem:[#allocation11 + $0x2a8] ss:$16 sps:$4 sm:$0xff]  }
 0x284   :  { %3940 = vmatpush1.bf16.msra.mxu0 %v5258_v58  ;;  %v5348_v58 = vld [vmem:[#allocation11 + $0x4a8] ss:$16 sps:$4 sm:$0xff]  }
 0x285   :  { %3941 = vmatprep.subr.bf16.mxu0 %v5266_v59  ;;  %v5356_v59 = vld [vmem:[#allocation11 + $0x48c] ss:$16 sps:$4 sm:$0xff]  }
 0x288   :  { %3942 = vmatpush1.bf16.msra.mxu0 %v5264_v61  ;;  %v5351_v61 = vld [vmem:[#allocation11 + $0x288] ss:$16 sps:$4 sm:$0xff]  }
 0x289   :  { %3943 = vmatprep.subr.bf16.mxu0 %v5272_v42  ;;  %v5354_v42 = vld [vmem:[#allocation11 + $0x488] ss:$16 sps:$4 sm:$0xff]  }
 0x28c   :  { %3944 = vmatpush1.bf16.msra.mxu0 %v5270_v63  ;;  %v5357_v63 = vld [vmem:[#allocation11 + $0x268] ss:$16 sps:$4 sm:$0xff]  }
 0x28d   :  { %3945 = vmatprep.subr.bf16.mxu0 %v5278_v0  ;;  %v5360_v0 = vld [vmem:[#allocation11 + $0x468] ss:$16 sps:$4 sm:$0xff]  }
 0x290   :  { %3946 = vmatpush1.bf16.msra.mxu0 %v5276_v60  ;;  %v5365_v60 = vld [vmem:[#allocation11 + $0x24c] ss:$16 sps:$4 sm:$0xff]  }
 0x291   :  { %3947 = vmatprep.subr.bf16.mxu0 %v5284_v1  ;;  %v5368_v1 = vld [vmem:[#allocation11 + $0x44c] ss:$16 sps:$4 sm:$0xff]  }
 0x294   :  { %3948 = vmatpush1.bf16.msra.mxu0 %v5282_v2  ;;  %v5363_v2 = vld [vmem:[#allocation11 + $0x248] ss:$16 sps:$4 sm:$0xff]  }
 0x295   :  { %3949 = vmatprep.subr.bf16.mxu0 %v5290_v3  ;;  %v5366_v3 = vld [vmem:[#allocation11 + $0x448] ss:$16 sps:$4 sm:$0xff]  }
 0x298   :  { %3950 = vmatpush2.bf16.msra.mxu0 %v5288_v4  ;;  %v5371_v4 = vld [vmem:[#allocation11 + $0x22c] ss:$16 sps:$4 sm:$0xff]  }
 0x299   :  { %3951 = vmatprep.subr.bf16.mxu0 %v5296_v5  ;;  %v5374_v5 = vld [vmem:[#allocation11 + $0x42c] ss:$16 sps:$4 sm:$0xff]  }
 0x29c   :  { %3952 = vmatpush2.bf16.msra.mxu0 %v5294_v6  ;;  %v5369_v6 = vld [vmem:[#allocation11 + $0x228] ss:$16 sps:$4 sm:$0xff]  }
 0x29d   :  { %3953 = vmatprep.subr.bf16.mxu0 %v5302_v7  ;;  %v5372_v7 = vld [vmem:[#allocation11 + $0x428] ss:$16 sps:$4 sm:$0xff]  }
 0x2a0   :  { %3954 = vmatpush2.bf16.msra.mxu0 %v5300_v8  ;;  %v5377_v8 = vld [vmem:[#allocation11 + $0x20c] ss:$16 sps:$4 sm:$0xff]  }
 0x2a1   :  { %3955 = vmatprep.subr.bf16.mxu0 %v5308_v9  ;;  %v5380_v9 = vld [vmem:[#allocation11 + $0x40c] ss:$16 sps:$4 sm:$0xff]  }
 0x2a4   :  { %3956 = vmatpush2.bf16.msra.mxu0 %v5306_v10  ;;  %v5375_v10 = vld [vmem:[#allocation11 + $0x208] ss:$16 sps:$4 sm:$0xff]  }
 0x2a5   :  { %3957 = vmatprep.subr.bf16.mxu0 %v5314_v11  ;;  %v5378_v11 = vld [vmem:[#allocation11 + $0x408] ss:$16 sps:$4 sm:$0xff]  }
 0x2a8   :  { %3958 = vmatpush2.bf16.msra.mxu0 %v5312_v12  ;;  %v5383_v12 = vld [vmem:[#allocation11 + $0x3ec] ss:$16 sps:$4 sm:$0xff]  }
 0x2a9   :  { %3959 = vmatprep.subr.bf16.mxu0 %v5320_v14  ;;  %v5381_v14 = vld [vmem:[#allocation11 + $0x3e8] ss:$16 sps:$4 sm:$0xff]  }
 0x2ab   :  { %v2147_v26 = vpop.f32.mrf.mxu0 }
 0x2ac   :  { %v2148_v28 = vadd.f32 %v2147_v26, %v574_v17  ;;  %v2188_v29 = vpop.f32.mrf.mxu1  ;;  %3960 = vmatpush2.bf16.msra.mxu0 %v5318_v16  ;;  %v5389_v16 = vld [vmem:[#allocation11 + $0x3cc] ss:$16 sps:$4 sm:$0xff]  }
 0x2ad   :  { %v2149_v31 = vpop.f32.mrf.mxu0  ;;  %3961 = vmatprep.subr.bf16.mxu0 %v5326_v18  ;;  %v5392_v17 = vld [vmem:[#allocation11 + $0x5cc] ss:$16 sps:$4 sm:$0xff]   ;;  %v5387_v18 = vld [vmem:[#allocation11 + $0x3c8] ss:$16 sps:$4 sm:$0xff]  }
 0x2ae   :  { %v2189_v33 = vadd.f32 %v2188_v29, %v2148_v28  ;;  %v2150_v34 = vadd.f32 %v2149_v31, %v578_v23  ;;  %v2190_v35 = vpop.f32.mrf.mxu1  ;;  %v5390_v23 = vld [vmem:[#allocation11 + $0x5c8] ss:$16 sps:$4 sm:$0xff]   ;;  %v5395_v26 = vld [vmem:[#allocation11 + $0x3ac] ss:$16 sps:$4 sm:$0xff]  }
 0x2af   :  { %v2151_v20 = vpop.f32.mrf.mxu0  ;;  %v5398_v28 = vld [vmem:[#allocation11 + $0x5ac] ss:$16 sps:$4 sm:$0xff]   ;;  %v5393_v29 = vld [vmem:[#allocation11 + $0x3a8] ss:$16 sps:$4 sm:$0xff]  }
 0x2b0   :  { %v2191_v37 = vadd.f32 %v2190_v35, %v2150_v34  ;;  %v2192_v38 = vpop.f32.mrf.mxu1  ;;  %3962 = vmatpush2.bf16.msra.mxu0 %v5324_v30  ;;  %v2201_v40 = vmax.f32 %v2189_v33, 0.0  ;;  %v5396_v30 = vld [vmem:[#allocation11 + $0x5a8] ss:$16 sps:$4 sm:$0xff]   ;;  %v5401_v31 = vld [vmem:[#allocation11 + $0x38c] ss:$16 sps:$4 sm:$0xff]  }
 0x2b1   :  { %v2152_v43 = vpop.f32.mrf.mxu0  ;;  %3963 = vmatprep.subr.bf16.mxu0 %v5332_v32  ;;  %v5404_v32 = vld [vmem:[#allocation11 + $0x58c] ss:$16 sps:$4 sm:$0xff]   ;;  %v5399_v33 = vld [vmem:[#allocation11 + $0x388] ss:$16 sps:$4 sm:$0xff]  }
 0x2b2   :  { %v2202_v44 = vmax.f32 %v2191_v37, 0.0  ;;  %v2193_v46 = vpop.f32.mrf.mxu1  ;;  %v5858_v49 = vpack.c.bf16 %v2201_v40, %v2201_v40  ;;  %v5402_v34 = vld [vmem:[#allocation11 + $0x588] ss:$16 sps:$4 sm:$0xff]   ;;  %v5407_v35 = vld [vmem:[#allocation11 + $0x36c] ss:$16 sps:$4 sm:$0xff]  }
 0x2b3   :  { %v5410_v20 = vld [vmem:[#allocation11 + $0x56c] ss:$16 sps:$4 sm:$0xff]   ;;  %v5405_v37 = vld [vmem:[#allocation11 + $0x368] ss:$16 sps:$4 sm:$0xff]  }
 0x2b4   :  { %v5856_v47 = vpack.c.bf16 %v2202_v44, %v2202_v44  ;;  %3964 = vmatpush2.bf16.msra.mxu0 %v5330_v39  ;;  %v5408_v38 = vld [vmem:[#allocation11 + $0x568] ss:$16 sps:$4 sm:$0xff]   ;;  %v5413_v39 = vld [vmem:[#allocation11 + $0x34c] ss:$16 sps:$4 sm:$0xff]  }
 0x2b5   :  { %4015 = vmatprep.subr.bf16.mxu0 %v5338_v36  ;;  %v5416_v40 = vld [vmem:[#allocation11 + $0x54c] ss:$16 sps:$4 sm:$0xff]   ;;  %v5411_v43 = vld [vmem:[#allocation11 + $0x348] ss:$16 sps:$4 sm:$0xff]  }
 0x2b6   :  { %3924 = vmatprep.mubr.bf16.mxu1 %v5856_v47  ;;  %v5414_v36 = vld [vmem:[#allocation11 + $0x548] ss:$16 sps:$4 sm:$0xff]   ;;  %v5419_v44 = vld [vmem:[#allocation11 + $0x32c] ss:$16 sps:$4 sm:$0xff]  }
 0x2b7   :  { %3966 = vmatmul.mubr.bf16.vlgmr.msra.gmra.mxu0 %v5830_v62  ;;  %3925 = vmatmul.mubr.bf16.vlgmr.msra.gmra.mxu1 %v5858_v49  ;;  %v5353_v62 = vld [vmem:[#allocation11 + $0x28c] ss:$16 sps:$4 sm:$0xff]  }
 0x2b8   :  { %3975 = vmatpush1.bf16.msra.mxu1 %v5333_v48  ;;  %4016 = vmatpush1.bf16.msra.mxu0 %v5336_v51  ;;  %v5422_v46 = vld [vmem:[#allocation11 + $0x52c] ss:$16 sps:$4 sm:$0xff]   ;;  %v5417_v51 = vld [vmem:[#allocation11 + $0x328] ss:$16 sps:$4 sm:$0xff]  }
 0x2b9   :  { %4047 = vmatprep.mubr.bf16.mxu0 %v5845_v54  ;;  %4006 = vmatprep.mubr.bf16.mxu1 %v5835_v19  ;;  %v5359_v54 = vld [vmem:[#allocation11 + $0x26c] ss:$16 sps:$4 sm:$0xff]  }
 0x2ba   :  { %3976 = vmatprep.subr.bf16.mxu1 %v5341_v50  ;;  %4017 = vmatprep.subr.bf16.mxu0 %v5344_v53  ;;  %v5362_v19 = vld [vmem:[#allocation11 + $0x46c] ss:$16 sps:$4 sm:$0xff]   ;;  %v5420_v50 = vld [vmem:[#allocation11 + $0x528] ss:$16 sps:$4 sm:$0xff]  }
 0x2bc   :  { %3977 = vmatpush1.bf16.msra.mxu1 %v5339_v52  ;;  %4018 = vmatpush1.bf16.msra.mxu0 %v5342_v56  ;;  %v5425_v52 = vld [vmem:[#allocation11 + $0x30c] ss:$16 sps:$4 sm:$0xff]  }
 0x2bd   :  { %3978 = vmatprep.subr.bf16.mxu1 %v5347_v45  ;;  %4019 = vmatprep.subr.bf16.mxu0 %v5350_v57  ;;  %v5428_v56 = vld [vmem:[#allocation11 + $0x50c] ss:$16 sps:$4 sm:$0xff]  }
 0x2be   :  { %v5868_v45 = vld [vmem:[%s5900_s6] sm:$0xf] }
 0x2c0   :  { %3979 = vmatpush1.bf16.msra.mxu1 %v5345_v41  ;;  %4020 = vmatpush1.bf16.msra.mxu0 %v5348_v58  ;;  %v5423_v41 = vld [vmem:[#allocation11 + $0x308] ss:$16 sps:$4 sm:$0xff]  }
 0x2c1   :  { %3980 = vmatprep.subr.bf16.mxu1 %v5353_v62  ;;  %4021 = vmatprep.subr.bf16.mxu0 %v5356_v59  ;;  %v5426_v58 = vld [vmem:[#allocation11 + $0x508] ss:$16 sps:$4 sm:$0xff]   ;;  %v5431_v59 = vld [vmem:[#allocation11 + $0x6ec] ss:$16 sps:$4 sm:$0xff]  }
 0x2c4   :  { %3981 = vmatpush1.bf16.msra.mxu1 %v5351_v61  ;;  %4022 = vmatpush1.bf16.msra.mxu0 %v5354_v42  ;;  %v5477_v61 = vld [vmem:[#allocation13 + $0x78] sm:$0xff]   ;;  %v2472_v42 = vrot.slane %v5868_v45, %v5774_v21 }
 0x2c5   :  { %3982 = vmatprep.subr.bf16.mxu1 %v5359_v54  ;;  %4023 = vmatprep.subr.bf16.mxu0 %v5362_v19  ;;  %v2476_v54 = vrot.slane %v5868_v45, %v5780_v24  ;;  %v5429_v19 = vld [vmem:[#allocation11 + $0x6e8] ss:$16 sps:$4 sm:$0xff]  }
 0x2c6   :  { %v5432_v21 = vld [vmem:[#allocation11 + $0x6c8] ss:$16 sps:$4 sm:$0xff]  }
 0x2c8   :  { %3983 = vmatpush1.bf16.msra.mxu1 %v5357_v63  ;;  %4024 = vmatpush1.bf16.msra.mxu0 %v5360_v0  ;;  %v5434_v63 = vld [vmem:[#allocation11 + $0x6cc] ss:$16 sps:$4 sm:$0xff]  }
 0x2c9   :  { %3984 = vmatprep.subr.bf16.mxu1 %v5365_v60  ;;  %4025 = vmatprep.subr.bf16.mxu0 %v5368_v1  ;;  %v5478_v0 = vld [vmem:[#allocation13 + $0x38] sm:$0xff]   ;;  %v5479_v1 = vld [vmem:[#allocation13 + $0x70] sm:$0xff]  }
 0x2cc   :  { %3985 = vmatpush1.bf16.msra.mxu1 %v5363_v2  ;;  %4026 = vmatpush1.bf16.msra.mxu0 %v5366_v3 }
 0x2cd   :  { %3986 = vmatprep.subr.bf16.mxu1 %v5371_v4  ;;  %4027 = vmatprep.subr.bf16.mxu0 %v5374_v5  ;;  %v5437_v5 = vld [vmem:[#allocation11 + $0x6ac] ss:$16 sps:$4 sm:$0xff]  }
 0x2d0   :  { %3987 = vmatpush1.bf16.msra.mxu1 %v5369_v6  ;;  %4028 = vmatpush1.bf16.msra.mxu0 %v5372_v7  ;;  %v5480_v6 = vld [vmem:[#allocation13 + $0x30] sm:$0xff]  }
 0x2d1   :  { %3988 = vmatprep.subr.bf16.mxu1 %v5377_v8  ;;  %4029 = vmatprep.subr.bf16.mxu0 %v5380_v9  ;;  %v5481_v8 = vld [vmem:[#allocation13 + $0x68] sm:$0xff]  }
 0x2d4   :  { %3989 = vmatpush1.bf16.msra.mxu1 %v5375_v10  ;;  %4030 = vmatpush1.bf16.msra.mxu0 %v5378_v11  ;;  %v5440_v10 = vld [vmem:[#allocation11 + $0x68c] ss:$16 sps:$4 sm:$0xff]  }
 0x2d5   :  { %3990 = vmatprep.subr.bf16.mxu1 %v5383_v12  ;;  %4031 = vmatprep.subr.bf16.mxu0 %v5386_v13  ;;  %v5482_v11 = vld [vmem:[#allocation13 + $0x28] sm:$0xff]  }
 0x2d6   :  { %v5438_v12 = vld [vmem:[#allocation11 + $0x688] ss:$16 sps:$4 sm:$0xff]   ;;  %v5443_v13 = vld [vmem:[#allocation11 + $0x66c] ss:$16 sps:$4 sm:$0xff]  }
 0x2d8   :  { %3991 = vmatpush2.bf16.msra.mxu1 %v5381_v14  ;;  %4032 = vmatpush2.bf16.msra.mxu0 %v5384_v15  ;;  %v5484_v14 = vld [vmem:[#allocation13 + $0x20] sm:$0xff]   ;;  %v5485_v15 = vld [vmem:[#allocation13 + $0x58] sm:$0xff]  }
 0x2d9   :  { %3992 = vmatprep.subr.bf16.mxu1 %v5389_v16  ;;  %4033 = vmatprep.subr.bf16.mxu0 %v5392_v17  ;;  %v5441_v16 = vld [vmem:[#allocation11 + $0x668] ss:$16 sps:$4 sm:$0xff]   ;;  %v5446_v17 = vld [vmem:[#allocation11 + $0x64c] ss:$16 sps:$4 sm:$0xff]  }
 0x2dc   :  { %3993 = vmatpush2.bf16.msra.mxu1 %v5387_v18  ;;  %4034 = vmatpush2.bf16.msra.mxu0 %v5390_v23  ;;  %v5486_v18 = vld [vmem:[#allocation13 + $0x18] sm:$0xff]   ;;  %v5487_v23 = vld [vmem:[#allocation13 + $0x50] sm:$0xff]  }
 0x2dd   :  { %3994 = vmatprep.subr.bf16.mxu1 %v5395_v26  ;;  %4035 = vmatprep.subr.bf16.mxu0 %v5398_v28  ;;  %v5444_v26 = vld [vmem:[#allocation11 + $0x648] ss:$16 sps:$4 sm:$0xff]   ;;  %v5449_v28 = vld [vmem:[#allocation11 + $0x62c] ss:$16 sps:$4 sm:$0xff]  }
 0x2e0   :  { %3995 = vmatpush2.bf16.msra.mxu1 %v5393_v29  ;;  %4036 = vmatpush2.bf16.msra.mxu0 %v5396_v30  ;;  %v5488_v29 = vld [vmem:[#allocation13 + $0x10] sm:$0xff]   ;;  %v5489_v30 = vld [vmem:[#allocation13 + $0x48] sm:$0xff]  }
 0x2e1   :  { %3996 = vmatprep.subr.bf16.mxu1 %v5401_v31  ;;  %4037 = vmatprep.subr.bf16.mxu0 %v5404_v32  ;;  %v5447_v31 = vld [vmem:[#allocation11 + $0x628] ss:$16 sps:$4 sm:$0xff]   ;;  %v5452_v32 = vld [vmem:[#allocation11 + $0x60c] ss:$16 sps:$4 sm:$0xff]  }
 0x2e4   :  { %3997 = vmatpush2.bf16.msra.mxu1 %v5399_v33  ;;  %4038 = vmatpush2.bf16.msra.mxu0 %v5402_v34  ;;  %v5490_v33 = vld [vmem:[#allocation13 + $0x8] sm:$0xff]   ;;  %v5491_v34 = vld [vmem:[#allocation13 + $0x40] sm:$0xff]  }
 0x2e5   :  { %3998 = vmatprep.subr.bf16.mxu1 %v5407_v35  ;;  %4039 = vmatprep.subr.bf16.mxu0 %v5410_v20  ;;  %v5450_v35 = vld [vmem:[#allocation11 + $0x608] ss:$16 sps:$4 sm:$0xff]   ;;  %v5455_v20 = vld [vmem:[#allocation11 + $0x7ec] ss:$16 sps:$4 sm:$0xff]  }
 0x2e8   :  { %3999 = vmatpush2.bf16.msra.mxu1 %v5405_v37  ;;  %4040 = vmatpush2.bf16.msra.mxu0 %v5408_v38  ;;  %v5492_v37 = vld [vmem:[#allocation13] sm:$0xff]   ;;  %v5453_v38 = vld [vmem:[#allocation11 + $0x7e8] ss:$16 sps:$4 sm:$0xff]  }
 0x2e9   :  { %4000 = vmatprep.subr.bf16.mxu1 %v5413_v39  ;;  %4041 = vmatprep.subr.bf16.mxu0 %v5416_v40  ;;  %v5458_v39 = vld [vmem:[#allocation11 + $0x7cc] ss:$16 sps:$4 sm:$0xff]   ;;  %v5456_v40 = vld [vmem:[#allocation11 + $0x7c8] ss:$16 sps:$4 sm:$0xff]  }
 0x2eb   :  { %v3803_v48 = vpop.f32.mrf.mxu0 }
 0x2ec   :  { %4001 = vmatpush2.bf16.msra.mxu1 %v5411_v43  ;;  %4042 = vmatpush2.bf16.msra.mxu0 %v5414_v36  ;;  %v3804_v60 = vadd.f32 %v3803_v48, %v2472_v42  ;;  %v5461_v43 = vld [vmem:[#allocation11 + $0x7ac] ss:$16 sps:$4 sm:$0xff]   ;;  %v5459_v36 = vld [vmem:[#allocation11 + $0x7a8] ss:$16 sps:$4 sm:$0xff]  }
 0x2ed   :  { %v3805_v53 = vpop.f32.mrf.mxu0  ;;  %4002 = vmatprep.subr.bf16.mxu1 %v5419_v44  ;;  %4043 = vmatprep.subr.bf16.mxu0 %v5422_v46  ;;  %v5464_v44 = vld [vmem:[#allocation11 + $0x78c] ss:$16 sps:$4 sm:$0xff]   ;;  %v5462_v46 = vld [vmem:[#allocation11 + $0x788] ss:$16 sps:$4 sm:$0xff]  }
 0x2ee   :  { %v3806_v3 = vadd.f32 %v3805_v53, %v2476_v54  ;;  %v5467_v48 = vld [vmem:[#allocation11 + $0x76c] ss:$16 sps:$4 sm:$0xff]   ;;  %v5468_v53 = vld [vmem:[#allocation11 + $0x748] ss:$16 sps:$4 sm:$0xff]  }
 0x2ef   :  { %v3807_v57 = vpop.f32.mrf.mxu0  ;;  %v5493_v54 = vld [vmem:[#allocation13 + $0xf8] sm:$0xff]  }
 0x2f0   :  { %4003 = vmatpush2.bf16.msra.mxu1 %v5417_v51  ;;  %4044 = vmatpush2.bf16.msra.mxu0 %v5420_v50  ;;  %v5465_v51 = vld [vmem:[#allocation11 + $0x768] ss:$16 sps:$4 sm:$0xff]   ;;  %v5470_v50 = vld [vmem:[#allocation11 + $0x74c] ss:$16 sps:$4 sm:$0xff]  }
 0x2f1   :  { %v3808_v62 = vpop.f32.mrf.mxu0  ;;  %4004 = vmatprep.subr.bf16.mxu1 %v5425_v52  ;;  %4045 = vmatprep.subr.bf16.mxu0 %v5428_v56  ;;  %v5473_v52 = vld [vmem:[#allocation11 + $0x72c] ss:$16 sps:$4 sm:$0xff]   ;;  %v5471_v56 = vld [vmem:[#allocation11 + $0x728] ss:$16 sps:$4 sm:$0xff]  }
 0x2f2   :  { %v5476_v57 = vld [vmem:[#allocation11 + $0x70c] ss:$16 sps:$4 sm:$0xff]  }
 0x2f4   :  { %4005 = vmatpush2.bf16.msra.mxu1 %v5423_v41  ;;  %4046 = vmatpush2.bf16.msra.mxu0 %v5426_v58  ;;  %v5474_v41 = vld [vmem:[#allocation11 + $0x708] ss:$16 sps:$4 sm:$0xff]  }
 0x2f5   :  { %4056 = vmatprep.subr.bf16.mxu1 %v5431_v59  ;;  %5022 = vmatprep.subr.bf16.mxu0 %v5477_v61 }
 0x2f7   :  { %4007 = vmatmul.mubr.bf16.vlgmr.msra.gmra.mxu1 %v5837_v27  ;;  %4048 = vmatmul.mubr.bf16.vlgmr.msra.gmra.mxu0 %v5847_v55  ;;  %v3844_v2 = vpop.f32.mrf.mxu1  ;;  %v5435_v55 = vld [vmem:[#allocation11 + $0x6a8] ss:$16 sps:$4 sm:$0xff]  }
 0x2f8   :  { %v5876_v4 = vadd.f32 %v3844_v2, %v3804_v60  ;;  %4057 = vmatpush1.bf16.msra.mxu1 %v5429_v19  ;;  %4088 = vmatprep.mubr.bf16.mxu1 %v5856_v47  ;;  %v5483_v47 = vld [vmem:[#allocation13 + $0x60] sm:$0xff]   ;;  %v5494_v19 = vld [vmem:[#allocation13 + $0xb8] sm:$0xff]   ;;  %v5497_v60 = vld [vmem:[#allocation13 + $0xe8] sm:$0xff]  }
 0x2f9   :  { %v3846_v24 = vpop.f32.mrf.mxu1  ;;  %4058 = vmatprep.subr.bf16.mxu1 %v5434_v63  ;;  %5023 = vmatpush3.bf16.msra.mxu0 %v5478_v0  ;;  %v5495_v63 = vld [vmem:[#allocation13 + $0xf0] sm:$0xff]   ;;  %v5499_v2 = vld [vmem:[#allocation13 + $0xe0] sm:$0xff]  }
 0x2fa   :  { %v5879_v7 = vadd.f32 %v3846_v24, %v3806_v3  ;;  %5024 = vmatprep.subr.bf16.mxu0 %v5479_v1  ;;  %v5496_v0 = vld [vmem:[#allocation13 + $0xb0] sm:$0xff]   ;;  %v5498_v1 = vld [vmem:[#allocation13 + $0xa8] sm:$0xff]   ;;  %v5501_v3 = vld [vmem:[#allocation13 + $0xd8] sm:$0xff]  }
 0x2fb   :  { %v3848_v27 = vpop.f32.mrf.mxu1  ;;  %v5504_v24 = vld [vmem:[#allocation13 + $0x90] sm:$0xff]  }
 0x2fc   :  { %4059 = vmatpush1.bf16.msra.mxu1 %v5432_v21  ;;  %v5503_v21 = vld [vmem:[#allocation13 + $0xd0] sm:$0xff]  }
 0x2fd   :  { %v3849_v9 = vpop.f32.mrf.mxu1  ;;  %4060 = vmatprep.subr.bf16.mxu1 %v5437_v5  ;;  %5025 = vmatpush3.bf16.msra.mxu0 %v5480_v6 }
 0x2fe   :  { %5026 = vmatprep.subr.bf16.mxu0 %v5481_v8 }
 0x300   :  { %4061 = vmatpush1.bf16.msra.mxu1 %v5435_v55  ;;  %v5505_v55 = vld [vmem:[#allocation13 + $0xc8] sm:$0xff]  }
 0x301   :  { %4062 = vmatprep.subr.bf16.mxu1 %v5440_v10  ;;  %5027 = vmatpush3.bf16.msra.mxu0 %v5482_v11  ;;  %v5506_v11 = vld [vmem:[#allocation13 + $0x88] sm:$0xff]  }
 0x302   :  { %5028 = vmatprep.subr.bf16.mxu0 %v5483_v47 }
 0x304   :  { %4063 = vmatpush1.bf16.msra.mxu1 %v5438_v12 }
 0x305   :  { %4064 = vmatprep.subr.bf16.mxu1 %v5443_v13  ;;  %5029 = vmatpush3.bf16.msra.mxu0 %v5484_v14 }
 0x306   :  { %5030 = vmatprep.subr.bf16.mxu0 %v5485_v15 }
 0x308   :  { %4065 = vmatpush1.bf16.msra.mxu1 %v5441_v16  ;;  %v5507_v16 = vld [vmem:[#allocation13 + $0xc0] sm:$0xff]  }
 0x309   :  { %4066 = vmatprep.subr.bf16.mxu1 %v5446_v17  ;;  %5031 = vmatpush3.bf16.msra.mxu0 %v5486_v18 }
 0x30a   :  { %5032 = vmatprep.subr.bf16.mxu0 %v5487_v23  ;;  %v5508_v23 = vld [vmem:[#allocation13 + $0x80] sm:$0xff]  }
 0x30c   :  { %4067 = vmatpush1.bf16.msra.mxu1 %v5444_v26 }
 0x30d   :  { %4068 = vmatprep.subr.bf16.mxu1 %v5449_v28  ;;  %5033 = vmatpush3.bf16.msra.mxu0 %v5488_v29 }
 0x30e   :  { %5034 = vmatprep.subr.bf16.mxu0 %v5489_v30 }
 0x310   :  { %4069 = vmatpush1.bf16.msra.mxu1 %v5447_v31 }
 0x311   :  { %4070 = vmatprep.subr.bf16.mxu1 %v5452_v32  ;;  %5035 = vmatpush3.bf16.msra.mxu0 %v5490_v33 }
 0x312   :  { %5036 = vmatprep.subr.bf16.mxu0 %v5491_v34 }
 0x314   :  { %4071 = vmatpush1.bf16.msra.mxu1 %v5450_v35 }
 0x315   :  { %4072 = vmatprep.subr.bf16.mxu1 %v5455_v20  ;;  %5037 = vmatpush3.bf16.msra.mxu0 %v5492_v37 }
 0x318   :  { %4073 = vmatpush2.bf16.msra.mxu1 %v5453_v38 }
 0x319   :  { %4074 = vmatprep.subr.bf16.mxu1 %v5458_v39 }
 0x31c   :  { %4075 = vmatpush2.bf16.msra.mxu1 %v5456_v40  ;;  %v2484_v40 = vrot.slane %v5868_v45, %v5783_v25 }
 0x31d   :  { %4076 = vmatprep.subr.bf16.mxu1 %v5461_v43 }
 0x320   :  { %4077 = vmatpush2.bf16.msra.mxu1 %v5459_v36 }
 0x321   :  { %4078 = vmatprep.subr.bf16.mxu1 %v5464_v44 }
 0x324   :  { %4079 = vmatpush2.bf16.msra.mxu1 %v5462_v46 }
 0x325   :  { %4080 = vmatprep.subr.bf16.mxu1 %v5467_v48 }
 0x328   :  { %4081 = vmatpush2.bf16.msra.mxu1 %v5465_v51 }
 0x329   :  { %4082 = vmatprep.subr.bf16.mxu1 %v5470_v50 }
 0x32c   :  { %4083 = vmatpush2.bf16.msra.mxu1 %v5468_v53 }
 0x32d   :  { %4084 = vmatprep.subr.bf16.mxu1 %v5473_v52 }
 0x330   :  { %4085 = vmatpush2.bf16.msra.mxu1 %v5471_v56 }
 0x331   :  { %4086 = vmatprep.subr.bf16.mxu1 %v5476_v57 }
 0x334   :  { %4087 = vmatpush2.bf16.msra.mxu1 %v5474_v41 }
 0x335   :  { %5044 = vmatprep.subr.bf16.mxu1 %v5493_v54 }
 0x337   :  { %4089 = vmatmul.mubr.bf16.vlgmr.msra.gmra.mxu1 %v5858_v49  ;;  %v3885_v58 = vpop.f32.mrf.mxu0  ;;  %v5500_v49 = vld [vmem:[#allocation13 + $0xa0] sm:$0xff]  }
 0x338   :  { %v3886_v62 = vadd.f32 %v3885_v58, %v5876_v4  ;;  %5045 = vmatpush3.bf16.msra.mxu1 %v5494_v19  ;;  %v5502_v4 = vld [vmem:[#allocation13 + $0x98] sm:$0xff]  }
 0x339   :  { %v3887_v59 = vpop.f32.mrf.mxu0  ;;  %5046 = vmatprep.subr.bf16.mxu1 %v5495_v63 }
 0x33a   :  { %v3888_v8 = vadd.f32 %v3887_v59, %v5879_v7  ;;  %v2480_v7 = vrot.slane %v5868_v45, %v5777_v22  ;;  %v4989_v45 = vld [vmem:[%s5902_s8] ss:$0 sm:$0xff] }
 0x33b   :  { %v3889_v61 = vpop.f32.mrf.mxu0 }
 0x33c   :  { %5047 = vmatpush3.bf16.msra.mxu1 %v5496_v0 }
 0x33d   :  { %v3890_v42 = vpop.f32.mrf.mxu0  ;;  %5048 = vmatprep.subr.bf16.mxu1 %v5497_v60 }
 0x340   :  { %5049 = vmatpush3.bf16.msra.mxu1 %v5498_v1 }
 0x341   :  { %5050 = vmatprep.subr.bf16.mxu1 %v5499_v2 }
 0x344   :  { %5051 = vmatpush3.bf16.msra.mxu1 %v5500_v49 }
 0x345   :  { %5052 = vmatprep.subr.bf16.mxu1 %v5501_v3 }
 0x348   :  { %5053 = vmatpush3.bf16.msra.mxu1 %v5502_v4 }
 0x349   :  { %5054 = vmatprep.subr.bf16.mxu1 %v5503_v21 }
 0x34c   :  { %5055 = vmatpush3.bf16.msra.mxu1 %v5504_v24 }
 0x34d   :  { %5056 = vmatprep.subr.bf16.mxu1 %v5505_v55 }
 0x350   :  { %5057 = vmatpush3.bf16.msra.mxu1 %v5506_v11 }
 0x351   :  { %5058 = vmatprep.subr.bf16.mxu1 %v5507_v16 }
 0x354   :  { %5059 = vmatpush3.bf16.msra.mxu1 %v5508_v23 }
 0x377   :  { %v3967_v5 = vpop.f32.mrf.mxu0  ;;  %v3926_v6 = vpop.f32.mrf.mxu1 }
 0x378   :  { %v3927_v27 = vadd.f32 %v3926_v6, %v3886_v62  ;;  %v3968_v29 = vadd.f32 %v3967_v5, %v2480_v7 }
 0x379   :  { %v3969_v9 = vpop.f32.mrf.mxu0  ;;  %v3928_v10 = vpop.f32.mrf.mxu1 }
 0x37a   :  { %v3929_v47 = vadd.f32 %v3928_v10, %v3888_v8  ;;  %v4097_v12 = vmax.f32 %v3927_v27, 0.0  ;;  %v3970_v43 = vadd.f32 %v3969_v9, %v2484_v40 }
 0x37b   :  { %v3971_v13 = vpop.f32.mrf.mxu0  ;;  %v3930_v14 = vpop.f32.mrf.mxu1 }
 0x37c   :  { %v4098_v15 = vmax.f32 %v3929_v47, 0.0  ;;  %v4101_v28 = vpack.c.bf16 %v4097_v12, %v4097_v12 }
 0x37d   :  { %v3972_v17 = vpop.f32.mrf.mxu0  ;;  %v3931_v18 = vpop.f32.mrf.mxu1 }
 0x37e   :  { %v4102_v26 = vpack.c.bf16 %v4098_v15, %v4098_v15 }
 0x380   :  { %4400 = vmatprep.mubr.bf16.mxu0 %v4102_v26 }
 0x381   :  { %4401 = vmatmul.mubr.bf16.vlgmr.msra.gmra.mxu0 %v4101_v28 }
 0x3b7   :  { %v4008_v30 = vpop.f32.mrf.mxu1  ;;  %v4049_v31 = vpop.f32.mrf.mxu0 }
 0x3b8   :  { %v4009_v32 = vadd.f32 %v4008_v30, %v3968_v29 }
 0x3b9   :  { %v4010_v33 = vpop.f32.mrf.mxu1  ;;  %v4051_v34 = vpop.f32.mrf.mxu0 }
 0x3ba   :  { %v4050_v35 = vadd.f32 %v4049_v31, %v4009_v32  ;;  %v4011_v36 = vadd.f32 %v4010_v33, %v3970_v43 }
 0x3bb   :  { %v4012_v20 = vpop.f32.mrf.mxu1  ;;  %v4053_v37 = vpop.f32.mrf.mxu0 }
 0x3bc   :  { %v4052_v46 = vadd.f32 %v4051_v34, %v4011_v36 }
 0x3bd   :  { %v4013_v38 = vpop.f32.mrf.mxu1  ;;  %v4054_v39 = vpop.f32.mrf.mxu0 }
 0x3f7   :  { %v4090_v44 = vpop.f32.mrf.mxu1 }
 0x3f8   :  { %v4091_v48 = vadd.f32 %v4090_v44, %v4050_v35 }
 0x3f9   :  { %v4092_v22 = vpop.f32.mrf.mxu1 }
 0x3fa   :  { %v4093_v51 = vadd.f32 %v4092_v22, %v4052_v46  ;;  %v4099_v50 = vmax.f32 %v4091_v48, 0.0 }
 0x3fb   :  { %v4094_v53 = vpop.f32.mrf.mxu1 }
 0x3fc   :  { %v4100_v52 = vmax.f32 %v4093_v51, 0.0  ;;  %v4103_v41 = vpack.c.bf16 %v4099_v50, %v4099_v50 }
 0x3fd   :  { %v4095_v56 = vpop.f32.mrf.mxu1 }
 0x3fe   :  { %v4104_v57 = vpack.c.bf16 %v4100_v52, %v4100_v52 }
 0x400   :  { %4440 = vmatprep.mubr.bf16.mxu1 %v4104_v57 }
 0x401   :  { %4441 = vmatmul.mubr.bf16.vlgmr.msra.gmra.mxu1 %v4103_v41 }
 0x441   :  { %v5038_v58 = vpop.f32.mrf.mxu0 }
 0x443   :  { %v5039_v62 = vpop.f32.mrf.mxu0 }
 0x444   :  { %v5040_v59 = vadd.f32 %v5039_v62, %v5038_v58 }
 0x445   :  { %v5041_v61 = vpop.f32.mrf.mxu0 }
 0x446   :  { %v4403_v19 = vadd.f32 %v5040_v59, %v4989_v45 }
 0x447   :  { %v5042_v25 = vpop.f32.mrf.mxu0 }
 0x4c1   :  { %v5060_v42 = vpop.f32.mrf.mxu1 }
 0x4c3   :  { %v5061_v54 = vpop.f32.mrf.mxu1 }
 0x4c4   :  { %v5062_v63 = vadd.f32 %v5061_v54, %v5060_v42 }
 0x4c5   :  { %v5063_v0 = vpop.f32.mrf.mxu1 }
 0x4c6   :  { %v4443_v60 = vadd.f32 %v5062_v63, %v4403_v19 }
 0x4c7   :  { %v5064_v1 = vpop.f32.mrf.mxu1 }
 0x4c8   :  { %4448 = vst [vmem:[#allocation14] sm:$0xff] %v4443_v60 }
 0x4c9   :  { %5660 = shalt.err (!%p5657_p11)
}
 0x4ca   :  { %4458 = dma.vmem_to_hbm [thread:$0]  %s4456_s1, 128, %s5903_s9, [#allocation4]  }
 0x4cb   :  { %5677 = dma.done.wait [#allocation4], 128  }
 0x4cc   :  { %5678 = vsyncadd [#allocation4], 4294967168 }
 0x4cd   :  { %4462 = vsyncpa [#allocation3], 1 }
 0x4ce   :  { %4463 = vsyncpa [#allocation6], 1 }
 0x4cf   :  { %4464 = vsyncpa [#allocation9], 1 }
 0x4d0   :  { %4465 = vsyncpa [#allocation12], 1 }
 0x4d1   :  { %4466 = vsyncpa [#allocation4], 1 }

// kernel: tpu_custom_call.1
= control target key start
LH: loop header
LB: loop body
LE: loop exit
PB: predicated region body
PF: predicated region fallthrough
CT: control target
= control target key end

     0   :  { %14 = vsyncpa [#allocation3], 0  ;;  %s5894_s0 = inlined_call_operand.hbm [shape: f32[8,32], index: 0, kind: input, shape index: {}]   ;;  %s5895_s1 = inlined_call_operand.hbm [shape: bf16[32,512], index: 1, kind: input, shape index: {}]   ;;  %s5896_s2 = inlined_call_operand.hbm [shape: f32[1,512], index: 2, kind: input, shape index: {}]   ;;  %s5897_s3 = inlined_call_operand.hbm [shape: bf16[512,1024], index: 3, kind: input, shape index: {}]   ;;  %s5898_s4 = inlined_call_operand.hbm [shape: f32[1,1024], index: 4, kind: input, shape index: {}]   ;;  %s5899_s5 = inlined_call_operand.hbm [shape: bf16[1024,512], index: 5, kind: input, shape index: {}]   ;;  %s5900_s6 = inlined_call_operand.vmem [shape: f32[1,512], index: 6, kind: input, shape index: {}]   ;;  %s5901_s7 = inlined_call_operand.hbm [shape: bf16[512,128], index: 7, kind: input, shape index: {}]   ;;  %s5902_s8 = inlined_call_operand.vmem [shape: f32[1,128], index: 8, kind: input, shape index: {}]   ;;  %s5903_s9 = inlined_call_operand.hbm [shape: f32[8,128], index: 9, kind: output, shape index: {}]  }
   0x1   :  { %15 = vsyncpa [#allocation6], 0 }
   0x2   :  { %16 = vsyncpa [#allocation9], 0 }
   0x3   :  { %17 = vsyncpa [#allocation12], 0 }
   0x4   :  { %18 = vsyncpa [#allocation4], 0  ;;  %s5679_s30 = smov [#allocation5]  }
   0x5   :  { %s34_s10 = sshll.u32 %s5679_s30, 4  ;;  %s35_s10 = int_to_ptr.vmem [resolvable:$true] %s34_s10 }
   0x6   :  { %s5517_s11 = scalar_lea.vmem %s35_s10, 1024  ;;  %p5522_p1 = scmp.lt.s32.totalorder %s35_s10, %s35_s10 }
   0x7   :  { %p5518_p0 = scmp.ne.s32.totalorder %s35_s10, %s5517_s11  ;;  %p5523_p2 = scmp.lt.s32.totalorder %s5517_s11, %s5517_s11 }
   0x9   :  { %p5524_p3 = por %p5523_p2, %p5522_p1 }
   0xb   :  { %p5525_p4 = pnand %p5524_p3, %p5518_p0 }
   0xd   :  { %5528 = shalt.err (!%p5525_p4)
}
   0xe   :  { %s5680_s12 = smov 256   ;;  %s5681_s13 = smov 16  }
   0xf   :  { %40 = dma.hbm_to_vmem [thread:$0]  %s5895_s1, 1024, %s35_s10, [#allocation6], %s5680_s12, %s5680_s12, %s5681_s13  }
  0x10   :  { %s5682_s16 = smov [#allocation8]  }
  0x11   :  { %s56_s17 = sshll.u32 %s5682_s16, 4  ;;  %s57_s17 = int_to_ptr.vmem [resolvable:$true] %s56_s17 }
  0x12   :  { %s5537_s18 = scalar_lea.vmem %s57_s17, 32768  ;;  %p5542_p6 = scmp.lt.s32.totalorder %s57_s17, %s57_s17 }
  0x13   :  { %p5538_p5 = scmp.ne.s32.totalorder %s57_s17, %s5537_s18  ;;  %p5543_p7 = scmp.lt.s32.totalorder %s5537_s18, %s5537_s18 }
  0x15   :  { %p5544_p8 = por %p5543_p7, %p5542_p6 }
  0x17   :  { %p5545_p9 = pnand %p5544_p8, %p5538_p5 }
  0x19   :  { %5548 = shalt.err (!%p5545_p9)
}
  0x1a   :  { %s5683_s19 = smov 512   ;;  %s5684_s20 = smov 32  }
  0x1b   :  { %62 = dma.hbm_to_vmem [thread:$0]  %s5897_s3, 32768, %s57_s17, [#allocation9], %s5683_s19, %s5683_s19, %s5684_s20  }
  0x1c   :  { %s5685_s23 = smov [#allocation11]   ;;  %s5686_s25 = smov [#allocation2]  }
  0x1d   :  { %s78_s24 = sshll.u32 %s5685_s23, 4  ;;  %s25_s1 = sshll.u32 %s5686_s25, 4  ;;  %s79_s24 = int_to_ptr.vmem [resolvable:$true] %s78_s24  ;;  %s26_s1 = int_to_ptr.vmem [resolvable:$true] %s25_s1 }
  0x1e   :  { %s5557_s26 = scalar_lea.vmem %s79_s24, 32768  ;;  %p5562_p11 = scmp.lt.s32.totalorder %s79_s24, %s79_s24 }
  0x1f   :  { %p5558_p10 = scmp.ne.s32.totalorder %s79_s24, %s5557_s26  ;;  %p5563_p12 = scmp.lt.s32.totalorder %s5557_s26, %s5557_s26 }
  0x21   :  { %p5564_p13 = por %p5563_p12, %p5562_p11 }
  0x23   :  { %p5565_p0 = pnand %p5564_p13, %p5558_p10 }
  0x25   :  { %5568 = shalt.err (!%p5565_p0)
}
  0x26   :  { %84 = dma.hbm_to_vmem [thread:$0]  %s5899_s5, 32768, %s79_s24, [#allocation12], %s5680_s12, %s5680_s12, %s5681_s13  }
  0x27   :  { %s5577_s3 = scalar_lea.vmem %s26_s1, 128  ;;  %p5582_p2 = scmp.lt.s32.totalorder %s26_s1, %s26_s1 }
  0x28   :  { %p5578_p1 = scmp.ne.s32.totalorder %s26_s1, %s5577_s3  ;;  %p5583_p3 = scmp.lt.s32.totalorder %s5577_s3, %s5577_s3 }
  0x2a   :  { %p5584_p4 = por %p5583_p3, %p5582_p2 }
  0x2c   :  { %p5585_p5 = pnand %p5584_p4, %p5578_p1 }
  0x2e   :  { %5588 = shalt.err (!%p5585_p5)
}
  0x2f   :  { %28 = dma.hbm_to_vmem [thread:$0]  %s5894_s0, 128, %s26_s1, [#allocation3]  }
  0x30   :  { %s5687_s10 = smov [#allocation7]   ;;  %s5688_s14 = smov [#allocation10]  }
  0x31   :  { %s47_s11 = sshll.u32 %s5687_s10, 4  ;;  %s69_s15 = sshll.u32 %s5688_s14, 4  ;;  %s48_s11 = int_to_ptr.vmem [resolvable:$true] %s47_s11  ;;  %s70_s15 = int_to_ptr.vmem [resolvable:$true] %s69_s15 }
  0x32   :  { %s5597_s16 = scalar_lea.vmem %s48_s11, 64  ;;  %p5602_p7 = scmp.lt.s32.totalorder %s48_s11, %s48_s11 }
  0x33   :  { %p5598_p6 = scmp.ne.s32.totalorder %s48_s11, %s5597_s16  ;;  %p5603_p8 = scmp.lt.s32.totalorder %s5597_s16, %s5597_s16 }
  0x35   :  { %p5604_p9 = por %p5603_p8, %p5602_p7 }
  0x37   :  { %p5605_p10 = pnand %p5604_p9, %p5598_p6 }
  0x39   :  { %5608 = shalt.err (!%p5605_p10)
}
  0x3a   :  { %50 = dma.hbm_to_vmem [thread:$0]  %s5896_s2, 64, %s48_s11, [#allocation6]  }
  0x3b   :  { %s5617_s13 = scalar_lea.vmem %s70_s15, 128  ;;  %p5622_p12 = scmp.lt.s32.totalorder %s70_s15, %s70_s15 }
  0x3c   :  { %p5618_p11 = scmp.ne.s32.totalorder %s70_s15, %s5617_s13  ;;  %p5623_p13 = scmp.lt.s32.totalorder %s5617_s13, %s5617_s13 }
  0x3e   :  { %p5624_p0 = por %p5623_p13, %p5622_p12 }
  0x40   :  { %p5625_p1 = pnand %p5624_p0, %p5618_p11 }
  0x42   :  { %5628 = shalt.err (!%p5625_p1)
}
  0x43   :  { %72 = dma.hbm_to_vmem [thread:$0]  %s5898_s4, 128, %s70_s15, [#allocation9]  }
  0x44   :  { %s5689_s18 = smov [#allocation13]  }
  0x45   :  { %s92_s19 = sshll.u32 %s5689_s18, 4  ;;  %s93_s19 = int_to_ptr.vmem [resolvable:$true] %s92_s19 }
  0x46   :  { %s5637_s20 = scalar_lea.vmem %s93_s19, 4096  ;;  %p5642_p3 = scmp.lt.s32.totalorder %s93_s19, %s93_s19 }
  0x47   :  { %p5638_p2 = scmp.ne.s32.totalorder %s93_s19, %s5637_s20  ;;  %p5643_p4 = scmp.lt.s32.totalorder %s5637_s20, %s5637_s20 }
  0x49   :  { %p5644_p5 = por %p5643_p4, %p5642_p3 }
  0x4b   :  { %p5645_p6 = pnand %p5644_p5, %p5638_p2 }
  0x4d   :  { %5648 = shalt.err (!%p5645_p6)
}
  0x4e   :  { %s5690_s2 = smov 64   ;;  %s5691_s21 = smov 4  }
  0x4f   :  { %98 = dma.hbm_to_vmem [thread:$0]  %s5901_s7, 4096, %s93_s19, [#allocation12], %s5690_s2, %s5690_s2, %s5691_s21  }
  0x50   :  { %5669 = dma.done.wait [#allocation3], 128  }
  0x51   :  { %5670 = vsyncadd [#allocation3], 4294967168 }
  0x52   :  { %5671 = dma.done.wait [#allocation6], 1088  }
  0x53   :  { %5672 = vsyncadd [#allocation6], 4294966208 }
  0x54   :  { %5673 = dma.done.wait [#allocation9], 32896  }
  0x55   :  { %5674 = vsyncadd [#allocation9], 4294934400 }
  0x56   :  { %5675 = dma.done.wait [#allocation12], 36864  }
  0x57   :  { %5676 = vsyncadd [#allocation12], 4294930432  ;;  %v5692_v0 = vmov 0   ;;  %v5081_v1 = vld [vmem:[#allocation5 + $0x24] ss:$16 sps:$4 sm:$0xff]   ;;  %v123_v9 = vld [vmem:[#allocation2] sm:$0xff] }
  0x58   :  { %231 = vmatprep.mubr.bf16.mxu0 %v5692_v0  ;;  %272 = vmatprep.mubr.bf16.mxu1 %v5692_v0  ;;  %v5083_v2 = vld [vmem:[#allocation5 + $0x2c] ss:$16 sps:$4 sm:$0xff]   ;;  %v5085_v3 = vld [vmem:[#allocation5 + $0x20] ss:$16 sps:$4 sm:$0xff]   ;;  %v5086_v4 = vld [vmem:[#allocation5 + $0x28] ss:$16 sps:$4 sm:$0xff]   ;;  %v124_v14 = vpack.c.bf16 %v123_v9, %v123_v9 }
  0x59   :  { %211 = vmatprep.subr.bf16.mxu0 %v5081_v1  ;;  %252 = vmatprep.subr.bf16.mxu1 %v5083_v2  ;;  %v5087_v5 = vld [vmem:[#allocation5 + $0x4] ss:$16 sps:$4 sm:$0xff]   ;;  %v5089_v6 = vld [vmem:[#allocation5 + $0xc] ss:$16 sps:$4 sm:$0xff]   ;;  %v5091_v7 = vld [vmem:[#allocation5] ss:$16 sps:$4 sm:$0xff]  }
  0x5a   :  { %212 = vmatpush1.bf16.msra.mxu0 %v5085_v3  ;;  %253 = vmatpush1.bf16.msra.mxu1 %v5086_v4  ;;  %v5092_v8 = vld [vmem:[#allocation5 + $0x8] ss:$16 sps:$4 sm:$0xff]   ;;  %vm195_vm0 = vcmask 261120   ;;  %s5693_s25 = smov [#allocation14]  }
  0x5b   :  { %213 = vmatprep.subr.bf16.mxu0 %v5087_v5  ;;  %v345_v10 = vld [vmem:[#allocation8 + $0x1c0] sm:$0xff]  ;;  %254 = vmatprep.subr.bf16.mxu1 %v5089_v6  ;;  %s4455_s1 = sshll.u32 %s5693_s25, 4  ;;  %s4456_s1 = int_to_ptr.vmem [resolvable:$true] %s4455_s1 }
  0x5c   :  { %v349_v11 = vld [vmem:[#allocation8 + $0x1e0] sm:$0xff]  ;;  %s5649_s26 = scalar_lea.vmem %s4456_s1, 128  ;;  %p5654_p8 = scmp.lt.s32.totalorder %s4456_s1, %s4456_s1 }
  0x5d   :  { %v473_v12 = vld [vmem:[#allocation8 + $0x5c0] sm:$0xff]  ;;  %v4534_v15 = vcombine.high %v345_v10, %v349_v11  ;;  %v4533_v20 = vcombine.low %v345_v10, %v349_v11  ;;  %p5650_p7 = scmp.ne.s32.totalorder %s4456_s1, %s5649_s26  ;;  %p5655_p9 = scmp.lt.s32.totalorder %s5649_s26, %s5649_s26 }
  0x5e   :  { %v477_v13 = vld [vmem:[#allocation8 + $0x5e0] sm:$0xff]  ;;  %214 = vmatpush1.bf16.msra.mxu0 %v5091_v7  ;;  %255 = vmatpush1.bf16.msra.mxu1 %v5092_v8 }
  0x5f   :  { %v4662_v16 = vcombine.high %v473_v12, %v477_v13  ;;  %v337_v17 = vld [vmem:[#allocation8 + $0x180] sm:$0xff]  ;;  %v4661_v21 = vcombine.low %v473_v12, %v477_v13  ;;  %1867 = vmatprep.subr.bf16.mxu0 %v4534_v15  ;;  %p5656_p10 = por %p5655_p9, %p5654_p8 }
  0x60   :  { %v341_v18 = vld [vmem:[#allocation8 + $0x1a0] sm:$0xff] }
  0x61   :  { %v465_v19 = vld [vmem:[#allocation8 + $0x580] sm:$0xff]  ;;  %1908 = vmatprep.subr.bf16.mxu1 %v4662_v16  ;;  %v4526_v23 = vcombine.high %v337_v17, %v341_v18  ;;  %4475 = vmatmul.mubr.msk.bf16.vlgmr.msra.gmra.mxu0 %vm195_vm0, %v124_v14  ;;  %v4525_v29 = vcombine.low %v337_v17, %v341_v18  ;;  %p5657_p11 = pnand %p5656_p10, %p5650_p7 }
  0x62   :  { %v469_v22 = vld [vmem:[#allocation8 + $0x5a0] sm:$0xff]  ;;  %4476 = vmatmul.mubr.msk.bf16.vlgmr.msra.gmra.mxu1 %vm195_vm0, %v124_v14  ;;  %1868 = vmatpush1.bf16.msra.mxu0 %v4533_v20 }
  0x63   :  { %v4654_v24 = vcombine.high %v465_v19, %v469_v22  ;;  %v329_v25 = vld [vmem:[#allocation8 + $0x140] sm:$0xff]  ;;  %1909 = vmatpush1.bf16.msra.mxu1 %v4661_v21  ;;  %v4653_v30 = vcombine.low %v465_v19, %v469_v22  ;;  %1869 = vmatprep.subr.bf16.mxu0 %v4526_v23 }
  0x64   :  { %v333_v26 = vld [vmem:[#allocation8 + $0x160] sm:$0xff] }
  0x65   :  { %v457_v27 = vld [vmem:[#allocation8 + $0x540] sm:$0xff]  ;;  %1910 = vmatprep.subr.bf16.mxu1 %v4654_v24  ;;  %v4518_v31 = vcombine.high %v329_v25, %v333_v26  ;;  %v4517_v37 = vcombine.low %v329_v25, %v333_v26 }
  0x66   :  { %v461_v28 = vld [vmem:[#allocation8 + $0x560] sm:$0xff]  ;;  %1870 = vmatpush1.bf16.msra.mxu0 %v4525_v29 }
  0x67   :  { %v4646_v32 = vcombine.high %v457_v27, %v461_v28  ;;  %v321_v33 = vld [vmem:[#allocation8 + $0x100] sm:$0xff]  ;;  %1911 = vmatpush1.bf16.msra.mxu1 %v4653_v30  ;;  %v4645_v38 = vcombine.low %v457_v27, %v461_v28  ;;  %1871 = vmatprep.subr.bf16.mxu0 %v4518_v31 }
  0x68   :  { %v325_v34 = vld [vmem:[#allocation8 + $0x120] sm:$0xff] }
  0x69   :  { %v449_v35 = vld [vmem:[#allocation8 + $0x500] sm:$0xff]  ;;  %1912 = vmatprep.subr.bf16.mxu1 %v4646_v32  ;;  %v4510_v39 = vcombine.high %v321_v33, %v325_v34  ;;  %v4509_v45 = vcombine.low %v321_v33, %v325_v34 }
  0x6a   :  { %v453_v36 = vld [vmem:[#allocation8 + $0x520] sm:$0xff]  ;;  %1872 = vmatpush1.bf16.msra.mxu0 %v4517_v37 }
  0x6b   :  { %v4638_v40 = vcombine.high %v449_v35, %v453_v36  ;;  %v313_v41 = vld [vmem:[#allocation8 + $0xc0] sm:$0xff]  ;;  %1913 = vmatpush1.bf16.msra.mxu1 %v4645_v38  ;;  %v4637_v46 = vcombine.low %v449_v35, %v453_v36  ;;  %1873 = vmatprep.subr.bf16.mxu0 %v4510_v39 }
  0x6c   :  { %v317_v42 = vld [vmem:[#allocation8 + $0xe0] sm:$0xff] }
  0x6d   :  { %v441_v43 = vld [vmem:[#allocation8 + $0x4c0] sm:$0xff]  ;;  %1914 = vmatprep.subr.bf16.mxu1 %v4638_v40  ;;  %v4502_v47 = vcombine.high %v313_v41, %v317_v42  ;;  %v4501_v53 = vcombine.low %v313_v41, %v317_v42 }
  0x6e   :  { %v445_v44 = vld [vmem:[#allocation8 + $0x4e0] sm:$0xff]  ;;  %1874 = vmatpush1.bf16.msra.mxu0 %v4509_v45 }
  0x6f   :  { %v4630_v48 = vcombine.high %v441_v43, %v445_v44  ;;  %v305_v49 = vld [vmem:[#allocation8 + $0x80] sm:$0xff]  ;;  %1915 = vmatpush1.bf16.msra.mxu1 %v4637_v46  ;;  %v4629_v54 = vcombine.low %v441_v43, %v445_v44  ;;  %1875 = vmatprep.subr.bf16.mxu0 %v4502_v47 }
  0x70   :  { %v309_v50 = vld [vmem:[#allocation8 + $0xa0] sm:$0xff] }
  0x71   :  { %v433_v51 = vld [vmem:[#allocation8 + $0x480] sm:$0xff]  ;;  %1916 = vmatprep.subr.bf16.mxu1 %v4630_v48  ;;  %v4494_v59 = vcombine.high %v305_v49, %v309_v50  ;;  %v4493_v61 = vcombine.low %v305_v49, %v309_v50 }
  0x72   :  { %v437_v52 = vld [vmem:[#allocation8 + $0x4a0] sm:$0xff]  ;;  %1876 = vmatpush1.bf16.msra.mxu0 %v4501_v53 }
  0x73   :  { %v297_v55 = vld [vmem:[#allocation8 + $0x40] sm:$0xff]  ;;  %v4622_v60 = vcombine.high %v433_v51, %v437_v52  ;;  %1917 = vmatpush1.bf16.msra.mxu1 %v4629_v54  ;;  %v4621_v62 = vcombine.low %v433_v51, %v437_v52  ;;  %1877 = vmatprep.subr.bf16.mxu0 %v4494_v59 }
  0x74   :  { %v301_v56 = vld [vmem:[#allocation8 + $0x60] sm:$0xff] }
  0x75   :  { %v425_v57 = vld [vmem:[#allocation8 + $0x440] sm:$0xff]  ;;  %1918 = vmatprep.subr.bf16.mxu1 %v4622_v60  ;;  %v4486_v3 = vcombine.high %v297_v55, %v301_v56  ;;  %v4485_v5 = vcombine.low %v297_v55, %v301_v56 }
  0x76   :  { %v429_v58 = vld [vmem:[#allocation8 + $0x460] sm:$0xff]  ;;  %1878 = vmatpush1.bf16.msra.mxu0 %v4493_v61 }
  0x77   :  { %v289_v63 = vld [vmem:[#allocation8] sm:$0xff]  ;;  %v4614_v4 = vcombine.high %v425_v57, %v429_v58  ;;  %1919 = vmatpush1.bf16.msra.mxu1 %v4621_v62  ;;  %v4613_v6 = vcombine.low %v425_v57, %v429_v58  ;;  %1879 = vmatprep.subr.bf16.mxu0 %v4486_v3 }
  0x78   :  { %v293_v0 = vld [vmem:[#allocation8 + $0x20] sm:$0xff] }
  0x79   :  { %v417_v1 = vld [vmem:[#allocation8 + $0x400] sm:$0xff]  ;;  %1920 = vmatprep.subr.bf16.mxu1 %v4614_v4  ;;  %v4478_v11 = vcombine.high %v289_v63, %v293_v0  ;;  %v4477_v13 = vcombine.low %v289_v63, %v293_v0 }
  0x7a   :  { %v421_v2 = vld [vmem:[#allocation8 + $0x420] sm:$0xff]  ;;  %1880 = vmatpush1.bf16.msra.mxu0 %v4485_v5 }
  0x7b   :  { %v409_v7 = vld [vmem:[#allocation8 + $0x3c0] sm:$0xff]  ;;  %v4606_v12 = vcombine.high %v417_v1, %v421_v2  ;;  %1921 = vmatpush1.bf16.msra.mxu1 %v4613_v6  ;;  %v4605_v14 = vcombine.low %v417_v1, %v421_v2  ;;  %1881 = vmatprep.subr.bf16.mxu0 %v4478_v11  ;;  %v346_v11 = vld [vmem:[#allocation8 + $0x1c8] sm:$0xff] }
  0x7c   :  { %v413_v8 = vld [vmem:[#allocation8 + $0x3e0] sm:$0xff] }
  0x7d   :  { %v537_v9 = vld [vmem:[#allocation8 + $0x7c0] sm:$0xff]  ;;  %1922 = vmatprep.subr.bf16.mxu1 %v4606_v12  ;;  %v4598_v19 = vcombine.high %v409_v7, %v413_v8  ;;  %v4597_v21 = vcombine.low %v409_v7, %v413_v8  ;;  %v350_v12 = vld [vmem:[#allocation8 + $0x1e8] sm:$0xff] }
  0x7e   :  { %v541_v10 = vld [vmem:[#allocation8 + $0x7e0] sm:$0xff]  ;;  %1882 = vmatpush1.bf16.msra.mxu0 %v4477_v13  ;;  %v474_v13 = vld [vmem:[#allocation8 + $0x5c8] sm:$0xff] }
  0x7f   :  { %v401_v15 = vld [vmem:[#allocation8 + $0x380] sm:$0xff]  ;;  %v4726_v20 = vcombine.high %v537_v9, %v541_v10  ;;  %1923 = vmatpush1.bf16.msra.mxu1 %v4605_v14  ;;  %v4725_v22 = vcombine.low %v537_v9, %v541_v10  ;;  %1883 = vmatprep.subr.bf16.mxu0 %v4598_v19  ;;  %v4536_v14 = vcombine.high %v346_v11, %v350_v12  ;;  %v135_v19 = vlaneseq }
  0x80   :  { %v405_v16 = vld [vmem:[#allocation8 + $0x3a0] sm:$0xff] }
  0x81   :  { %v529_v17 = vld [vmem:[#allocation8 + $0x780] sm:$0xff]  ;;  %1924 = vmatprep.subr.bf16.mxu1 %v4726_v20  ;;  %v4590_v27 = vcombine.high %v401_v15, %v405_v16  ;;  %v4589_v29 = vcombine.low %v401_v15, %v405_v16  ;;  %v478_v15 = vld [vmem:[#allocation8 + $0x5e8] sm:$0xff]  ;;  %v4535_v16 = vcombine.low %v346_v11, %v350_v12  ;;  %v5771_v20 = vshrl.u32 %v135_v19, 7 }
  0x82   :  { %v533_v18 = vld [vmem:[#allocation8 + $0x7a0] sm:$0xff]  ;;  %1884 = vmatpush2.bf16.msra.mxu0 %v4597_v21  ;;  %v446_v11 = vld [vmem:[#allocation8 + $0x4e8] sm:$0xff] }
  0x83   :  { %v393_v23 = vld [vmem:[#allocation8 + $0x340] sm:$0xff]  ;;  %v4718_v28 = vcombine.high %v529_v17, %v533_v18  ;;  %1925 = vmatpush2.bf16.msra.mxu1 %v4725_v22  ;;  %v4717_v30 = vcombine.low %v529_v17, %v533_v18  ;;  %1885 = vmatprep.subr.bf16.mxu0 %v4590_v27  ;;  %v4663_v17 = vcombine.low %v474_v13, %v478_v15  ;;  %v5774_v21 = vsub.s32 0, %v5771_v20  ;;  %v438_v19 = vld [vmem:[#allocation8 + $0x4a8] sm:$0xff] }
  0x84   :  { %v397_v24 = vld [vmem:[#allocation8 + $0x360] sm:$0xff]  ;;  %v4664_v18 = vcombine.high %v474_v13, %v478_v15  ;;  %v5777_v22 = vsub.s32 2, %v5771_v20 }
  0x85   :  { %v521_v25 = vld [vmem:[#allocation8 + $0x740] sm:$0xff]  ;;  %1926 = vmatprep.subr.bf16.mxu1 %v4718_v28  ;;  %v4582_v35 = vcombine.high %v393_v23, %v397_v24  ;;  %v4581_v37 = vcombine.low %v393_v23, %v397_v24  ;;  %v133_v23 = vld [vmem:[#allocation7] sm:$0xf]  ;;  %v5780_v24 = vsub.s32 1, %v5771_v20 }
  0x86   :  { %v525_v26 = vld [vmem:[#allocation8 + $0x760] sm:$0xff]  ;;  %1886 = vmatpush2.bf16.msra.mxu0 %v4589_v29  ;;  %v146_v27 = vrot.slane %v133_v23, %v5777_v22 }
  0x87   :  { %v385_v31 = vld [vmem:[#allocation8 + $0x300] sm:$0xff]  ;;  %v4710_v36 = vcombine.high %v521_v25, %v525_v26  ;;  %1927 = vmatpush2.bf16.msra.mxu1 %v4717_v30  ;;  %v4709_v38 = vcombine.low %v521_v25, %v525_v26  ;;  %1887 = vmatprep.subr.bf16.mxu0 %v4582_v35  ;;  %v5783_v25 = vsub.s32 3, %v5771_v20  ;;  %v138_v26 = vrot.slane %v133_v23, %v5774_v21 }
  0x88   :  { %v389_v32 = vld [vmem:[#allocation8 + $0x320] sm:$0xff]  ;;  %v142_v28 = vrot.slane %v133_v23, %v5780_v24 }
  0x89   :  { %v513_v33 = vld [vmem:[#allocation8 + $0x700] sm:$0xff]  ;;  %1928 = vmatprep.subr.bf16.mxu1 %v4710_v36  ;;  %v4574_v43 = vcombine.high %v385_v31, %v389_v32  ;;  %v4573_v45 = vcombine.low %v385_v31, %v389_v32  ;;  %v150_v29 = vrot.slane %v133_v23, %v5783_v25 }
  0x8a   :  { %v517_v34 = vld [vmem:[#allocation8 + $0x720] sm:$0xff]  ;;  %1888 = vmatpush2.bf16.msra.mxu0 %v4581_v37 }
  0x8b   :  { %v377_v39 = vld [vmem:[#allocation8 + $0x2c0] sm:$0xff]  ;;  %v4702_v44 = vcombine.high %v513_v33, %v517_v34  ;;  %1929 = vmatpush2.bf16.msra.mxu1 %v4709_v38  ;;  %v4701_v46 = vcombine.low %v513_v33, %v517_v34  ;;  %1889 = vmatprep.subr.bf16.mxu0 %v4574_v43 }
  0x8c   :  { %v381_v40 = vld [vmem:[#allocation8 + $0x2e0] sm:$0xff] }
  0x8d   :  { %v505_v41 = vld [vmem:[#allocation8 + $0x6c0] sm:$0xff]  ;;  %1930 = vmatprep.subr.bf16.mxu1 %v4702_v44  ;;  %v4566_v51 = vcombine.high %v377_v39, %v381_v40  ;;  %v4565_v53 = vcombine.low %v377_v39, %v381_v40  ;;  %v338_v44 = vld [vmem:[#allocation8 + $0x188] sm:$0xff] }
  0x8e   :  { %v509_v42 = vld [vmem:[#allocation8 + $0x6e0] sm:$0xff]  ;;  %1890 = vmatpush2.bf16.msra.mxu0 %v4573_v45 }
  0x8f   :  { %v369_v47 = vld [vmem:[#allocation8 + $0x280] sm:$0xff]  ;;  %v4694_v52 = vcombine.high %v505_v41, %v509_v42  ;;  %1931 = vmatpush2.bf16.msra.mxu1 %v4701_v46  ;;  %v4693_v54 = vcombine.low %v505_v41, %v509_v42  ;;  %1891 = vmatprep.subr.bf16.mxu0 %v4566_v51 }
  0x90   :  { %v373_v48 = vld [vmem:[#allocation8 + $0x2a0] sm:$0xff] }
  0x91   :  { %v497_v49 = vld [vmem:[#allocation8 + $0x680] sm:$0xff]  ;;  %1932 = vmatprep.subr.bf16.mxu1 %v4694_v52  ;;  %v4558_v55 = vcombine.high %v369_v47, %v373_v48  ;;  %v4557_v57 = vcombine.low %v369_v47, %v373_v48  ;;  %v342_v48 = vld [vmem:[#allocation8 + $0x1a8] sm:$0xff] }
  0x92   :  { %v501_v50 = vld [vmem:[#allocation8 + $0x6a0] sm:$0xff]  ;;  %1892 = vmatpush2.bf16.msra.mxu0 %v4565_v53 }
  0x93   :  { %v4686_v56 = vcombine.high %v497_v49, %v501_v50  ;;  %1933 = vmatpush2.bf16.msra.mxu1 %v4693_v54  ;;  %v4685_v58 = vcombine.low %v497_v49, %v501_v50  ;;  %1893 = vmatprep.subr.bf16.mxu0 %v4558_v55  ;;  %v361_v59 = vld [vmem:[#allocation8 + $0x240] sm:$0xff]  ;;  %v466_v49 = vld [vmem:[#allocation8 + $0x588] sm:$0xff]  ;;  %v4528_v55 = vcombine.high %v338_v44, %v342_v48 }
  0x94   :  { %v365_v60 = vld [vmem:[#allocation8 + $0x260] sm:$0xff]  ;;  %v470_v50 = vld [vmem:[#allocation8 + $0x5a8] sm:$0xff] }
  0x95   :  { %1934 = vmatprep.subr.bf16.mxu1 %v4686_v56  ;;  %v489_v61 = vld [vmem:[#allocation8 + $0x640] sm:$0xff]  ;;  %v4550_v62 = vcombine.high %v361_v59, %v365_v60  ;;  %v4549_v0 = vcombine.low %v361_v59, %v365_v60  ;;  %v330_v54 = vld [vmem:[#allocation8 + $0x148] sm:$0xff]  ;;  %v4656_v56 = vcombine.high %v466_v49, %v470_v50  ;;  %v4527_v60 = vcombine.low %v338_v44, %v342_v48 }
  0x96   :  { %1894 = vmatpush2.bf16.msra.mxu0 %v4557_v57  ;;  %v493_v63 = vld [vmem:[#allocation8 + $0x660] sm:$0xff]  ;;  %v334_v57 = vld [vmem:[#allocation8 + $0x168] sm:$0xff] }
  0x97   :  { %1935 = vmatpush2.bf16.msra.mxu1 %v4685_v58  ;;  %v4677_v1 = vcombine.low %v489_v61, %v493_v63  ;;  %v4678_v2 = vcombine.high %v489_v61, %v493_v63  ;;  %1895 = vmatprep.subr.bf16.mxu0 %v4550_v62  ;;  %v353_v3 = vld [vmem:[#allocation8 + $0x200] sm:$0xff]  ;;  %v458_v58 = vld [vmem:[#allocation8 + $0x548] sm:$0xff]  ;;  %v4655_v61 = vcombine.low %v466_v49, %v470_v50 }
  0x98   :  { %v357_v4 = vld [vmem:[#allocation8 + $0x220] sm:$0xff]  ;;  %v462_v59 = vld [vmem:[#allocation8 + $0x568] sm:$0xff]  ;;  %v4520_v62 = vcombine.high %v330_v54, %v334_v57 }
  0x99   :  { %1936 = vmatprep.subr.bf16.mxu1 %v4678_v2  ;;  %v481_v5 = vld [vmem:[#allocation8 + $0x600] sm:$0xff]  ;;  %v4542_v6 = vcombine.high %v353_v3, %v357_v4  ;;  %v4541_v8 = vcombine.low %v353_v3, %v357_v4  ;;  %v4648_v63 = vcombine.high %v458_v58, %v462_v59  ;;  %v450_v2 = vld [vmem:[#allocation8 + $0x508] sm:$0xff]  ;;  %v4519_v4 = vcombine.low %v330_v54, %v334_v57 }
  0x9a   :  { %1896 = vmatpush2.bf16.msra.mxu0 %v4549_v0  ;;  %v485_v7 = vld [vmem:[#allocation8 + $0x620] sm:$0xff]  ;;  %v322_v0 = vld [vmem:[#allocation8 + $0x108] sm:$0xff] }
  0x9b   :  { %1937 = vmatpush2.bf16.msra.mxu1 %v4677_v1  ;;  %v4669_v9 = vcombine.low %v481_v5, %v485_v7  ;;  %v4670_v10 = vcombine.high %v481_v5, %v485_v7  ;;  %1897 = vmatprep.subr.bf16.mxu0 %v4542_v6  ;;  %v326_v1 = vld [vmem:[#allocation8 + $0x128] sm:$0xff]  ;;  %v4647_v5 = vcombine.low %v458_v58, %v462_v59 }
  0x9c   :  { %v454_v3 = vld [vmem:[#allocation8 + $0x528] sm:$0xff]  ;;  %v4512_v6 = vcombine.high %v322_v0, %v326_v1  ;;  %v4511_v12 = vcombine.low %v322_v0, %v326_v1 }
  0x9d   :  { %1938 = vmatprep.subr.bf16.mxu1 %v4670_v10  ;;  %v4640_v7 = vcombine.high %v450_v2, %v454_v3  ;;  %v442_v10 = vld [vmem:[#allocation8 + $0x4c8] sm:$0xff]  ;;  %v4639_v13 = vcombine.low %v450_v2, %v454_v3 }
  0x9e   :  { %1898 = vmatpush2.bf16.msra.mxu0 %v4541_v8  ;;  %v314_v8 = vld [vmem:[#allocation8 + $0xc8] sm:$0xff]  ;;  %v4632_v15 = vcombine.high %v442_v10, %v446_v11 }
  0x9f   :  { %1939 = vmatpush2.bf16.msra.mxu1 %v4669_v9  ;;  %1949 = vmatprep.subr.bf16.mxu0 %v4536_v14  ;;  %v318_v9 = vld [vmem:[#allocation8 + $0xe8] sm:$0xff] }
  0xa0   :  { %1990 = vmatprep.subr.bf16.mxu1 %v4664_v18  ;;  %v4504_v14 = vcombine.high %v314_v8, %v318_v9  ;;  %v434_v18 = vld [vmem:[#allocation8 + $0x488] sm:$0xff]  ;;  %v4503_v23 = vcombine.low %v314_v8, %v318_v9 }
  0xa1   :  { %v538_v48 = vld [vmem:[#allocation8 + $0x7c8] sm:$0xff] }
  0xa2   :  { %v542_v49 = vld [vmem:[#allocation8 + $0x7e8] sm:$0xff] }
  0xa3   :  { %v402_v57 = vld [vmem:[#allocation8 + $0x388] sm:$0xff] }
  0xa4   :  { %v406_v58 = vld [vmem:[#allocation8 + $0x3a8] sm:$0xff] }
  0xa5   :  { %v530_v59 = vld [vmem:[#allocation8 + $0x788] sm:$0xff] }
  0xa6   :  { %v394_v1 = vld [vmem:[#allocation8 + $0x348] sm:$0xff] }
  0xa7   :  { %v398_v2 = vld [vmem:[#allocation8 + $0x368] sm:$0xff] }
  0xa8   :  { %v522_v3 = vld [vmem:[#allocation8 + $0x748] sm:$0xff] }
  0xa9   :  { %v386_v9 = vld [vmem:[#allocation8 + $0x308] sm:$0xff] }
 0x121   :  { %v233_v30 = vpop.f32.mrf.mxu0 }
 0x122   :  { %v274_v31 = vpop.f32.mrf.mxu1  ;;  %v234_v32 = vadd.f32 %v233_v30, %v138_v26  ;;  %v4631_v26 = vcombine.low %v442_v10, %v446_v11  ;;  %v302_v30 = vld [vmem:[#allocation8 + $0x68] sm:$0xff] }
 0x123   :  { %v275_v33 = vadd.f32 %v274_v31, %v146_v27  ;;  %v235_v34 = vpop.f32.mrf.mxu0  ;;  %v426_v31 = vld [vmem:[#allocation8 + $0x448] sm:$0xff] }
 0x124   :  { %v276_v35 = vpop.f32.mrf.mxu1  ;;  %v236_v37 = vadd.f32 %v235_v34, %v142_v28  ;;  %v281_v39 = vmax.f32 %v234_v32, 0.0  ;;  %v4624_v28 = vcombine.high %v434_v18, %v438_v19  ;;  %v430_v32 = vld [vmem:[#allocation8 + $0x468] sm:$0xff]  ;;  %v4623_v34 = vcombine.low %v434_v18, %v438_v19 }
 0x125   :  { %v283_v36 = vmax.f32 %v275_v33, 0.0  ;;  %v277_v38 = vadd.f32 %v276_v35, %v150_v29  ;;  %v237_v40 = vpop.f32.mrf.mxu0  ;;  %v298_v29 = vld [vmem:[#allocation8 + $0x48] sm:$0xff] }
 0x126   :  { %v278_v41 = vpop.f32.mrf.mxu1  ;;  %v282_v42 = vmax.f32 %v236_v37, 0.0  ;;  %v5795_v53 = vpack.c.bf16 %v281_v39, %v281_v39  ;;  %v4488_v35 = vcombine.high %v298_v29, %v302_v30  ;;  %v290_v37 = vld [vmem:[#allocation8 + $0x8] sm:$0xff] }
 0x127   :  { %v284_v43 = vmax.f32 %v277_v38, 0.0  ;;  %v5789_v45 = vpack.c.bf16 %v283_v36, %v283_v36  ;;  %v238_v46 = vpop.f32.mrf.mxu0  ;;  %v4616_v36 = vcombine.high %v426_v31, %v430_v32  ;;  %v294_v38 = vld [vmem:[#allocation8 + $0x28] sm:$0xff]  ;;  %v4487_v41 = vcombine.low %v298_v29, %v302_v30 }
 0x128   :  { %v279_v47 = vpop.f32.mrf.mxu1  ;;  %v5791_v51 = vpack.c.bf16 %v282_v42, %v282_v42  ;;  %v418_v39 = vld [vmem:[#allocation8 + $0x408] sm:$0xff]  ;;  %v4615_v42 = vcombine.low %v426_v31, %v430_v32  ;;  %v4479_v50 = vcombine.low %v290_v37, %v294_v38 }
 0x129   :  { %v5793_v52 = vpack.c.bf16 %v284_v43, %v284_v43  ;;  %v422_v40 = vld [vmem:[#allocation8 + $0x428] sm:$0xff]  ;;  %v4480_v43 = vcombine.high %v290_v37, %v294_v38 }
 0x12a   :  { %1899 = vmatprep.mubr.bf16.mxu0 %v5791_v51  ;;  %v4608_v44 = vcombine.high %v418_v39, %v422_v40  ;;  %v410_v46 = vld [vmem:[#allocation8 + $0x3c8] sm:$0xff]  ;;  %v4607_v54 = vcombine.low %v418_v39, %v422_v40 }
 0x12b   :  { %1940 = vmatprep.mubr.bf16.mxu1 %v5793_v52  ;;  %1900 = vmatmul.mubr.bf16.vlgmr.msra.gmra.mxu0 %v5795_v53  ;;  %v414_v47 = vld [vmem:[#allocation8 + $0x3e8] sm:$0xff] }
 0x12c   :  { %1941 = vmatmul.mubr.bf16.vlgmr.msra.gmra.mxu1 %v5789_v45  ;;  %1950 = vmatpush1.bf16.msra.mxu0 %v4535_v16  ;;  %v306_v16 = vld [vmem:[#allocation8 + $0x88] sm:$0xff] }
 0x12d   :  { %1991 = vmatpush1.bf16.msra.mxu1 %v4663_v17  ;;  %1981 = vmatprep.mubr.bf16.mxu0 %v5791_v51  ;;  %v310_v17 = vld [vmem:[#allocation8 + $0xa8] sm:$0xff] }
 0x12e   :  { %2022 = vmatprep.mubr.bf16.mxu1 %v5793_v52  ;;  %1951 = vmatprep.subr.bf16.mxu0 %v4528_v55  ;;  %v4496_v27 = vcombine.high %v306_v16, %v310_v17  ;;  %v4495_v33 = vcombine.low %v306_v16, %v310_v17  ;;  %v4600_v55 = vcombine.high %v410_v46, %v414_v47  ;;  %v390_v10 = vld [vmem:[#allocation8 + $0x328] sm:$0xff] }
 0x12f   :  { %1992 = vmatprep.subr.bf16.mxu1 %v4656_v56  ;;  %v4728_v56 = vcombine.high %v538_v48, %v542_v49  ;;  %v514_v11 = vld [vmem:[#allocation8 + $0x708] sm:$0xff] }
 0x130   :  { %1952 = vmatpush1.bf16.msra.mxu0 %v4527_v60  ;;  %v534_v60 = vld [vmem:[#allocation8 + $0x7a8] sm:$0xff] }
 0x131   :  { %1993 = vmatpush1.bf16.msra.mxu1 %v4655_v61  ;;  %1953 = vmatprep.subr.bf16.mxu0 %v4520_v62  ;;  %v4599_v61 = vcombine.low %v410_v46, %v414_v47  ;;  %v4727_v62 = vcombine.low %v538_v48, %v542_v49  ;;  %v4720_v0 = vcombine.high %v530_v59, %v534_v60  ;;  %v378_v17 = vld [vmem:[#allocation8 + $0x2c8] sm:$0xff] }
 0x132   :  { %1994 = vmatprep.subr.bf16.mxu1 %v4648_v63  ;;  %v4592_v63 = vcombine.high %v402_v57, %v406_v58  ;;  %v382_v18 = vld [vmem:[#allocation8 + $0x2e8] sm:$0xff] }
 0x133   :  { %v506_v19 = vld [vmem:[#allocation8 + $0x6c8] sm:$0xff] }
 0x134   :  { %1954 = vmatpush1.bf16.msra.mxu0 %v4519_v4  ;;  %v526_v4 = vld [vmem:[#allocation8 + $0x768] sm:$0xff] }
 0x135   :  { %1995 = vmatpush1.bf16.msra.mxu1 %v4647_v5  ;;  %1955 = vmatprep.subr.bf16.mxu0 %v4512_v6  ;;  %v4591_v5 = vcombine.low %v402_v57, %v406_v58  ;;  %v4719_v6 = vcombine.low %v530_v59, %v534_v60  ;;  %v4712_v8 = vcombine.high %v522_v3, %v526_v4  ;;  %v370_v30 = vld [vmem:[#allocation8 + $0x288] sm:$0xff]  ;;  %v347_v58 = vld [vmem:[#allocation8 + $0x1d0] sm:$0xff] }
 0x136   :  { %1996 = vmatprep.subr.bf16.mxu1 %v4640_v7  ;;  %v4584_v7 = vcombine.high %v394_v1, %v398_v2  ;;  %v374_v31 = vld [vmem:[#allocation8 + $0x2a8] sm:$0xff]  ;;  %v351_v59 = vld [vmem:[#allocation8 + $0x1f0] sm:$0xff] }
 0x137   :  { %v498_v32 = vld [vmem:[#allocation8 + $0x688] sm:$0xff]  ;;  %v475_v60 = vld [vmem:[#allocation8 + $0x5d0] sm:$0xff] }
 0x138   :  { %1956 = vmatpush1.bf16.msra.mxu0 %v4511_v12  ;;  %v518_v12 = vld [vmem:[#allocation8 + $0x728] sm:$0xff] }
 0x139   :  { %1997 = vmatpush1.bf16.msra.mxu1 %v4639_v13  ;;  %1957 = vmatprep.subr.bf16.mxu0 %v4504_v14  ;;  %v4583_v13 = vcombine.low %v394_v1, %v398_v2  ;;  %v4711_v14 = vcombine.low %v522_v3, %v526_v4  ;;  %v4704_v16 = vcombine.high %v514_v11, %v518_v12  ;;  %v362_v38 = vld [vmem:[#allocation8 + $0x248] sm:$0xff]  ;;  %v339_v2 = vld [vmem:[#allocation8 + $0x190] sm:$0xff] }
 0x13a   :  { %1998 = vmatprep.subr.bf16.mxu1 %v4632_v15  ;;  %v4576_v15 = vcombine.high %v386_v9, %v390_v10  ;;  %v366_v39 = vld [vmem:[#allocation8 + $0x268] sm:$0xff]  ;;  %v343_v3 = vld [vmem:[#allocation8 + $0x1b0] sm:$0xff] }
 0x13b   :  { %v490_v40 = vld [vmem:[#allocation8 + $0x648] sm:$0xff]  ;;  %v467_v4 = vld [vmem:[#allocation8 + $0x590] sm:$0xff] }
 0x13c   :  { %1958 = vmatpush1.bf16.msra.mxu0 %v4503_v23  ;;  %v510_v23 = vld [vmem:[#allocation8 + $0x6e8] sm:$0xff] }
 0x13d   :  { %1999 = vmatpush1.bf16.msra.mxu1 %v4631_v26  ;;  %1959 = vmatprep.subr.bf16.mxu0 %v4496_v27  ;;  %v4575_v26 = vcombine.low %v386_v9, %v390_v10  ;;  %v4703_v27 = vcombine.low %v514_v11, %v518_v12  ;;  %v4696_v29 = vcombine.high %v506_v19, %v510_v23  ;;  %v354_v47 = vld [vmem:[#allocation8 + $0x208] sm:$0xff]  ;;  %v331_v10 = vld [vmem:[#allocation8 + $0x150] sm:$0xff] }
 0x13e   :  { %2000 = vmatprep.subr.bf16.mxu1 %v4624_v28  ;;  %v4568_v28 = vcombine.high %v378_v17, %v382_v18  ;;  %v358_v48 = vld [vmem:[#allocation8 + $0x228] sm:$0xff]  ;;  %v335_v11 = vld [vmem:[#allocation8 + $0x170] sm:$0xff] }
 0x13f   :  { %v482_v49 = vld [vmem:[#allocation8 + $0x608] sm:$0xff]  ;;  %v459_v12 = vld [vmem:[#allocation8 + $0x550] sm:$0xff] }
 0x140   :  { %1960 = vmatpush1.bf16.msra.mxu0 %v4495_v33  ;;  %v502_v33 = vld [vmem:[#allocation8 + $0x6a8] sm:$0xff] }
 0x141   :  { %2001 = vmatpush1.bf16.msra.mxu1 %v4623_v34  ;;  %1961 = vmatprep.subr.bf16.mxu0 %v4488_v35  ;;  %v4567_v34 = vcombine.low %v378_v17, %v382_v18  ;;  %v4695_v35 = vcombine.low %v506_v19, %v510_v23  ;;  %v4688_v37 = vcombine.high %v498_v32, %v502_v33  ;;  %v323_v18 = vld [vmem:[#allocation8 + $0x110] sm:$0xff] }
 0x142   :  { %2002 = vmatprep.subr.bf16.mxu1 %v4616_v36  ;;  %v4560_v36 = vcombine.high %v370_v30, %v374_v31  ;;  %v327_v19 = vld [vmem:[#allocation8 + $0x130] sm:$0xff] }
 0x143   :  { %v451_v23 = vld [vmem:[#allocation8 + $0x510] sm:$0xff] }
 0x144   :  { %1962 = vmatpush1.bf16.msra.mxu0 %v4487_v41  ;;  %v494_v41 = vld [vmem:[#allocation8 + $0x668] sm:$0xff] }
 0x145   :  { %2003 = vmatpush1.bf16.msra.mxu1 %v4615_v42  ;;  %1963 = vmatprep.subr.bf16.mxu0 %v4480_v43  ;;  %v4559_v42 = vcombine.low %v370_v30, %v374_v31  ;;  %v4687_v43 = vcombine.low %v498_v32, %v502_v33  ;;  %v4680_v46 = vcombine.high %v490_v40, %v494_v41  ;;  %v315_v31 = vld [vmem:[#allocation8 + $0xd0] sm:$0xff] }
 0x146   :  { %2004 = vmatprep.subr.bf16.mxu1 %v4608_v44  ;;  %v4552_v44 = vcombine.high %v362_v38, %v366_v39  ;;  %v319_v32 = vld [vmem:[#allocation8 + $0xf0] sm:$0xff] }
 0x147   :  { %v443_v33 = vld [vmem:[#allocation8 + $0x4d0] sm:$0xff] }
 0x148   :  { %1964 = vmatpush1.bf16.msra.mxu0 %v4479_v50  ;;  %v486_v50 = vld [vmem:[#allocation8 + $0x628] sm:$0xff] }
 0x149   :  { %2005 = vmatpush1.bf16.msra.mxu1 %v4607_v54  ;;  %1965 = vmatprep.subr.bf16.mxu0 %v4600_v55  ;;  %v4551_v54 = vcombine.low %v362_v38, %v366_v39  ;;  %v4679_v55 = vcombine.low %v490_v40, %v494_v41  ;;  %v4672_v57 = vcombine.high %v482_v49, %v486_v50  ;;  %v307_v39 = vld [vmem:[#allocation8 + $0x90] sm:$0xff] }
 0x14a   :  { %2006 = vmatprep.subr.bf16.mxu1 %v4728_v56  ;;  %v4544_v56 = vcombine.high %v354_v47, %v358_v48  ;;  %v311_v40 = vld [vmem:[#allocation8 + $0xb0] sm:$0xff] }
 0x14b   :  { %v435_v41 = vld [vmem:[#allocation8 + $0x490] sm:$0xff] }
 0x14c   :  { %1966 = vmatpush2.bf16.msra.mxu0 %v4599_v61  ;;  %v479_v61 = vld [vmem:[#allocation8 + $0x5f0] sm:$0xff] }
 0x14d   :  { %2007 = vmatpush2.bf16.msra.mxu1 %v4727_v62  ;;  %1967 = vmatprep.subr.bf16.mxu0 %v4592_v63  ;;  %v4543_v62 = vcombine.low %v354_v47, %v358_v48  ;;  %v4671_v63 = vcombine.low %v482_v49, %v486_v50  ;;  %v4666_v1 = vcombine.high %v475_v60, %v479_v61  ;;  %v299_v48 = vld [vmem:[#allocation8 + $0x50] sm:$0xff] }
 0x14e   :  { %2008 = vmatprep.subr.bf16.mxu1 %v4720_v0  ;;  %v4538_v0 = vcombine.high %v347_v58, %v351_v59  ;;  %v303_v49 = vld [vmem:[#allocation8 + $0x70] sm:$0xff] }
 0x14f   :  { %v427_v50 = vld [vmem:[#allocation8 + $0x450] sm:$0xff] }
 0x150   :  { %1968 = vmatpush2.bf16.msra.mxu0 %v4591_v5  ;;  %v471_v5 = vld [vmem:[#allocation8 + $0x5b0] sm:$0xff] }
 0x151   :  { %2009 = vmatpush2.bf16.msra.mxu1 %v4719_v6  ;;  %1969 = vmatprep.subr.bf16.mxu0 %v4584_v7  ;;  %v4537_v6 = vcombine.low %v347_v58, %v351_v59  ;;  %v4665_v7 = vcombine.low %v475_v60, %v479_v61  ;;  %v4658_v9 = vcombine.high %v467_v4, %v471_v5  ;;  %v291_v59 = vld [vmem:[#allocation8 + $0x10] sm:$0xff] }
 0x152   :  { %2010 = vmatprep.subr.bf16.mxu1 %v4712_v8  ;;  %v4530_v8 = vcombine.high %v339_v2, %v343_v3  ;;  %v295_v60 = vld [vmem:[#allocation8 + $0x30] sm:$0xff] }
 0x153   :  { %v419_v61 = vld [vmem:[#allocation8 + $0x410] sm:$0xff] }
 0x154   :  { %1970 = vmatpush2.bf16.msra.mxu0 %v4583_v13  ;;  %v463_v13 = vld [vmem:[#allocation8 + $0x570] sm:$0xff] }
 0x155   :  { %2011 = vmatpush2.bf16.msra.mxu1 %v4711_v14  ;;  %1971 = vmatprep.subr.bf16.mxu0 %v4576_v15  ;;  %v4529_v14 = vcombine.low %v339_v2, %v343_v3  ;;  %v4657_v15 = vcombine.low %v467_v4, %v471_v5  ;;  %v4650_v17 = vcombine.high %v459_v12, %v463_v13  ;;  %v411_v3 = vld [vmem:[#allocation8 + $0x3d0] sm:$0xff] }
 0x156   :  { %2012 = vmatprep.subr.bf16.mxu1 %v4704_v16  ;;  %v4522_v16 = vcombine.high %v331_v10, %v335_v11  ;;  %v415_v4 = vld [vmem:[#allocation8 + $0x3f0] sm:$0xff] }
 0x157   :  { %v539_v5 = vld [vmem:[#allocation8 + $0x7d0] sm:$0xff] }
 0x158   :  { %1972 = vmatpush2.bf16.msra.mxu0 %v4575_v26  ;;  %v455_v26 = vld [vmem:[#allocation8 + $0x530] sm:$0xff] }
 0x159   :  { %2013 = vmatpush2.bf16.msra.mxu1 %v4703_v27  ;;  %1973 = vmatprep.subr.bf16.mxu0 %v4568_v28  ;;  %v4521_v27 = vcombine.low %v331_v10, %v335_v11  ;;  %v4649_v28 = vcombine.low %v459_v12, %v463_v13  ;;  %v4642_v30 = vcombine.high %v451_v23, %v455_v26  ;;  %v403_v11 = vld [vmem:[#allocation8 + $0x390] sm:$0xff] }
 0x15a   :  { %2014 = vmatprep.subr.bf16.mxu1 %v4696_v29  ;;  %v4514_v29 = vcombine.high %v323_v18, %v327_v19  ;;  %v407_v12 = vld [vmem:[#allocation8 + $0x3b0] sm:$0xff] }
 0x15b   :  { %v531_v13 = vld [vmem:[#allocation8 + $0x790] sm:$0xff] }
 0x15c   :  { %1974 = vmatpush2.bf16.msra.mxu0 %v4567_v34  ;;  %v447_v34 = vld [vmem:[#allocation8 + $0x4f0] sm:$0xff] }
 0x15d   :  { %2015 = vmatpush2.bf16.msra.mxu1 %v4695_v35  ;;  %1975 = vmatprep.subr.bf16.mxu0 %v4560_v36  ;;  %v4513_v35 = vcombine.low %v323_v18, %v327_v19  ;;  %v4641_v36 = vcombine.low %v451_v23, %v455_v26  ;;  %v4634_v38 = vcombine.high %v443_v33, %v447_v34  ;;  %v395_v19 = vld [vmem:[#allocation8 + $0x350] sm:$0xff] }
 0x15e   :  { %2016 = vmatprep.subr.bf16.mxu1 %v4688_v37  ;;  %v4506_v37 = vcombine.high %v315_v31, %v319_v32  ;;  %v399_v23 = vld [vmem:[#allocation8 + $0x370] sm:$0xff] }
 0x15f   :  { %v523_v26 = vld [vmem:[#allocation8 + $0x750] sm:$0xff] }
 0x160   :  { %1976 = vmatpush2.bf16.msra.mxu0 %v4559_v42  ;;  %v439_v42 = vld [vmem:[#allocation8 + $0x4b0] sm:$0xff] }
 0x161   :  { %2017 = vmatpush2.bf16.msra.mxu1 %v4687_v43  ;;  %1977 = vmatprep.subr.bf16.mxu0 %v4552_v44  ;;  %v4505_v43 = vcombine.low %v315_v31, %v319_v32  ;;  %v4633_v44 = vcombine.low %v443_v33, %v447_v34  ;;  %v4626_v47 = vcombine.high %v435_v41, %v439_v42  ;;  %v387_v32 = vld [vmem:[#allocation8 + $0x310] sm:$0xff] }
 0x162   :  { %2018 = vmatprep.subr.bf16.mxu1 %v4680_v46  ;;  %v4498_v46 = vcombine.high %v307_v39, %v311_v40  ;;  %v391_v33 = vld [vmem:[#allocation8 + $0x330] sm:$0xff] }
 0x163   :  { %v515_v34 = vld [vmem:[#allocation8 + $0x710] sm:$0xff] }
 0x164   :  { %1978 = vmatpush2.bf16.msra.mxu0 %v4551_v54  ;;  %v431_v54 = vld [vmem:[#allocation8 + $0x470] sm:$0xff] }
 0x165   :  { %2019 = vmatpush2.bf16.msra.mxu1 %v4679_v55  ;;  %1979 = vmatprep.subr.bf16.mxu0 %v4544_v56  ;;  %v4497_v55 = vcombine.low %v307_v39, %v311_v40  ;;  %v4625_v56 = vcombine.low %v435_v41, %v439_v42  ;;  %v4618_v58 = vcombine.high %v427_v50, %v431_v54  ;;  %v379_v40 = vld [vmem:[#allocation8 + $0x2d0] sm:$0xff] }
 0x166   :  { %2020 = vmatprep.subr.bf16.mxu1 %v4672_v57  ;;  %v4490_v57 = vcombine.high %v299_v48, %v303_v49  ;;  %v383_v41 = vld [vmem:[#allocation8 + $0x2f0] sm:$0xff] }
 0x167   :  { %v507_v42 = vld [vmem:[#allocation8 + $0x6d0] sm:$0xff] }
 0x168   :  { %1980 = vmatpush2.bf16.msra.mxu0 %v4543_v62  ;;  %v423_v62 = vld [vmem:[#allocation8 + $0x430] sm:$0xff] }
 0x169   :  { %2021 = vmatpush2.bf16.msra.mxu1 %v4671_v63  ;;  %2031 = vmatprep.subr.bf16.mxu0 %v4538_v0  ;;  %v4489_v63 = vcombine.low %v299_v48, %v303_v49  ;;  %v4617_v0 = vcombine.low %v427_v50, %v431_v54  ;;  %v4610_v2 = vcombine.high %v419_v61, %v423_v62  ;;  %v371_v49 = vld [vmem:[#allocation8 + $0x290] sm:$0xff] }
 0x16a   :  { %2072 = vmatprep.subr.bf16.mxu1 %v4666_v1  ;;  %v4482_v1 = vcombine.high %v291_v59, %v295_v60  ;;  %v375_v50 = vld [vmem:[#allocation8 + $0x2b0] sm:$0xff] }
 0x16b   :  { %1982 = vmatmul.mubr.bf16.vlgmr.msra.gmra.mxu0 %v5795_v53  ;;  %v499_v54 = vld [vmem:[#allocation8 + $0x690] sm:$0xff] }
 0x16c   :  { %2023 = vmatmul.mubr.bf16.vlgmr.msra.gmra.mxu1 %v5789_v45  ;;  %2032 = vmatpush1.bf16.msra.mxu0 %v4537_v6  ;;  %v543_v6 = vld [vmem:[#allocation8 + $0x7f0] sm:$0xff] }
 0x16d   :  { %2063 = vmatprep.mubr.bf16.mxu0 %v5791_v51  ;;  %2073 = vmatpush1.bf16.msra.mxu1 %v4665_v7  ;;  %v4481_v7 = vcombine.low %v291_v59, %v295_v60  ;;  %v4730_v10 = vcombine.high %v539_v5, %v543_v6  ;;  %v363_v60 = vld [vmem:[#allocation8 + $0x250] sm:$0xff] }
 0x16e   :  { %2104 = vmatprep.mubr.bf16.mxu1 %v5793_v52  ;;  %2033 = vmatprep.subr.bf16.mxu0 %v4530_v8  ;;  %v4609_v8 = vcombine.low %v419_v61, %v423_v62  ;;  %v367_v61 = vld [vmem:[#allocation8 + $0x270] sm:$0xff] }
 0x16f   :  { %2074 = vmatprep.subr.bf16.mxu1 %v4658_v9  ;;  %v4602_v9 = vcombine.high %v411_v3, %v415_v4  ;;  %v491_v62 = vld [vmem:[#allocation8 + $0x650] sm:$0xff] }
 0x170   :  { %2034 = vmatpush1.bf16.msra.mxu0 %v4529_v14  ;;  %v535_v14 = vld [vmem:[#allocation8 + $0x7b0] sm:$0xff] }
 0x171   :  { %2075 = vmatpush1.bf16.msra.mxu1 %v4657_v15  ;;  %2035 = vmatprep.subr.bf16.mxu0 %v4522_v16  ;;  %v4601_v15 = vcombine.low %v411_v3, %v415_v4  ;;  %v4729_v16 = vcombine.low %v539_v5, %v543_v6  ;;  %v4722_v18 = vcombine.high %v531_v13, %v535_v14  ;;  %v355_v4 = vld [vmem:[#allocation8 + $0x210] sm:$0xff] }
 0x172   :  { %2076 = vmatprep.subr.bf16.mxu1 %v4650_v17  ;;  %v4594_v17 = vcombine.high %v403_v11, %v407_v12  ;;  %v359_v5 = vld [vmem:[#allocation8 + $0x230] sm:$0xff] }
 0x173   :  { %v483_v6 = vld [vmem:[#allocation8 + $0x610] sm:$0xff] }
 0x174   :  { %2036 = vmatpush1.bf16.msra.mxu0 %v4521_v27  ;;  %v527_v27 = vld [vmem:[#allocation8 + $0x770] sm:$0xff] }
 0x175   :  { %2077 = vmatpush1.bf16.msra.mxu1 %v4649_v28  ;;  %2037 = vmatprep.subr.bf16.mxu0 %v4514_v29  ;;  %v4593_v28 = vcombine.low %v403_v11, %v407_v12  ;;  %v4721_v29 = vcombine.low %v531_v13, %v535_v14  ;;  %v4714_v31 = vcombine.high %v523_v26, %v527_v27  ;;  %v348_v12 = vld [vmem:[#allocation8 + $0x1d8] sm:$0xff] }
 0x176   :  { %2078 = vmatprep.subr.bf16.mxu1 %v4642_v30  ;;  %v4586_v30 = vcombine.high %v395_v19, %v399_v23  ;;  %v352_v13 = vld [vmem:[#allocation8 + $0x1f8] sm:$0xff] }
 0x177   :  { %v476_v14 = vld [vmem:[#allocation8 + $0x5d8] sm:$0xff] }
 0x178   :  { %2038 = vmatpush1.bf16.msra.mxu0 %v4513_v35  ;;  %v519_v35 = vld [vmem:[#allocation8 + $0x730] sm:$0xff] }
 0x179   :  { %2079 = vmatpush1.bf16.msra.mxu1 %v4641_v36  ;;  %2039 = vmatprep.subr.bf16.mxu0 %v4506_v37  ;;  %v4585_v36 = vcombine.low %v395_v19, %v399_v23  ;;  %v4713_v37 = vcombine.low %v523_v26, %v527_v27  ;;  %v4706_v39 = vcombine.high %v515_v34, %v519_v35  ;;  %v340_v23 = vld [vmem:[#allocation8 + $0x198] sm:$0xff] }
 0x17a   :  { %2080 = vmatprep.subr.bf16.mxu1 %v4634_v38  ;;  %v4578_v38 = vcombine.high %v387_v32, %v391_v33  ;;  %v344_v26 = vld [vmem:[#allocation8 + $0x1b8] sm:$0xff]  ;;  %v4539_v27 = vcombine.low %v348_v12, %v352_v13 }
 0x17c   :  { %2040 = vmatpush1.bf16.msra.mxu0 %v4505_v43  ;;  %v511_v43 = vld [vmem:[#allocation8 + $0x6f0] sm:$0xff] }
 0x17d   :  { %2081 = vmatpush1.bf16.msra.mxu1 %v4633_v44  ;;  %2041 = vmatprep.subr.bf16.mxu0 %v4498_v46  ;;  %v4577_v44 = vcombine.low %v387_v32, %v391_v33  ;;  %v4705_v46 = vcombine.low %v515_v34, %v519_v35  ;;  %v4698_v48 = vcombine.high %v507_v42, %v511_v43  ;;  %v332_v32 = vld [vmem:[#allocation8 + $0x158] sm:$0xff] }
 0x17e   :  { %2082 = vmatprep.subr.bf16.mxu1 %v4626_v47  ;;  %v4570_v47 = vcombine.high %v379_v40, %v383_v41  ;;  %v336_v33 = vld [vmem:[#allocation8 + $0x178] sm:$0xff] }
 0x17f   :  { %v460_v35 = vld [vmem:[#allocation8 + $0x558] sm:$0xff] }
 0x180   :  { %2042 = vmatpush1.bf16.msra.mxu0 %v4497_v55  ;;  %v503_v55 = vld [vmem:[#allocation8 + $0x6b0] sm:$0xff] }
 0x181   :  { %2083 = vmatpush1.bf16.msra.mxu1 %v4625_v56  ;;  %2043 = vmatprep.subr.bf16.mxu0 %v4490_v57  ;;  %v4569_v56 = vcombine.low %v379_v40, %v383_v41  ;;  %v4697_v57 = vcombine.low %v507_v42, %v511_v43  ;;  %v4690_v59 = vcombine.high %v499_v54, %v503_v55  ;;  %v324_v41 = vld [vmem:[#allocation8 + $0x118] sm:$0xff] }
 0x182   :  { %2084 = vmatprep.subr.bf16.mxu1 %v4618_v58  ;;  %v4562_v58 = vcombine.high %v371_v49, %v375_v50  ;;  %v328_v42 = vld [vmem:[#allocation8 + $0x138] sm:$0xff] }
 0x183   :  { %v452_v43 = vld [vmem:[#allocation8 + $0x518] sm:$0xff] }
 0x184   :  { %2044 = vmatpush1.bf16.msra.mxu0 %v4489_v63  ;;  %v495_v63 = vld [vmem:[#allocation8 + $0x670] sm:$0xff] }
 0x185   :  { %2085 = vmatpush1.bf16.msra.mxu1 %v4617_v0  ;;  %2045 = vmatprep.subr.bf16.mxu0 %v4482_v1  ;;  %v4561_v0 = vcombine.low %v371_v49, %v375_v50  ;;  %v4689_v1 = vcombine.low %v499_v54, %v503_v55  ;;  %v4682_v3 = vcombine.high %v491_v62, %v495_v63  ;;  %v316_v49 = vld [vmem:[#allocation8 + $0xd8] sm:$0xff] }
 0x186   :  { %2086 = vmatprep.subr.bf16.mxu1 %v4610_v2  ;;  %v4554_v2 = vcombine.high %v363_v60, %v367_v61  ;;  %v320_v50 = vld [vmem:[#allocation8 + $0xf8] sm:$0xff] }
 0x187   :  { %v444_v54 = vld [vmem:[#allocation8 + $0x4d8] sm:$0xff] }
 0x188   :  { %2046 = vmatpush1.bf16.msra.mxu0 %v4481_v7  ;;  %v487_v7 = vld [vmem:[#allocation8 + $0x630] sm:$0xff]  ;;  %v448_v55 = vld [vmem:[#allocation8 + $0x4f8] sm:$0xff] }
 0x189   :  { %2087 = vmatpush1.bf16.msra.mxu1 %v4609_v8  ;;  %2047 = vmatprep.subr.bf16.mxu0 %v4602_v9  ;;  %v4553_v8 = vcombine.low %v363_v60, %v367_v61  ;;  %v4681_v9 = vcombine.low %v491_v62, %v495_v63  ;;  %v4674_v11 = vcombine.high %v483_v6, %v487_v7  ;;  %v312_v60 = vld [vmem:[#allocation8 + $0xb8] sm:$0xff] }
 0x18a   :  { %2088 = vmatprep.subr.bf16.mxu1 %v4730_v10  ;;  %v4546_v10 = vcombine.high %v355_v4, %v359_v5  ;;  %v436_v61 = vld [vmem:[#allocation8 + $0x498] sm:$0xff]  ;;  %v4507_v63 = vcombine.low %v316_v49, %v320_v50 }
 0x18b   :  { %v440_v62 = vld [vmem:[#allocation8 + $0x4b8] sm:$0xff] }
 0x18c   :  { %2048 = vmatpush2.bf16.msra.mxu0 %v4601_v15  ;;  %v480_v15 = vld [vmem:[#allocation8 + $0x5f8] sm:$0xff] }
 0x18d   :  { %2089 = vmatpush2.bf16.msra.mxu1 %v4729_v16  ;;  %2049 = vmatprep.subr.bf16.mxu0 %v4594_v17  ;;  %v4545_v16 = vcombine.low %v355_v4, %v359_v5  ;;  %v4673_v17 = vcombine.low %v483_v6, %v487_v7  ;;  %v4668_v19 = vcombine.high %v476_v14, %v480_v15  ;;  %v304_v4 = vld [vmem:[#allocation8 + $0x78] sm:$0xff] }
 0x18e   :  { %2090 = vmatprep.subr.bf16.mxu1 %v4722_v18  ;;  %v4540_v18 = vcombine.high %v348_v12, %v352_v13  ;;  %v428_v5 = vld [vmem:[#allocation8 + $0x458] sm:$0xff] }
 0x18f   :  { %v432_v6 = vld [vmem:[#allocation8 + $0x478] sm:$0xff] }
 0x190   :  { %2050 = vmatpush2.bf16.msra.mxu0 %v4593_v28  ;;  %v468_v28 = vld [vmem:[#allocation8 + $0x598] sm:$0xff] }
 0x191   :  { %2091 = vmatpush2.bf16.msra.mxu1 %v4721_v29  ;;  %2051 = vmatprep.subr.bf16.mxu0 %v4586_v30  ;;  %v472_v29 = vld [vmem:[#allocation8 + $0x5b8] sm:$0xff]  ;;  %v4667_v30 = vcombine.low %v476_v14, %v480_v15 }
 0x192   :  { %2092 = vmatprep.subr.bf16.mxu1 %v4714_v31  ;;  %v4532_v31 = vcombine.high %v340_v23, %v344_v26  ;;  %v4660_v34 = vcombine.high %v468_v28, %v472_v29  ;;  %v296_v12 = vld [vmem:[#allocation8 + $0x38] sm:$0xff] }
 0x193   :  { %v420_v13 = vld [vmem:[#allocation8 + $0x418] sm:$0xff] }
 0x194   :  { %2052 = vmatpush2.bf16.msra.mxu0 %v4585_v36  ;;  %v464_v36 = vld [vmem:[#allocation8 + $0x578] sm:$0xff] }
 0x195   :  { %2093 = vmatpush2.bf16.msra.mxu1 %v4713_v37  ;;  %2053 = vmatprep.subr.bf16.mxu0 %v4578_v38  ;;  %v4531_v37 = vcombine.low %v340_v23, %v344_v26  ;;  %v4659_v38 = vcombine.low %v468_v28, %v472_v29  ;;  %v4652_v40 = vcombine.high %v460_v35, %v464_v36  ;;  %v424_v14 = vld [vmem:[#allocation8 + $0x438] sm:$0xff] }
 0x196   :  { %2094 = vmatprep.subr.bf16.mxu1 %v4706_v39  ;;  %v4524_v39 = vcombine.high %v332_v32, %v336_v33  ;;  %v416_v23 = vld [vmem:[#allocation8 + $0x3f8] sm:$0xff]  ;;  %v4611_v29 = vcombine.low %v420_v13, %v424_v14 }
 0x197   :  { %v540_v26 = vld [vmem:[#allocation8 + $0x7d8] sm:$0xff] }
 0x198   :  { %2054 = vmatpush2.bf16.msra.mxu0 %v4577_v44  ;;  %v456_v44 = vld [vmem:[#allocation8 + $0x538] sm:$0xff] }
 0x199   :  { %2095 = vmatpush2.bf16.msra.mxu1 %v4705_v46  ;;  %2055 = vmatprep.subr.bf16.mxu0 %v4570_v47  ;;  %v4523_v46 = vcombine.low %v332_v32, %v336_v33  ;;  %v4651_v47 = vcombine.low %v460_v35, %v464_v36  ;;  %v404_v32 = vld [vmem:[#allocation8 + $0x398] sm:$0xff] }
 0x19a   :  { %2096 = vmatprep.subr.bf16.mxu1 %v4698_v48  ;;  %v4516_v48 = vcombine.high %v324_v41, %v328_v42  ;;  %v408_v33 = vld [vmem:[#allocation8 + $0x3b8] sm:$0xff] }
 0x19b   :  { %v536_v35 = vld [vmem:[#allocation8 + $0x7b8] sm:$0xff] }
 0x19c   :  { %2056 = vmatpush2.bf16.msra.mxu0 %v4569_v56  ;;  %v4643_v56 = vcombine.low %v452_v43, %v456_v44 }
 0x19d   :  { %2097 = vmatpush2.bf16.msra.mxu1 %v4697_v57  ;;  %2057 = vmatprep.subr.bf16.mxu0 %v4562_v58  ;;  %v4508_v57 = vcombine.high %v316_v49, %v320_v50  ;;  %v4636_v58 = vcombine.high %v444_v54, %v448_v55  ;;  %v392_v49 = vld [vmem:[#allocation8 + $0x338] sm:$0xff] }
 0x19e   :  { %2098 = vmatprep.subr.bf16.mxu1 %v4690_v59  ;;  %v308_v59 = vld [vmem:[#allocation8 + $0x98] sm:$0xff] }
 0x19f   :  { %v4499_v7 = vcombine.low %v308_v59, %v312_v60  ;;  %v516_v50 = vld [vmem:[#allocation8 + $0x718] sm:$0xff] }
 0x1a0   :  { %2058 = vmatpush2.bf16.msra.mxu0 %v4561_v0  ;;  %v4635_v0 = vcombine.low %v444_v54, %v448_v55  ;;  %v520_v54 = vld [vmem:[#allocation8 + $0x738] sm:$0xff] }
 0x1a1   :  { %2099 = vmatpush2.bf16.msra.mxu1 %v4689_v1  ;;  %2059 = vmatprep.subr.bf16.mxu0 %v4554_v2  ;;  %v4500_v1 = vcombine.high %v308_v59, %v312_v60  ;;  %v4628_v2 = vcombine.high %v436_v61, %v440_v62  ;;  %v384_v59 = vld [vmem:[#allocation8 + $0x2f8] sm:$0xff] }
 0x1a2   :  { %2100 = vmatprep.subr.bf16.mxu1 %v4682_v3  ;;  %v300_v3 = vld [vmem:[#allocation8 + $0x58] sm:$0xff] }
 0x1a3   :  { %v4491_v15 = vcombine.low %v300_v3, %v304_v4  ;;  %v508_v60 = vld [vmem:[#allocation8 + $0x6d8] sm:$0xff] }
 0x1a4   :  { %2060 = vmatpush2.bf16.msra.mxu0 %v4553_v8  ;;  %v4627_v8 = vcombine.low %v436_v61, %v440_v62  ;;  %v512_v61 = vld [vmem:[#allocation8 + $0x6f8] sm:$0xff] }
 0x1a5   :  { %2101 = vmatpush2.bf16.msra.mxu1 %v4681_v9  ;;  %2061 = vmatprep.subr.bf16.mxu0 %v4546_v10  ;;  %v4492_v9 = vcombine.high %v300_v3, %v304_v4  ;;  %v4620_v10 = vcombine.high %v428_v5, %v432_v6  ;;  %v376_v3 = vld [vmem:[#allocation8 + $0x2b8] sm:$0xff] }
 0x1a6   :  { %2102 = vmatprep.subr.bf16.mxu1 %v4674_v11  ;;  %v292_v11 = vld [vmem:[#allocation8 + $0x18] sm:$0xff] }
 0x1a7   :  { %v4483_v28 = vcombine.low %v292_v11, %v296_v12  ;;  %v500_v4 = vld [vmem:[#allocation8 + $0x698] sm:$0xff] }
 0x1a8   :  { %2062 = vmatpush2.bf16.msra.mxu0 %v4545_v16  ;;  %v4619_v16 = vcombine.low %v428_v5, %v432_v6  ;;  %v504_v5 = vld [vmem:[#allocation8 + $0x6b8] sm:$0xff] }
 0x1a9   :  { %2103 = vmatpush2.bf16.msra.mxu1 %v4673_v17  ;;  %2113 = vmatprep.subr.bf16.mxu0 %v4540_v18  ;;  %v4484_v17 = vcombine.high %v292_v11, %v296_v12  ;;  %v4612_v18 = vcombine.high %v420_v13, %v424_v14  ;;  %v368_v11 = vld [vmem:[#allocation8 + $0x278] sm:$0xff] }
 0x1aa   :  { %2154 = vmatprep.subr.bf16.mxu1 %v4668_v19  ;;  %v412_v19 = vld [vmem:[#allocation8 + $0x3d8] sm:$0xff] }
 0x1ab   :  { %2064 = vmatmul.mubr.bf16.vlgmr.msra.gmra.mxu0 %v5795_v53  ;;  %v4603_v36 = vcombine.low %v412_v19, %v416_v23  ;;  %v492_v12 = vld [vmem:[#allocation8 + $0x658] sm:$0xff] }
 0x1ac   :  { %2105 = vmatmul.mubr.bf16.vlgmr.msra.gmra.mxu1 %v5789_v45  ;;  %2114 = vmatpush1.bf16.msra.mxu0 %v4539_v27  ;;  %v544_v27 = vld [vmem:[#allocation8 + $0x7f8] sm:$0xff] }
 0x1ad   :  { %2145 = vmatprep.mubr.bf16.mxu0 %v5791_v51  ;;  %2155 = vmatpush1.bf16.msra.mxu1 %v4667_v30  ;;  %v4644_v51 = vcombine.high %v452_v43, %v456_v44  ;;  %v4604_v30 = vcombine.high %v412_v19, %v416_v23  ;;  %v528_v43 = vld [vmem:[#allocation8 + $0x778] sm:$0xff]  ;;  %v4595_v44 = vcombine.low %v404_v32, %v408_v33 }
 0x1ae   :  { %2186 = vmatprep.mubr.bf16.mxu1 %v5793_v52  ;;  %2115 = vmatprep.subr.bf16.mxu0 %v4532_v31  ;;  %v4515_v52 = vcombine.low %v324_v41, %v328_v42  ;;  %v4732_v31 = vcombine.high %v540_v26, %v544_v27  ;;  %v400_v41 = vld [vmem:[#allocation8 + $0x378] sm:$0xff] }
 0x1af   :  { %2156 = vmatprep.subr.bf16.mxu1 %v4660_v34  ;;  %v532_v34 = vld [vmem:[#allocation8 + $0x798] sm:$0xff] }
 0x1b0   :  { %2116 = vmatpush1.bf16.msra.mxu0 %v4531_v37  ;;  %v4731_v37 = vcombine.low %v540_v26, %v544_v27  ;;  %v524_v42 = vld [vmem:[#allocation8 + $0x758] sm:$0xff] }
 0x1b1   :  { %2157 = vmatpush1.bf16.msra.mxu1 %v4659_v38  ;;  %2117 = vmatprep.subr.bf16.mxu0 %v4524_v39  ;;  %v4596_v38 = vcombine.high %v404_v32, %v408_v33  ;;  %v4724_v39 = vcombine.high %v532_v34, %v536_v35  ;;  %v496_v13 = vld [vmem:[#allocation8 + $0x678] sm:$0xff] }
 0x1b2   :  { %2158 = vmatprep.subr.bf16.mxu1 %v4652_v40  ;;  %v396_v40 = vld [vmem:[#allocation8 + $0x358] sm:$0xff] }
 0x1b3   :  { %v4587_v55 = vcombine.low %v396_v40, %v400_v41  ;;  %v360_v19 = vld [vmem:[#allocation8 + $0x238] sm:$0xff] }
 0x1b4   :  { %2118 = vmatpush1.bf16.msra.mxu0 %v4523_v46  ;;  %v4723_v46 = vcombine.low %v532_v34, %v536_v35  ;;  %v484_v23 = vld [vmem:[#allocation8 + $0x618] sm:$0xff] }
 0x1b5   :  { %2159 = vmatpush1.bf16.msra.mxu1 %v4651_v47  ;;  %2119 = vmatprep.subr.bf16.mxu0 %v4516_v48  ;;  %v4588_v47 = vcombine.high %v396_v40, %v400_v41  ;;  %v4716_v48 = vcombine.high %v524_v42, %v528_v43  ;;  %v488_v26 = vld [vmem:[#allocation8 + $0x638] sm:$0xff] }
 0x1b6   :  { %2160 = vmatprep.subr.bf16.mxu1 %v4644_v51  ;;  %v388_v51 = vld [vmem:[#allocation8 + $0x318] sm:$0xff]  ;;  %v4675_v32 = vcombine.low %v484_v23, %v488_v26 }
 0x1b7   :  { %v4579_v62 = vcombine.low %v388_v51, %v392_v49  ;;  %v5095_v33 = vld [vmem:[#allocation11 + $0xe4] ss:$16 sps:$4 sm:$0xff]   ;;  %v5093_v35 = vld [vmem:[#allocation11 + $0xe0] ss:$16 sps:$4 sm:$0xff]  }
 0x1b8   :  { %2120 = vmatpush1.bf16.msra.mxu0 %v4515_v52  ;;  %v4715_v52 = vcombine.low %v524_v42, %v528_v43  ;;  %v5107_v34 = vld [vmem:[#allocation11 + $0x2e4] ss:$16 sps:$4 sm:$0xff]   ;;  %v5096_v43 = vld [vmem:[#allocation11 + $0xc0] ss:$16 sps:$4 sm:$0xff]  }
 0x1b9   :  { %2161 = vmatpush1.bf16.msra.mxu1 %v4643_v56  ;;  %2121 = vmatprep.subr.bf16.mxu0 %v4508_v57  ;;  %v4580_v56 = vcombine.high %v388_v51, %v392_v49  ;;  %v4708_v57 = vcombine.high %v516_v50, %v520_v54  ;;  %v5113_v40 = vld [vmem:[#allocation11 + $0x2c4] ss:$16 sps:$4 sm:$0xff]  }
 0x1ba   :  { %2162 = vmatprep.subr.bf16.mxu1 %v4636_v58  ;;  %v380_v58 = vld [vmem:[#allocation8 + $0x2d8] sm:$0xff] }
 0x1bb   :  { %v4571_v6 = vcombine.low %v380_v58, %v384_v59  ;;  %v5119_v49 = vld [vmem:[#allocation11 + $0x2a4] ss:$16 sps:$4 sm:$0xff]  }
 0x1bc   :  { %2122 = vmatpush1.bf16.msra.mxu0 %v4507_v63  ;;  %v4707_v63 = vcombine.low %v516_v50, %v520_v54 }
 0x1bd   :  { %2163 = vmatpush1.bf16.msra.mxu1 %v4635_v0  ;;  %2123 = vmatprep.subr.bf16.mxu0 %v4500_v1  ;;  %v4572_v0 = vcombine.high %v380_v58, %v384_v59  ;;  %v4700_v1 = vcombine.high %v508_v60, %v512_v61  ;;  %v5125_v59 = vld [vmem:[#allocation11 + $0x284] ss:$16 sps:$4 sm:$0xff]  }
 0x1be   :  { %2164 = vmatprep.subr.bf16.mxu1 %v4628_v2  ;;  %v372_v2 = vld [vmem:[#allocation8 + $0x298] sm:$0xff] }
 0x1bf   :  { %v4563_v14 = vcombine.low %v372_v2, %v376_v3 }
 0x1c0   :  { %2124 = vmatpush1.bf16.msra.mxu0 %v4499_v7  ;;  %v4699_v7 = vcombine.low %v508_v60, %v512_v61  ;;  %v5102_v61 = vld [vmem:[#allocation11 + $0x80] ss:$16 sps:$4 sm:$0xff]  }
 0x1c1   :  { %2165 = vmatpush1.bf16.msra.mxu1 %v4627_v8  ;;  %2125 = vmatprep.subr.bf16.mxu0 %v4492_v9  ;;  %v4564_v8 = vcombine.high %v372_v2, %v376_v3  ;;  %v4692_v9 = vcombine.high %v500_v4, %v504_v5  ;;  %v5116_v2 = vld [vmem:[#allocation11 + $0x44] ss:$16 sps:$4 sm:$0xff]   ;;  %v5129_v3 = vld [vmem:[#allocation11 + $0x260] ss:$16 sps:$4 sm:$0xff]  }
 0x1c2   :  { %2166 = vmatprep.subr.bf16.mxu1 %v4620_v10  ;;  %v364_v10 = vld [vmem:[#allocation8 + $0x258] sm:$0xff] }
 0x1c3   :  { %v4555_v27 = vcombine.low %v364_v10, %v368_v11 }
 0x1c4   :  { %2126 = vmatpush1.bf16.msra.mxu0 %v4491_v15  ;;  %v4691_v15 = vcombine.low %v500_v4, %v504_v5  ;;  %v5137_v4 = vld [vmem:[#allocation11 + $0x244] ss:$16 sps:$4 sm:$0xff]   ;;  %v5114_v5 = vld [vmem:[#allocation11 + $0x40] ss:$16 sps:$4 sm:$0xff]  }
 0x1c5   :  { %2167 = vmatpush1.bf16.msra.mxu1 %v4619_v16  ;;  %2127 = vmatprep.subr.bf16.mxu0 %v4484_v17  ;;  %v4556_v16 = vcombine.high %v364_v10, %v368_v11  ;;  %v4684_v17 = vcombine.high %v492_v12, %v496_v13  ;;  %v5128_v10 = vld [vmem:[#allocation11 + $0x4] ss:$16 sps:$4 sm:$0xff]   ;;  %v5141_v11 = vld [vmem:[#allocation11 + $0x220] ss:$16 sps:$4 sm:$0xff]  }
 0x1c6   :  { %2168 = vmatprep.subr.bf16.mxu1 %v4612_v18  ;;  %v356_v18 = vld [vmem:[#allocation8 + $0x218] sm:$0xff] }
 0x1c8   :  { %2128 = vmatpush1.bf16.msra.mxu0 %v4483_v28  ;;  %v4683_v28 = vcombine.low %v492_v12, %v496_v13  ;;  %v5149_v12 = vld [vmem:[#allocation11 + $0x204] ss:$16 sps:$4 sm:$0xff]   ;;  %v5126_v13 = vld [vmem:[#allocation11] ss:$16 sps:$4 sm:$0xff]  }
 0x1c9   :  { %2169 = vmatpush1.bf16.msra.mxu1 %v4611_v29  ;;  %2129 = vmatprep.subr.bf16.mxu0 %v4604_v30  ;;  %v4548_v29 = vcombine.high %v356_v18, %v360_v19  ;;  %v4676_v30 = vcombine.high %v484_v23, %v488_v26  ;;  %v5161_v23 = vld [vmem:[#allocation11 + $0x3c4] ss:$16 sps:$4 sm:$0xff]   ;;  %v5138_v26 = vld [vmem:[#allocation11 + $0x1c0] ss:$16 sps:$4 sm:$0xff]  }
 0x1ca   :  { %2170 = vmatprep.subr.bf16.mxu1 %v4732_v31  ;;  %v4547_v31 = vcombine.low %v356_v18, %v360_v19  ;;  %v5140_v18 = vld [vmem:[#allocation11 + $0x1c4] ss:$16 sps:$4 sm:$0xff]   ;;  %v5153_v19 = vld [vmem:[#allocation11 + $0x3e0] ss:$16 sps:$4 sm:$0xff]  }
 0x1cc   :  { %2130 = vmatpush2.bf16.msra.mxu0 %v4603_v36  ;;  %v5811_v36 = vld [vmem:[#allocation10] sm:$0xff] }
 0x1cd   :  { %2171 = vmatpush2.bf16.msra.mxu1 %v4731_v37  ;;  %2131 = vmatprep.subr.bf16.mxu0 %v4596_v38  ;;  %v5098_v37 = vld [vmem:[#allocation11 + $0xc4] ss:$16 sps:$4 sm:$0xff]   ;;  %v5105_v38 = vld [vmem:[#allocation11 + $0x2e0] ss:$16 sps:$4 sm:$0xff]  }
 0x1ce   :  { %2172 = vmatprep.subr.bf16.mxu1 %v4724_v39  ;;  %v554_v39 = vrot.slane %v5811_v36, %v5780_v24 }
 0x1d0   :  { %2132 = vmatpush2.bf16.msra.mxu0 %v4595_v44 }
 0x1d1   :  { %2173 = vmatpush2.bf16.msra.mxu1 %v4723_v46  ;;  %2133 = vmatprep.subr.bf16.mxu0 %v4588_v47  ;;  %v5101_v47 = vld [vmem:[#allocation11 + $0xa4] ss:$16 sps:$4 sm:$0xff]  }
 0x1d2   :  { %2174 = vmatprep.subr.bf16.mxu1 %v4716_v48  ;;  %v5111_v48 = vld [vmem:[#allocation11 + $0x2c0] ss:$16 sps:$4 sm:$0xff]  }
 0x1d4   :  { %2134 = vmatpush2.bf16.msra.mxu0 %v4587_v55  ;;  %v5099_v55 = vld [vmem:[#allocation11 + $0xa0] ss:$16 sps:$4 sm:$0xff]  }
 0x1d5   :  { %2175 = vmatpush2.bf16.msra.mxu1 %v4715_v52  ;;  %2135 = vmatprep.subr.bf16.mxu0 %v4580_v56 }
 0x1d6   :  { %2176 = vmatprep.subr.bf16.mxu1 %v4708_v57  ;;  %v5117_v57 = vld [vmem:[#allocation11 + $0x2a0] ss:$16 sps:$4 sm:$0xff]  }
 0x1d8   :  { %2136 = vmatpush2.bf16.msra.mxu0 %v4579_v62  ;;  %v5110_v62 = vld [vmem:[#allocation11 + $0x64] ss:$16 sps:$4 sm:$0xff]  }
 0x1d9   :  { %2177 = vmatpush2.bf16.msra.mxu1 %v4707_v63  ;;  %2137 = vmatprep.subr.bf16.mxu0 %v4572_v0  ;;  %v5123_v63 = vld [vmem:[#allocation11 + $0x280] ss:$16 sps:$4 sm:$0xff]   ;;  %v5131_v0 = vld [vmem:[#allocation11 + $0x264] ss:$16 sps:$4 sm:$0xff]  }
 0x1da   :  { %2178 = vmatprep.subr.bf16.mxu1 %v4700_v1  ;;  %v5108_v1 = vld [vmem:[#allocation11 + $0x60] ss:$16 sps:$4 sm:$0xff]  }
 0x1dc   :  { %2138 = vmatpush2.bf16.msra.mxu0 %v4571_v6  ;;  %v5122_v6 = vld [vmem:[#allocation11 + $0x24] ss:$16 sps:$4 sm:$0xff]  }
 0x1dd   :  { %2179 = vmatpush2.bf16.msra.mxu1 %v4699_v7  ;;  %2139 = vmatprep.subr.bf16.mxu0 %v4564_v8  ;;  %v5135_v7 = vld [vmem:[#allocation11 + $0x240] ss:$16 sps:$4 sm:$0xff]   ;;  %v5143_v8 = vld [vmem:[#allocation11 + $0x224] ss:$16 sps:$4 sm:$0xff]  }
 0x1de   :  { %2180 = vmatprep.subr.bf16.mxu1 %v4692_v9  ;;  %v5120_v9 = vld [vmem:[#allocation11 + $0x20] ss:$16 sps:$4 sm:$0xff]  }
 0x1e0   :  { %2140 = vmatpush2.bf16.msra.mxu0 %v4563_v14  ;;  %v5134_v14 = vld [vmem:[#allocation11 + $0x1e4] ss:$16 sps:$4 sm:$0xff]  }
 0x1e1   :  { %2181 = vmatpush2.bf16.msra.mxu1 %v4691_v15  ;;  %2141 = vmatprep.subr.bf16.mxu0 %v4556_v16  ;;  %v5147_v15 = vld [vmem:[#allocation11 + $0x200] ss:$16 sps:$4 sm:$0xff]   ;;  %v5155_v16 = vld [vmem:[#allocation11 + $0x3e4] ss:$16 sps:$4 sm:$0xff]  }
 0x1e2   :  { %2182 = vmatprep.subr.bf16.mxu1 %v4684_v17  ;;  %v5132_v17 = vld [vmem:[#allocation11 + $0x1e0] ss:$16 sps:$4 sm:$0xff]  }
 0x1e4   :  { %2142 = vmatpush2.bf16.msra.mxu0 %v4555_v27  ;;  %v5146_v27 = vld [vmem:[#allocation11 + $0x1a4] ss:$16 sps:$4 sm:$0xff]  }
 0x1e5   :  { %2183 = vmatpush2.bf16.msra.mxu1 %v4683_v28  ;;  %2143 = vmatprep.subr.bf16.mxu0 %v4548_v29  ;;  %v5159_v28 = vld [vmem:[#allocation11 + $0x3c0] ss:$16 sps:$4 sm:$0xff]   ;;  %v5167_v29 = vld [vmem:[#allocation11 + $0x3a4] ss:$16 sps:$4 sm:$0xff]  }
 0x1e6   :  { %2184 = vmatprep.subr.bf16.mxu1 %v4676_v30  ;;  %v5144_v30 = vld [vmem:[#allocation11 + $0x1a0] ss:$16 sps:$4 sm:$0xff]  }
 0x1e8   :  { %2144 = vmatpush2.bf16.msra.mxu0 %v4547_v31  ;;  %v5152_v31 = vld [vmem:[#allocation11 + $0x184] ss:$16 sps:$4 sm:$0xff]  }
 0x1e9   :  { %2185 = vmatpush2.bf16.msra.mxu1 %v4675_v32  ;;  %3769 = vmatprep.subr.bf16.mxu0 %v5095_v33  ;;  %v5165_v32 = vld [vmem:[#allocation11 + $0x3a0] ss:$16 sps:$4 sm:$0xff]   ;;  %v5173_v33 = vld [vmem:[#allocation11 + $0x384] ss:$16 sps:$4 sm:$0xff]  }
 0x1ea   :  { %3810 = vmatprep.subr.bf16.mxu1 %v5107_v34  ;;  %v5150_v34 = vld [vmem:[#allocation11 + $0x180] ss:$16 sps:$4 sm:$0xff]  }
 0x1eb   :  { %2146 = vmatmul.mubr.bf16.vlgmr.msra.gmra.mxu0 %v5795_v53  ;;  %v5816_v41 = vpop.f32.mrf.mxu0 }
 0x1ec   :  { %v5818_v42 = vpop.f32.mrf.mxu1  ;;  %2187 = vmatmul.mubr.bf16.vlgmr.msra.gmra.mxu1 %v5789_v45  ;;  %3770 = vmatpush1.bf16.msra.mxu0 %v5093_v35  ;;  %v5104_v45 = vld [vmem:[#allocation11 + $0x84] ss:$16 sps:$4 sm:$0xff]  }
 0x1ed   :  { %v1903_v44 = vpop.f32.mrf.mxu0  ;;  %3771 = vmatprep.subr.bf16.mxu0 %v5098_v37  ;;  %3811 = vmatpush1.bf16.msra.mxu1 %v5105_v38  ;;  %v5158_v35 = vld [vmem:[#allocation11 + $0x164] ss:$16 sps:$4 sm:$0xff]   ;;  %v5171_v37 = vld [vmem:[#allocation11 + $0x380] ss:$16 sps:$4 sm:$0xff]  }
 0x1ee   :  { %v1944_v46 = vpop.f32.mrf.mxu1  ;;  %v1904_v51 = vadd.f32 %v1903_v44, %v554_v39  ;;  %3812 = vmatprep.subr.bf16.mxu1 %v5113_v40  ;;  %v5179_v38 = vld [vmem:[#allocation11 + $0x364] ss:$16 sps:$4 sm:$0xff]   ;;  %v5156_v39 = vld [vmem:[#allocation11 + $0x160] ss:$16 sps:$4 sm:$0xff]   ;;  %v550_v40 = vrot.slane %v5811_v36, %v5774_v21 }
 0x1ef   :  { %v1905_v50 = vpop.f32.mrf.mxu0  ;;  %v5177_v44 = vld [vmem:[#allocation11 + $0x360] ss:$16 sps:$4 sm:$0xff]  }
 0x1f0   :  { %v1946_v54 = vpop.f32.mrf.mxu1  ;;  %v1945_v53 = vadd.f32 %v1944_v46, %v1904_v51  ;;  %3772 = vmatpush1.bf16.msra.mxu0 %v5096_v43  ;;  %v5164_v43 = vld [vmem:[#allocation11 + $0x144] ss:$16 sps:$4 sm:$0xff]  }
 0x1f1   :  { %v1906_v52 = vpop.f32.mrf.mxu0  ;;  %3773 = vmatprep.subr.bf16.mxu0 %v5101_v47  ;;  %3813 = vmatpush1.bf16.msra.mxu1 %v5111_v48  ;;  %v5182_v46 = vld [vmem:[#allocation11 + $0x344] ss:$16 sps:$4 sm:$0xff]   ;;  %v5162_v47 = vld [vmem:[#allocation11 + $0x140] ss:$16 sps:$4 sm:$0xff]   ;;  %v1902_v48 = vadd.f32 %v5816_v41, %v550_v40 }
 0x1f2   :  { %v1947_v56 = vpop.f32.mrf.mxu1  ;;  %v2196_v58 = vmax.f32 %v1945_v53, 0.0  ;;  %3814 = vmatprep.subr.bf16.mxu1 %v5119_v49  ;;  %v5170_v51 = vld [vmem:[#allocation11 + $0x124] ss:$16 sps:$4 sm:$0xff]   ;;  %v5180_v49 = vld [vmem:[#allocation11 + $0x340] ss:$16 sps:$4 sm:$0xff]  }
 0x1f3   :  { %v5185_v50 = vld [vmem:[#allocation11 + $0x324] ss:$16 sps:$4 sm:$0xff]   ;;  %v5168_v54 = vld [vmem:[#allocation11 + $0x120] ss:$16 sps:$4 sm:$0xff]   ;;  %v1943_v53 = vadd.f32 %v5818_v42, %v1902_v48 }
 0x1f4   :  { %v5821_v60 = vpack.c.bf16 %v2196_v58, %v2196_v58  ;;  %3774 = vmatpush1.bf16.msra.mxu0 %v5099_v55  ;;  %v5176_v55 = vld [vmem:[#allocation11 + $0x104] ss:$16 sps:$4 sm:$0xff]   ;;  %v5183_v52 = vld [vmem:[#allocation11 + $0x320] ss:$16 sps:$4 sm:$0xff]  }
 0x1f5   :  { %3775 = vmatprep.subr.bf16.mxu0 %v5104_v45  ;;  %3815 = vmatpush1.bf16.msra.mxu1 %v5117_v57  ;;  %v5188_v56 = vld [vmem:[#allocation11 + $0x304] ss:$16 sps:$4 sm:$0xff]   ;;  %v5174_v45 = vld [vmem:[#allocation11 + $0x100] ss:$16 sps:$4 sm:$0xff]   ;;  %v2195_v57 = vmax.f32 %v1943_v53, 0.0 }
 0x1f6   :  { %3801 = vmatprep.mubr.bf16.mxu0 %v5821_v60  ;;  %3816 = vmatprep.subr.bf16.mxu1 %v5125_v59  ;;  %v5186_v41 = vld [vmem:[#allocation11 + $0x300] ss:$16 sps:$4 sm:$0xff]   ;;  %v5191_v58 = vld [vmem:[#allocation11 + $0x4e4] ss:$16 sps:$4 sm:$0xff]  }
 0x1f7   :  { %v5239_v59 = vld [vmem:[#allocation11 + $0x6e4] ss:$16 sps:$4 sm:$0xff]   ;;  %v5189_v42 = vld [vmem:[#allocation11 + $0x4e0] ss:$16 sps:$4 sm:$0xff]  }
 0x1f8   :  { %3776 = vmatpush1.bf16.msra.mxu0 %v5102_v61  ;;  %v558_v61 = vrot.slane %v5811_v36, %v5777_v22  ;;  %v5255_v40 = vld [vmem:[#allocation11 + $0x680] ss:$16 sps:$4 sm:$0xff]   ;;  %v5215_v48 = vld [vmem:[#allocation11 + $0x5e4] ss:$16 sps:$4 sm:$0xff]  }
 0x1f9   :  { %3777 = vmatprep.subr.bf16.mxu0 %v5110_v62  ;;  %3817 = vmatpush1.bf16.msra.mxu1 %v5123_v63  ;;  %v5830_v62 = vpack.c.bf16 %v2195_v57, %v2195_v57  ;;  %v5194_v63 = vld [vmem:[#allocation11 + $0x4c4] ss:$16 sps:$4 sm:$0xff]   ;;  %v5219_v57 = vld [vmem:[#allocation11 + $0x5a0] ss:$16 sps:$4 sm:$0xff]  }
 0x1fa   :  { %3818 = vmatprep.subr.bf16.mxu1 %v5131_v0  ;;  %v562_v0 = vrot.slane %v5811_v36, %v5783_v25  ;;  %v5275_v53 = vld [vmem:[#allocation11 + $0x624] ss:$16 sps:$4 sm:$0xff]  }
 0x1fc   :  { %3778 = vmatpush1.bf16.msra.mxu0 %v5108_v1 }
 0x1fd   :  { %3779 = vmatprep.subr.bf16.mxu0 %v5116_v2  ;;  %3819 = vmatpush1.bf16.msra.mxu1 %v5129_v3 }
 0x1fe   :  { %3820 = vmatprep.subr.bf16.mxu1 %v5137_v4  ;;  %v5192_v4 = vld [vmem:[#allocation11 + $0x4c0] ss:$16 sps:$4 sm:$0xff]  }
 0x200   :  { %3780 = vmatpush1.bf16.msra.mxu0 %v5114_v5 }
 0x201   :  { %3781 = vmatprep.subr.bf16.mxu0 %v5122_v6  ;;  %3821 = vmatpush1.bf16.msra.mxu1 %v5135_v7  ;;  %v5197_v7 = vld [vmem:[#allocation11 + $0x4a4] ss:$16 sps:$4 sm:$0xff]  }
 0x202   :  { %3822 = vmatprep.subr.bf16.mxu1 %v5143_v8 }
 0x204   :  { %3782 = vmatpush1.bf16.msra.mxu0 %v5120_v9 }
 0x205   :  { %3783 = vmatprep.subr.bf16.mxu0 %v5128_v10  ;;  %3823 = vmatpush1.bf16.msra.mxu1 %v5141_v11 }
 0x206   :  { %3824 = vmatprep.subr.bf16.mxu1 %v5149_v12 }
 0x208   :  { %3784 = vmatpush1.bf16.msra.mxu0 %v5126_v13  ;;  %v5195_v13 = vld [vmem:[#allocation11 + $0x4a0] ss:$16 sps:$4 sm:$0xff]  }
 0x209   :  { %3785 = vmatprep.subr.bf16.mxu0 %v5134_v14  ;;  %3825 = vmatpush1.bf16.msra.mxu1 %v5147_v15 }
 0x20a   :  { %3826 = vmatprep.subr.bf16.mxu1 %v5155_v16 }
 0x20c   :  { %3786 = vmatpush2.bf16.msra.mxu0 %v5132_v17  ;;  %v5200_v17 = vld [vmem:[#allocation11 + $0x484] ss:$16 sps:$4 sm:$0xff]  }
 0x20d   :  { %3787 = vmatprep.subr.bf16.mxu0 %v5140_v18  ;;  %3827 = vmatpush2.bf16.msra.mxu1 %v5153_v19 }
 0x20e   :  { %3828 = vmatprep.subr.bf16.mxu1 %v5161_v23  ;;  %v5198_v23 = vld [vmem:[#allocation11 + $0x480] ss:$16 sps:$4 sm:$0xff]  }
 0x210   :  { %3788 = vmatpush2.bf16.msra.mxu0 %v5138_v26  ;;  %v5237_v26 = vld [vmem:[#allocation11 + $0x6e0] ss:$16 sps:$4 sm:$0xff]  }
 0x211   :  { %3789 = vmatprep.subr.bf16.mxu0 %v5146_v27  ;;  %3829 = vmatpush2.bf16.msra.mxu1 %v5159_v28  ;;  %v5203_v28 = vld [vmem:[#allocation11 + $0x464] ss:$16 sps:$4 sm:$0xff]  }
 0x212   :  { %3830 = vmatprep.subr.bf16.mxu1 %v5167_v29  ;;  %v5245_v29 = vld [vmem:[#allocation11 + $0x6c4] ss:$16 sps:$4 sm:$0xff]  }
 0x214   :  { %3790 = vmatpush2.bf16.msra.mxu0 %v5144_v30  ;;  %v5201_v30 = vld [vmem:[#allocation11 + $0x460] ss:$16 sps:$4 sm:$0xff]  }
 0x215   :  { %3791 = vmatprep.subr.bf16.mxu0 %v5152_v31  ;;  %3831 = vmatpush2.bf16.msra.mxu1 %v5165_v32  ;;  %v5243_v31 = vld [vmem:[#allocation11 + $0x6c0] ss:$16 sps:$4 sm:$0xff]   ;;  %v5206_v32 = vld [vmem:[#allocation11 + $0x444] ss:$16 sps:$4 sm:$0xff]  }
 0x216   :  { %3832 = vmatprep.subr.bf16.mxu1 %v5173_v33  ;;  %v5251_v33 = vld [vmem:[#allocation11 + $0x6a4] ss:$16 sps:$4 sm:$0xff]  }
 0x218   :  { %3792 = vmatpush2.bf16.msra.mxu0 %v5150_v34  ;;  %v5204_v34 = vld [vmem:[#allocation11 + $0x440] ss:$16 sps:$4 sm:$0xff]  }
 0x219   :  { %3793 = vmatprep.subr.bf16.mxu0 %v5158_v35  ;;  %3833 = vmatpush2.bf16.msra.mxu1 %v5171_v37  ;;  %v5249_v35 = vld [vmem:[#allocation11 + $0x6a0] ss:$16 sps:$4 sm:$0xff]   ;;  %v5209_v37 = vld [vmem:[#allocation11 + $0x424] ss:$16 sps:$4 sm:$0xff]  }
 0x21a   :  { %3834 = vmatprep.subr.bf16.mxu1 %v5179_v38  ;;  %v5257_v38 = vld [vmem:[#allocation11 + $0x684] ss:$16 sps:$4 sm:$0xff]  }
 0x21c   :  { %3794 = vmatpush2.bf16.msra.mxu0 %v5156_v39  ;;  %v5207_v39 = vld [vmem:[#allocation11 + $0x420] ss:$16 sps:$4 sm:$0xff]  }
 0x21d   :  { %3795 = vmatprep.subr.bf16.mxu0 %v5164_v43  ;;  %3835 = vmatpush2.bf16.msra.mxu1 %v5177_v44  ;;  %v5212_v43 = vld [vmem:[#allocation11 + $0x404] ss:$16 sps:$4 sm:$0xff]  }
 0x21e   :  { %3836 = vmatprep.subr.bf16.mxu1 %v5182_v46  ;;  %v5263_v44 = vld [vmem:[#allocation11 + $0x664] ss:$16 sps:$4 sm:$0xff]   ;;  %v5210_v46 = vld [vmem:[#allocation11 + $0x400] ss:$16 sps:$4 sm:$0xff]  }
 0x220   :  { %3796 = vmatpush2.bf16.msra.mxu0 %v5162_v47  ;;  %v5261_v47 = vld [vmem:[#allocation11 + $0x660] ss:$16 sps:$4 sm:$0xff]  }
 0x221   :  { %3797 = vmatprep.subr.bf16.mxu0 %v5170_v51  ;;  %3837 = vmatpush2.bf16.msra.mxu1 %v5180_v49  ;;  %v5269_v51 = vld [vmem:[#allocation11 + $0x644] ss:$16 sps:$4 sm:$0xff]   ;;  %v5213_v49 = vld [vmem:[#allocation11 + $0x5e0] ss:$16 sps:$4 sm:$0xff]  }
 0x222   :  { %3838 = vmatprep.subr.bf16.mxu1 %v5185_v50  ;;  %v5267_v50 = vld [vmem:[#allocation11 + $0x640] ss:$16 sps:$4 sm:$0xff]  }
 0x224   :  { %3798 = vmatpush2.bf16.msra.mxu0 %v5168_v54  ;;  %v5218_v54 = vld [vmem:[#allocation11 + $0x5c4] ss:$16 sps:$4 sm:$0xff]  }
 0x225   :  { %3799 = vmatprep.subr.bf16.mxu0 %v5176_v55  ;;  %3839 = vmatpush2.bf16.msra.mxu1 %v5183_v52  ;;  %v5216_v55 = vld [vmem:[#allocation11 + $0x5c0] ss:$16 sps:$4 sm:$0xff]  }
 0x226   :  { %3840 = vmatprep.subr.bf16.mxu1 %v5188_v56  ;;  %v5273_v52 = vld [vmem:[#allocation11 + $0x620] ss:$16 sps:$4 sm:$0xff]   ;;  %v5221_v56 = vld [vmem:[#allocation11 + $0x5a4] ss:$16 sps:$4 sm:$0xff]  }
 0x228   :  { %3800 = vmatpush2.bf16.msra.mxu0 %v5174_v45  ;;  %v5281_v45 = vld [vmem:[#allocation11 + $0x604] ss:$16 sps:$4 sm:$0xff]  }
 0x229   :  { %3841 = vmatpush2.bf16.msra.mxu1 %v5186_v41  ;;  %3851 = vmatprep.subr.bf16.mxu0 %v5191_v58  ;;  %v5279_v41 = vld [vmem:[#allocation11 + $0x600] ss:$16 sps:$4 sm:$0xff]   ;;  %v5224_v58 = vld [vmem:[#allocation11 + $0x584] ss:$16 sps:$4 sm:$0xff]  }
 0x22a   :  { %3892 = vmatprep.subr.bf16.mxu1 %v5239_v59  ;;  %v5287_v59 = vld [vmem:[#allocation11 + $0x7e4] ss:$16 sps:$4 sm:$0xff]  }
 0x22b   :  { %v1983_v1 = vpop.f32.mrf.mxu0  ;;  %3802 = vmatmul.mubr.bf16.vlgmr.msra.gmra.mxu0 %v5830_v62 }
 0x22c   :  { %v2024_v2 = vpop.f32.mrf.mxu1  ;;  %v1984_v3 = vadd.f32 %v1983_v1, %v558_v61  ;;  %3852 = vmatpush1.bf16.msra.mxu0 %v5189_v42  ;;  %v5222_v61 = vld [vmem:[#allocation11 + $0x580] ss:$16 sps:$4 sm:$0xff]  }
 0x22d   :  { %v1985_v5 = vpop.f32.mrf.mxu0  ;;  %3853 = vmatprep.subr.bf16.mxu0 %v5194_v63  ;;  %v5285_v42 = vld [vmem:[#allocation11 + $0x7e0] ss:$16 sps:$4 sm:$0xff]   ;;  %v5227_v63 = vld [vmem:[#allocation11 + $0x564] ss:$16 sps:$4 sm:$0xff]  }
 0x22e   :  { %v2026_v6 = vpop.f32.mrf.mxu1  ;;  %v2025_v8 = vadd.f32 %v2024_v2, %v1984_v3  ;;  %v1986_v9 = vadd.f32 %v1985_v5, %v562_v0  ;;  %v5293_v0 = vld [vmem:[#allocation11 + $0x7c4] ss:$16 sps:$4 sm:$0xff]   ;;  %v5225_v1 = vld [vmem:[#allocation11 + $0x560] ss:$16 sps:$4 sm:$0xff]  }
 0x22f   :  { %v1987_v10 = vpop.f32.mrf.mxu0  ;;  %v5291_v2 = vld [vmem:[#allocation11 + $0x7c0] ss:$16 sps:$4 sm:$0xff]   ;;  %v5230_v3 = vld [vmem:[#allocation11 + $0x544] ss:$16 sps:$4 sm:$0xff]  }
 0x230   :  { %v2028_v11 = vpop.f32.mrf.mxu1  ;;  %v2027_v12 = vadd.f32 %v2026_v6, %v1986_v9  ;;  %3854 = vmatpush1.bf16.msra.mxu0 %v5192_v4  ;;  %v2197_v14 = vmax.f32 %v2025_v8, 0.0  ;;  %v5299_v4 = vld [vmem:[#allocation11 + $0x7a4] ss:$16 sps:$4 sm:$0xff]   ;;  %v5228_v5 = vld [vmem:[#allocation11 + $0x540] ss:$16 sps:$4 sm:$0xff]  }
 0x231   :  { %v1988_v15 = vpop.f32.mrf.mxu0  ;;  %3855 = vmatprep.subr.bf16.mxu0 %v5197_v7  ;;  %v5297_v6 = vld [vmem:[#allocation11 + $0x7a0] ss:$16 sps:$4 sm:$0xff]   ;;  %v5233_v7 = vld [vmem:[#allocation11 + $0x524] ss:$16 sps:$4 sm:$0xff]  }
 0x232   :  { %v2029_v16 = vpop.f32.mrf.mxu1  ;;  %v2198_v18 = vmax.f32 %v2027_v12, 0.0  ;;  %v5837_v27 = vpack.c.bf16 %v2197_v14, %v2197_v14  ;;  %v5305_v8 = vld [vmem:[#allocation11 + $0x784] ss:$16 sps:$4 sm:$0xff]   ;;  %v5231_v9 = vld [vmem:[#allocation11 + $0x520] ss:$16 sps:$4 sm:$0xff]  }
 0x233   :  { %v5303_v10 = vld [vmem:[#allocation11 + $0x780] ss:$16 sps:$4 sm:$0xff]   ;;  %v5236_v11 = vld [vmem:[#allocation11 + $0x504] ss:$16 sps:$4 sm:$0xff]   ;;  %v5242_v16 = vld [vmem:[#allocation11 + $0xec] ss:$16 sps:$4 sm:$0xff]  }
 0x234   :  { %v5835_v19 = vpack.c.bf16 %v2198_v18, %v2198_v18  ;;  %3856 = vmatpush1.bf16.msra.mxu0 %v5195_v13  ;;  %v5311_v12 = vld [vmem:[#allocation11 + $0x764] ss:$16 sps:$4 sm:$0xff]   ;;  %v565_v13 = vsub.s32 4, %v5771_v20  ;;  %v5234_v14 = vld [vmem:[#allocation11 + $0x500] ss:$16 sps:$4 sm:$0xff]   ;;  %v569_v18 = vsub.s32 5, %v5771_v20 }
 0x235   :  { %3857 = vmatprep.subr.bf16.mxu0 %v5200_v17  ;;  %v5309_v15 = vld [vmem:[#allocation11 + $0x760] ss:$16 sps:$4 sm:$0xff]   ;;  %v5317_v17 = vld [vmem:[#allocation11 + $0x744] ss:$16 sps:$4 sm:$0xff]  }
 0x236   :  { %3842 = vmatprep.mubr.bf16.mxu1 %v5835_v19 }
 0x237   :  { %3843 = vmatmul.mubr.bf16.vlgmr.msra.gmra.mxu1 %v5837_v27 }
 0x238   :  { %3858 = vmatpush1.bf16.msra.mxu0 %v5198_v23  ;;  %3893 = vmatpush1.bf16.msra.mxu1 %v5237_v26  ;;  %v566_v23 = vrot.slane %v5811_v36, %v565_v13  ;;  %v5315_v26 = vld [vmem:[#allocation11 + $0x740] ss:$16 sps:$4 sm:$0xff]   ;;  %v573_v13 = vsub.s32 6, %v5771_v20 }
 0x239   :  { %3859 = vmatprep.subr.bf16.mxu0 %v5203_v28  ;;  %3894 = vmatprep.subr.bf16.mxu1 %v5245_v29  ;;  %v5323_v28 = vld [vmem:[#allocation11 + $0x724] ss:$16 sps:$4 sm:$0xff]   ;;  %v570_v29 = vrot.slane %v5811_v36, %v569_v18  ;;  %v5326_v18 = vld [vmem:[#allocation11 + $0x12c] ss:$16 sps:$4 sm:$0xff]  }
 0x23c   :  { %3860 = vmatpush1.bf16.msra.mxu0 %v5201_v30  ;;  %3895 = vmatpush1.bf16.msra.mxu1 %v5243_v31 }
 0x23d   :  { %3861 = vmatprep.subr.bf16.mxu0 %v5206_v32  ;;  %3896 = vmatprep.subr.bf16.mxu1 %v5251_v33  ;;  %v5321_v33 = vld [vmem:[#allocation11 + $0x720] ss:$16 sps:$4 sm:$0xff]  }
 0x240   :  { %3862 = vmatpush1.bf16.msra.mxu0 %v5204_v34  ;;  %3897 = vmatpush1.bf16.msra.mxu1 %v5249_v35  ;;  %v5329_v35 = vld [vmem:[#allocation11 + $0x704] ss:$16 sps:$4 sm:$0xff]  }
 0x241   :  { %3863 = vmatprep.subr.bf16.mxu0 %v5209_v37  ;;  %3898 = vmatprep.subr.bf16.mxu1 %v5257_v38 }
 0x244   :  { %3864 = vmatpush1.bf16.msra.mxu0 %v5207_v39  ;;  %3899 = vmatpush1.bf16.msra.mxu1 %v5255_v40 }
 0x245   :  { %3865 = vmatprep.subr.bf16.mxu0 %v5212_v43  ;;  %3900 = vmatprep.subr.bf16.mxu1 %v5263_v44 }
 0x248   :  { %3866 = vmatpush1.bf16.msra.mxu0 %v5210_v46  ;;  %3901 = vmatpush1.bf16.msra.mxu1 %v5261_v47  ;;  %v5327_v46 = vld [vmem:[#allocation11 + $0x700] ss:$16 sps:$4 sm:$0xff]  }
 0x249   :  { %3867 = vmatprep.subr.bf16.mxu0 %v5215_v48  ;;  %3902 = vmatprep.subr.bf16.mxu1 %v5269_v51  ;;  %v5335_v51 = vld [vmem:[#allocation11 + $0x2ec] ss:$16 sps:$4 sm:$0xff]  }
 0x24c   :  { %3868 = vmatpush2.bf16.msra.mxu0 %v5213_v49  ;;  %3903 = vmatpush1.bf16.msra.mxu1 %v5267_v50 }
 0x24d   :  { %3869 = vmatprep.subr.bf16.mxu0 %v5218_v54  ;;  %3904 = vmatprep.subr.bf16.mxu1 %v5275_v53  ;;  %v5240_v53 = vld [vmem:[#allocation11 + $0xe8] ss:$16 sps:$4 sm:$0xff]  }
 0x250   :  { %3870 = vmatpush2.bf16.msra.mxu0 %v5216_v55  ;;  %3905 = vmatpush1.bf16.msra.mxu1 %v5273_v52  ;;  %v5248_v52 = vld [vmem:[#allocation11 + $0xcc] ss:$16 sps:$4 sm:$0xff]  }
 0x251   :  { %3871 = vmatprep.subr.bf16.mxu0 %v5221_v56  ;;  %3906 = vmatprep.subr.bf16.mxu1 %v5281_v45  ;;  %v5246_v56 = vld [vmem:[#allocation11 + $0xc8] ss:$16 sps:$4 sm:$0xff]   ;;  %v5254_v45 = vld [vmem:[#allocation11 + $0xac] ss:$16 sps:$4 sm:$0xff]  }
 0x254   :  { %3872 = vmatpush2.bf16.msra.mxu0 %v5219_v57  ;;  %3907 = vmatpush1.bf16.msra.mxu1 %v5279_v41  ;;  %v5252_v57 = vld [vmem:[#allocation11 + $0xa8] ss:$16 sps:$4 sm:$0xff]   ;;  %v5260_v41 = vld [vmem:[#allocation11 + $0x8c] ss:$16 sps:$4 sm:$0xff]  }
 0x255   :  { %3873 = vmatprep.subr.bf16.mxu0 %v5224_v58  ;;  %3908 = vmatprep.subr.bf16.mxu1 %v5287_v59  ;;  %v5258_v58 = vld [vmem:[#allocation11 + $0x88] ss:$16 sps:$4 sm:$0xff]   ;;  %v5266_v59 = vld [vmem:[#allocation11 + $0x6c] ss:$16 sps:$4 sm:$0xff]  }
 0x258   :  { %3874 = vmatpush2.bf16.msra.mxu0 %v5222_v61  ;;  %3909 = vmatpush2.bf16.msra.mxu1 %v5285_v42  ;;  %v5264_v61 = vld [vmem:[#allocation11 + $0x68] ss:$16 sps:$4 sm:$0xff]   ;;  %v5272_v42 = vld [vmem:[#allocation11 + $0x4c] ss:$16 sps:$4 sm:$0xff]  }
 0x259   :  { %3875 = vmatprep.subr.bf16.mxu0 %v5227_v63  ;;  %3910 = vmatprep.subr.bf16.mxu1 %v5293_v0  ;;  %v5270_v63 = vld [vmem:[#allocation11 + $0x48] ss:$16 sps:$4 sm:$0xff]   ;;  %v5278_v0 = vld [vmem:[#allocation11 + $0x2c] ss:$16 sps:$4 sm:$0xff]  }
 0x25c   :  { %3876 = vmatpush2.bf16.msra.mxu0 %v5225_v1  ;;  %3911 = vmatpush2.bf16.msra.mxu1 %v5291_v2  ;;  %v5284_v1 = vld [vmem:[#allocation11 + $0xc] ss:$16 sps:$4 sm:$0xff]   ;;  %v5282_v2 = vld [vmem:[#allocation11 + $0x8] ss:$16 sps:$4 sm:$0xff]  }
 0x25d   :  { %3877 = vmatprep.subr.bf16.mxu0 %v5230_v3  ;;  %3912 = vmatprep.subr.bf16.mxu1 %v5299_v4  ;;  %v5290_v3 = vld [vmem:[#allocation11 + $0x1ec] ss:$16 sps:$4 sm:$0xff]   ;;  %v5288_v4 = vld [vmem:[#allocation11 + $0x1e8] ss:$16 sps:$4 sm:$0xff]  }
 0x260   :  { %3878 = vmatpush2.bf16.msra.mxu0 %v5228_v5  ;;  %3913 = vmatpush2.bf16.msra.mxu1 %v5297_v6  ;;  %v5296_v5 = vld [vmem:[#allocation11 + $0x1cc] ss:$16 sps:$4 sm:$0xff]   ;;  %v5294_v6 = vld [vmem:[#allocation11 + $0x1c8] ss:$16 sps:$4 sm:$0xff]  }
 0x261   :  { %3879 = vmatprep.subr.bf16.mxu0 %v5233_v7  ;;  %3914 = vmatprep.subr.bf16.mxu1 %v5305_v8  ;;  %v5302_v7 = vld [vmem:[#allocation11 + $0x1ac] ss:$16 sps:$4 sm:$0xff]   ;;  %v5300_v8 = vld [vmem:[#allocation11 + $0x1a8] ss:$16 sps:$4 sm:$0xff]  }
 0x264   :  { %3880 = vmatpush2.bf16.msra.mxu0 %v5231_v9  ;;  %3915 = vmatpush2.bf16.msra.mxu1 %v5303_v10  ;;  %v5308_v9 = vld [vmem:[#allocation11 + $0x18c] ss:$16 sps:$4 sm:$0xff]   ;;  %v5306_v10 = vld [vmem:[#allocation11 + $0x188] ss:$16 sps:$4 sm:$0xff]  }
 0x265   :  { %3881 = vmatprep.subr.bf16.mxu0 %v5236_v11  ;;  %3916 = vmatprep.subr.bf16.mxu1 %v5311_v12  ;;  %v5314_v11 = vld [vmem:[#allocation11 + $0x16c] ss:$16 sps:$4 sm:$0xff]   ;;  %v5312_v12 = vld [vmem:[#allocation11 + $0x168] ss:$16 sps:$4 sm:$0xff]  }
 0x268   :  { %3882 = vmatpush2.bf16.msra.mxu0 %v5234_v14  ;;  %3917 = vmatpush2.bf16.msra.mxu1 %v5309_v15  ;;  %v5320_v14 = vld [vmem:[#allocation11 + $0x14c] ss:$16 sps:$4 sm:$0xff]   ;;  %v577_v15 = vsub.s32 7, %v5771_v20 }
 0x269   :  { %3933 = vmatprep.subr.bf16.mxu0 %v5242_v16  ;;  %3918 = vmatprep.subr.bf16.mxu1 %v5317_v17  ;;  %v5318_v16 = vld [vmem:[#allocation11 + $0x148] ss:$16 sps:$4 sm:$0xff]   ;;  %v574_v17 = vrot.slane %v5811_v36, %v573_v13  ;;  %v5386_v13 = vld [vmem:[#allocation11 + $0x5ec] ss:$16 sps:$4 sm:$0xff]  }
 0x26b   :  { %v2065_v30 = vpop.f32.mrf.mxu0 }
 0x26c   :  { %v2066_v31 = vadd.f32 %v2065_v30, %v566_v23  ;;  %v2106_v32 = vpop.f32.mrf.mxu1  ;;  %3919 = vmatpush2.bf16.msra.mxu1 %v5315_v26  ;;  %v578_v23 = vrot.slane %v5811_v36, %v577_v15  ;;  %v5324_v30 = vld [vmem:[#allocation11 + $0x128] ss:$16 sps:$4 sm:$0xff]   ;;  %v5338_v36 = vld [vmem:[#allocation11 + $0x4ec] ss:$16 sps:$4 sm:$0xff]  }
 0x26d   :  { %v2067_v34 = vpop.f32.mrf.mxu0  ;;  %3920 = vmatprep.subr.bf16.mxu1 %v5323_v28  ;;  %v5384_v15 = vld [vmem:[#allocation11 + $0x5e8] ss:$16 sps:$4 sm:$0xff]  }
 0x26e   :  { %v2107_v37 = vadd.f32 %v2106_v32, %v2066_v31  ;;  %v2068_v38 = vadd.f32 %v2067_v34, %v570_v29  ;;  %v2108_v39 = vpop.f32.mrf.mxu1  ;;  %v5332_v32 = vld [vmem:[#allocation11 + $0x10c] ss:$16 sps:$4 sm:$0xff]  }
 0x26f   :  { %v2069_v40 = vpop.f32.mrf.mxu0 }
 0x270   :  { %v2109_v43 = vadd.f32 %v2108_v39, %v2068_v38  ;;  %v2110_v44 = vpop.f32.mrf.mxu1  ;;  %3921 = vmatpush2.bf16.msra.mxu1 %v5321_v33  ;;  %v2199_v47 = vmax.f32 %v2107_v37, 0.0  ;;  %v5330_v39 = vld [vmem:[#allocation11 + $0x108] ss:$16 sps:$4 sm:$0xff]  }
 0x271   :  { %v2070_v48 = vpop.f32.mrf.mxu0  ;;  %3922 = vmatprep.subr.bf16.mxu1 %v5329_v35 }
 0x272   :  { %v2200_v49 = vmax.f32 %v2109_v43, 0.0  ;;  %v2111_v50 = vpop.f32.mrf.mxu1  ;;  %v5847_v55 = vpack.c.bf16 %v2199_v47, %v2199_v47  ;;  %v5333_v48 = vld [vmem:[#allocation11 + $0x2e8] ss:$16 sps:$4 sm:$0xff]  }
 0x273   :  { %v5341_v50 = vld [vmem:[#allocation11 + $0x2cc] ss:$16 sps:$4 sm:$0xff]  }
 0x274   :  { %v5845_v54 = vpack.c.bf16 %v2200_v49, %v2200_v49  ;;  %3923 = vmatpush2.bf16.msra.mxu1 %v5327_v46 }
 0x275   :  { %3974 = vmatprep.subr.bf16.mxu1 %v5335_v51  ;;  %v5336_v51 = vld [vmem:[#allocation11 + $0x4e8] ss:$16 sps:$4 sm:$0xff]  }
 0x276   :  { %3883 = vmatprep.mubr.bf16.mxu0 %v5845_v54 }
 0x277   :  { %3884 = vmatmul.mubr.bf16.vlgmr.msra.gmra.mxu0 %v5847_v55 }
 0x278   :  { %3934 = vmatpush1.bf16.msra.mxu0 %v5240_v53  ;;  %3965 = vmatprep.mubr.bf16.mxu0 %v5821_v60  ;;  %v5276_v60 = vld [vmem:[#allocation11 + $0x28] ss:$16 sps:$4 sm:$0xff]   ;;  %v5344_v53 = vld [vmem:[#allocation11 + $0x4cc] ss:$16 sps:$4 sm:$0xff]  }
 0x279   :  { %3935 = vmatprep.subr.bf16.mxu0 %v5248_v52  ;;  %v5339_v52 = vld [vmem:[#allocation11 + $0x2c8] ss:$16 sps:$4 sm:$0xff]  }
 0x27c   :  { %3936 = vmatpush1.bf16.msra.mxu0 %v5246_v56  ;;  %v5342_v56 = vld [vmem:[#allocation11 + $0x4c8] ss:$16 sps:$4 sm:$0xff]  }
 0x27d   :  { %3937 = vmatprep.subr.bf16.mxu0 %v5254_v45  ;;  %v5347_v45 = vld [vmem:[#allocation11 + $0x2ac] ss:$16 sps:$4 sm:$0xff]  }
 0x280   :  { %3938 = vmatpush1.bf16.msra.mxu0 %v5252_v57  ;;  %v5350_v57 = vld [vmem:[#allocation11 + $0x4ac] ss:$16 sps:$4 sm:$0xff]  }
 0x281   :  { %3939 = vmatprep.subr.bf16.mxu0 %v5260_v41  ;;  %v5345_v41 = vld [vmem:[#allocation11 + $0x2a8] ss:$16 sps:$4 sm:$0xff]  }
 0x284   :  { %3940 = vmatpush1.bf16.msra.mxu0 %v5258_v58  ;;  %v5348_v58 = vld [vmem:[#allocation11 + $0x4a8] ss:$16 sps:$4 sm:$0xff]  }
 0x285   :  { %3941 = vmatprep.subr.bf16.mxu0 %v5266_v59  ;;  %v5356_v59 = vld [vmem:[#allocation11 + $0x48c] ss:$16 sps:$4 sm:$0xff]  }
 0x288   :  { %3942 = vmatpush1.bf16.msra.mxu0 %v5264_v61  ;;  %v5351_v61 = vld [vmem:[#allocation11 + $0x288] ss:$16 sps:$4 sm:$0xff]  }
 0x289   :  { %3943 = vmatprep.subr.bf16.mxu0 %v5272_v42  ;;  %v5354_v42 = vld [vmem:[#allocation11 + $0x488] ss:$16 sps:$4 sm:$0xff]  }
 0x28c   :  { %3944 = vmatpush1.bf16.msra.mxu0 %v5270_v63  ;;  %v5357_v63 = vld [vmem:[#allocation11 + $0x268] ss:$16 sps:$4 sm:$0xff]  }
 0x28d   :  { %3945 = vmatprep.subr.bf16.mxu0 %v5278_v0  ;;  %v5360_v0 = vld [vmem:[#allocation11 + $0x468] ss:$16 sps:$4 sm:$0xff]  }
 0x290   :  { %3946 = vmatpush1.bf16.msra.mxu0 %v5276_v60  ;;  %v5365_v60 = vld [vmem:[#allocation11 + $0x24c] ss:$16 sps:$4 sm:$0xff]  }
 0x291   :  { %3947 = vmatprep.subr.bf16.mxu0 %v5284_v1  ;;  %v5368_v1 = vld [vmem:[#allocation11 + $0x44c] ss:$16 sps:$4 sm:$0xff]  }
 0x294   :  { %3948 = vmatpush1.bf16.msra.mxu0 %v5282_v2  ;;  %v5363_v2 = vld [vmem:[#allocation11 + $0x248] ss:$16 sps:$4 sm:$0xff]  }
 0x295   :  { %3949 = vmatprep.subr.bf16.mxu0 %v5290_v3  ;;  %v5366_v3 = vld [vmem:[#allocation11 + $0x448] ss:$16 sps:$4 sm:$0xff]  }
 0x298   :  { %3950 = vmatpush2.bf16.msra.mxu0 %v5288_v4  ;;  %v5371_v4 = vld [vmem:[#allocation11 + $0x22c] ss:$16 sps:$4 sm:$0xff]  }
 0x299   :  { %3951 = vmatprep.subr.bf16.mxu0 %v5296_v5  ;;  %v5374_v5 = vld [vmem:[#allocation11 + $0x42c] ss:$16 sps:$4 sm:$0xff]  }
 0x29c   :  { %3952 = vmatpush2.bf16.msra.mxu0 %v5294_v6  ;;  %v5369_v6 = vld [vmem:[#allocation11 + $0x228] ss:$16 sps:$4 sm:$0xff]  }
 0x29d   :  { %3953 = vmatprep.subr.bf16.mxu0 %v5302_v7  ;;  %v5372_v7 = vld [vmem:[#allocation11 + $0x428] ss:$16 sps:$4 sm:$0xff]  }
 0x2a0   :  { %3954 = vmatpush2.bf16.msra.mxu0 %v5300_v8  ;;  %v5377_v8 = vld [vmem:[#allocation11 + $0x20c] ss:$16 sps:$4 sm:$0xff]  }
 0x2a1   :  { %3955 = vmatprep.subr.bf16.mxu0 %v5308_v9  ;;  %v5380_v9 = vld [vmem:[#allocation11 + $0x40c] ss:$16 sps:$4 sm:$0xff]  }
 0x2a4   :  { %3956 = vmatpush2.bf16.msra.mxu0 %v5306_v10  ;;  %v5375_v10 = vld [vmem:[#allocation11 + $0x208] ss:$16 sps:$4 sm:$0xff]  }
 0x2a5   :  { %3957 = vmatprep.subr.bf16.mxu0 %v5314_v11  ;;  %v5378_v11 = vld [vmem:[#allocation11 + $0x408] ss:$16 sps:$4 sm:$0xff]  }
 0x2a8   :  { %3958 = vmatpush2.bf16.msra.mxu0 %v5312_v12  ;;  %v5383_v12 = vld [vmem:[#allocation11 + $0x3ec] ss:$16 sps:$4 sm:$0xff]  }
 0x2a9   :  { %3959 = vmatprep.subr.bf16.mxu0 %v5320_v14  ;;  %v5381_v14 = vld [vmem:[#allocation11 + $0x3e8] ss:$16 sps:$4 sm:$0xff]  }
 0x2ab   :  { %v2147_v26 = vpop.f32.mrf.mxu0 }
 0x2ac   :  { %v2148_v28 = vadd.f32 %v2147_v26, %v574_v17  ;;  %v2188_v29 = vpop.f32.mrf.mxu1  ;;  %3960 = vmatpush2.bf16.msra.mxu0 %v5318_v16  ;;  %v5389_v16 = vld [vmem:[#allocation11 + $0x3cc] ss:$16 sps:$4 sm:$0xff]  }
 0x2ad   :  { %v2149_v31 = vpop.f32.mrf.mxu0  ;;  %3961 = vmatprep.subr.bf16.mxu0 %v5326_v18  ;;  %v5392_v17 = vld [vmem:[#allocation11 + $0x5cc] ss:$16 sps:$4 sm:$0xff]   ;;  %v5387_v18 = vld [vmem:[#allocation11 + $0x3c8] ss:$16 sps:$4 sm:$0xff]  }
 0x2ae   :  { %v2189_v33 = vadd.f32 %v2188_v29, %v2148_v28  ;;  %v2150_v34 = vadd.f32 %v2149_v31, %v578_v23  ;;  %v2190_v35 = vpop.f32.mrf.mxu1  ;;  %v5390_v23 = vld [vmem:[#allocation11 + $0x5c8] ss:$16 sps:$4 sm:$0xff]   ;;  %v5395_v26 = vld [vmem:[#allocation11 + $0x3ac] ss:$16 sps:$4 sm:$0xff]  }
 0x2af   :  { %v2151_v20 = vpop.f32.mrf.mxu0  ;;  %v5398_v28 = vld [vmem:[#allocation11 + $0x5ac] ss:$16 sps:$4 sm:$0xff]   ;;  %v5393_v29 = vld [vmem:[#allocation11 + $0x3a8] ss:$16 sps:$4 sm:$0xff]  }
 0x2b0   :  { %v2191_v37 = vadd.f32 %v2190_v35, %v2150_v34  ;;  %v2192_v38 = vpop.f32.mrf.mxu1  ;;  %3962 = vmatpush2.bf16.msra.mxu0 %v5324_v30  ;;  %v2201_v40 = vmax.f32 %v2189_v33, 0.0  ;;  %v5396_v30 = vld [vmem:[#allocation11 + $0x5a8] ss:$16 sps:$4 sm:$0xff]   ;;  %v5401_v31 = vld [vmem:[#allocation11 + $0x38c] ss:$16 sps:$4 sm:$0xff]  }
 0x2b1   :  { %v2152_v43 = vpop.f32.mrf.mxu0  ;;  %3963 = vmatprep.subr.bf16.mxu0 %v5332_v32  ;;  %v5404_v32 = vld [vmem:[#allocation11 + $0x58c] ss:$16 sps:$4 sm:$0xff]   ;;  %v5399_v33 = vld [vmem:[#allocation11 + $0x388] ss:$16 sps:$4 sm:$0xff]  }
 0x2b2   :  { %v2202_v44 = vmax.f32 %v2191_v37, 0.0  ;;  %v2193_v46 = vpop.f32.mrf.mxu1  ;;  %v5858_v49 = vpack.c.bf16 %v2201_v40, %v2201_v40  ;;  %v5402_v34 = vld [vmem:[#allocation11 + $0x588] ss:$16 sps:$4 sm:$0xff]   ;;  %v5407_v35 = vld [vmem:[#allocation11 + $0x36c] ss:$16 sps:$4 sm:$0xff]  }
 0x2b3   :  { %v5410_v20 = vld [vmem:[#allocation11 + $0x56c] ss:$16 sps:$4 sm:$0xff]   ;;  %v5405_v37 = vld [vmem:[#allocation11 + $0x368] ss:$16 sps:$4 sm:$0xff]  }
 0x2b4   :  { %v5856_v47 = vpack.c.bf16 %v2202_v44, %v2202_v44  ;;  %3964 = vmatpush2.bf16.msra.mxu0 %v5330_v39  ;;  %v5408_v38 = vld [vmem:[#allocation11 + $0x568] ss:$16 sps:$4 sm:$0xff]   ;;  %v5413_v39 = vld [vmem:[#allocation11 + $0x34c] ss:$16 sps:$4 sm:$0xff]  }
 0x2b5   :  { %4015 = vmatprep.subr.bf16.mxu0 %v5338_v36  ;;  %v5416_v40 = vld [vmem:[#allocation11 + $0x54c] ss:$16 sps:$4 sm:$0xff]   ;;  %v5411_v43 = vld [vmem:[#allocation11 + $0x348] ss:$16 sps:$4 sm:$0xff]  }
 0x2b6   :  { %3924 = vmatprep.mubr.bf16.mxu1 %v5856_v47  ;;  %v5414_v36 = vld [vmem:[#allocation11 + $0x548] ss:$16 sps:$4 sm:$0xff]   ;;  %v5419_v44 = vld [vmem:[#allocation11 + $0x32c] ss:$16 sps:$4 sm:$0xff]  }
 0x2b7   :  { %3966 = vmatmul.mubr.bf16.vlgmr.msra.gmra.mxu0 %v5830_v62  ;;  %3925 = vmatmul.mubr.bf16.vlgmr.msra.gmra.mxu1 %v5858_v49  ;;  %v5353_v62 = vld [vmem:[#allocation11 + $0x28c] ss:$16 sps:$4 sm:$0xff]  }
 0x2b8   :  { %3975 = vmatpush1.bf16.msra.mxu1 %v5333_v48  ;;  %4016 = vmatpush1.bf16.msra.mxu0 %v5336_v51  ;;  %v5422_v46 = vld [vmem:[#allocation11 + $0x52c] ss:$16 sps:$4 sm:$0xff]   ;;  %v5417_v51 = vld [vmem:[#allocation11 + $0x328] ss:$16 sps:$4 sm:$0xff]  }
 0x2b9   :  { %4047 = vmatprep.mubr.bf16.mxu0 %v5845_v54  ;;  %4006 = vmatprep.mubr.bf16.mxu1 %v5835_v19  ;;  %v5359_v54 = vld [vmem:[#allocation11 + $0x26c] ss:$16 sps:$4 sm:$0xff]  }
 0x2ba   :  { %3976 = vmatprep.subr.bf16.mxu1 %v5341_v50  ;;  %4017 = vmatprep.subr.bf16.mxu0 %v5344_v53  ;;  %v5362_v19 = vld [vmem:[#allocation11 + $0x46c] ss:$16 sps:$4 sm:$0xff]   ;;  %v5420_v50 = vld [vmem:[#allocation11 + $0x528] ss:$16 sps:$4 sm:$0xff]  }
 0x2bc   :  { %3977 = vmatpush1.bf16.msra.mxu1 %v5339_v52  ;;  %4018 = vmatpush1.bf16.msra.mxu0 %v5342_v56  ;;  %v5425_v52 = vld [vmem:[#allocation11 + $0x30c] ss:$16 sps:$4 sm:$0xff]  }
 0x2bd   :  { %3978 = vmatprep.subr.bf16.mxu1 %v5347_v45  ;;  %4019 = vmatprep.subr.bf16.mxu0 %v5350_v57  ;;  %v5428_v56 = vld [vmem:[#allocation11 + $0x50c] ss:$16 sps:$4 sm:$0xff]  }
 0x2be   :  { %v5868_v45 = vld [vmem:[%s5900_s6] sm:$0xf] }
 0x2c0   :  { %3979 = vmatpush1.bf16.msra.mxu1 %v5345_v41  ;;  %4020 = vmatpush1.bf16.msra.mxu0 %v5348_v58  ;;  %v5423_v41 = vld [vmem:[#allocation11 + $0x308] ss:$16 sps:$4 sm:$0xff]  }
 0x2c1   :  { %3980 = vmatprep.subr.bf16.mxu1 %v5353_v62  ;;  %4021 = vmatprep.subr.bf16.mxu0 %v5356_v59  ;;  %v5426_v58 = vld [vmem:[#allocation11 + $0x508] ss:$16 sps:$4 sm:$0xff]   ;;  %v5431_v59 = vld [vmem:[#allocation11 + $0x6ec] ss:$16 sps:$4 sm:$0xff]  }
 0x2c4   :  { %3981 = vmatpush1.bf16.msra.mxu1 %v5351_v61  ;;  %4022 = vmatpush1.bf16.msra.mxu0 %v5354_v42  ;;  %v5477_v61 = vld [vmem:[#allocation13 + $0x78] sm:$0xff]   ;;  %v2472_v42 = vrot.slane %v5868_v45, %v5774_v21 }
 0x2c5   :  { %3982 = vmatprep.subr.bf16.mxu1 %v5359_v54  ;;  %4023 = vmatprep.subr.bf16.mxu0 %v5362_v19  ;;  %v2476_v54 = vrot.slane %v5868_v45, %v5780_v24  ;;  %v5429_v19 = vld [vmem:[#allocation11 + $0x6e8] ss:$16 sps:$4 sm:$0xff]  }
 0x2c6   :  { %v5432_v21 = vld [vmem:[#allocation11 + $0x6c8] ss:$16 sps:$4 sm:$0xff]  }
 0x2c8   :  { %3983 = vmatpush1.bf16.msra.mxu1 %v5357_v63  ;;  %4024 = vmatpush1.bf16.msra.mxu0 %v5360_v0  ;;  %v5434_v63 = vld [vmem:[#allocation11 + $0x6cc] ss:$16 sps:$4 sm:$0xff]  }
 0x2c9   :  { %3984 = vmatprep.subr.bf16.mxu1 %v5365_v60  ;;  %4025 = vmatprep.subr.bf16.mxu0 %v5368_v1  ;;  %v5478_v0 = vld [vmem:[#allocation13 + $0x38] sm:$0xff]   ;;  %v5479_v1 = vld [vmem:[#allocation13 + $0x70] sm:$0xff]  }
 0x2cc   :  { %3985 = vmatpush1.bf16.msra.mxu1 %v5363_v2  ;;  %4026 = vmatpush1.bf16.msra.mxu0 %v5366_v3 }
 0x2cd   :  { %3986 = vmatprep.subr.bf16.mxu1 %v5371_v4  ;;  %4027 = vmatprep.subr.bf16.mxu0 %v5374_v5  ;;  %v5437_v5 = vld [vmem:[#allocation11 + $0x6ac] ss:$16 sps:$4 sm:$0xff]  }
 0x2d0   :  { %3987 = vmatpush1.bf16.msra.mxu1 %v5369_v6  ;;  %4028 = vmatpush1.bf16.msra.mxu0 %v5372_v7  ;;  %v5480_v6 = vld [vmem:[#allocation13 + $0x30] sm:$0xff]  }
 0x2d1   :  { %3988 = vmatprep.subr.bf16.mxu1 %v5377_v8  ;;  %4029 = vmatprep.subr.bf16.mxu0 %v5380_v9  ;;  %v5481_v8 = vld [vmem:[#allocation13 + $0x68] sm:$0xff]  }
 0x2d4   :  { %3989 = vmatpush1.bf16.msra.mxu1 %v5375_v10  ;;  %4030 = vmatpush1.bf16.msra.mxu0 %v5378_v11  ;;  %v5440_v10 = vld [vmem:[#allocation11 + $0x68c] ss:$16 sps:$4 sm:$0xff]  }
 0x2d5   :  { %3990 = vmatprep.subr.bf16.mxu1 %v5383_v12  ;;  %4031 = vmatprep.subr.bf16.mxu0 %v5386_v13  ;;  %v5482_v11 = vld [vmem:[#allocation13 + $0x28] sm:$0xff]  }
 0x2d6   :  { %v5438_v12 = vld [vmem:[#allocation11 + $0x688] ss:$16 sps:$4 sm:$0xff]   ;;  %v5443_v13 = vld [vmem:[#allocation11 + $0x66c] ss:$16 sps:$4 sm:$0xff]  }
 0x2d8   :  { %3991 = vmatpush2.bf16.msra.mxu1 %v5381_v14  ;;  %4032 = vmatpush2.bf16.msra.mxu0 %v5384_v15  ;;  %v5484_v14 = vld [vmem:[#allocation13 + $0x20] sm:$0xff]   ;;  %v5485_v15 = vld [vmem:[#allocation13 + $0x58] sm:$0xff]  }
 0x2d9   :  { %3992 = vmatprep.subr.bf16.mxu1 %v5389_v16  ;;  %4033 = vmatprep.subr.bf16.mxu0 %v5392_v17  ;;  %v5441_v16 = vld [vmem:[#allocation11 + $0x668] ss:$16 sps:$4 sm:$0xff]   ;;  %v5446_v17 = vld [vmem:[#allocation11 + $0x64c] ss:$16 sps:$4 sm:$0xff]  }
 0x2dc   :  { %3993 = vmatpush2.bf16.msra.mxu1 %v5387_v18  ;;  %4034 = vmatpush2.bf16.msra.mxu0 %v5390_v23  ;;  %v5486_v18 = vld [vmem:[#allocation13 + $0x18] sm:$0xff]   ;;  %v5487_v23 = vld [vmem:[#allocation13 + $0x50] sm:$0xff]  }
 0x2dd   :  { %3994 = vmatprep.subr.bf16.mxu1 %v5395_v26  ;;  %4035 = vmatprep.subr.bf16.mxu0 %v5398_v28  ;;  %v5444_v26 = vld [vmem:[#allocation11 + $0x648] ss:$16 sps:$4 sm:$0xff]   ;;  %v5449_v28 = vld [vmem:[#allocation11 + $0x62c] ss:$16 sps:$4 sm:$0xff]  }
 0x2e0   :  { %3995 = vmatpush2.bf16.msra.mxu1 %v5393_v29  ;;  %4036 = vmatpush2.bf16.msra.mxu0 %v5396_v30  ;;  %v5488_v29 = vld [vmem:[#allocation13 + $0x10] sm:$0xff]   ;;  %v5489_v30 = vld [vmem:[#allocation13 + $0x48] sm:$0xff]  }
 0x2e1   :  { %3996 = vmatprep.subr.bf16.mxu1 %v5401_v31  ;;  %4037 = vmatprep.subr.bf16.mxu0 %v5404_v32  ;;  %v5447_v31 = vld [vmem:[#allocation11 + $0x628] ss:$16 sps:$4 sm:$0xff]   ;;  %v5452_v32 = vld [vmem:[#allocation11 + $0x60c] ss:$16 sps:$4 sm:$0xff]  }
 0x2e4   :  { %3997 = vmatpush2.bf16.msra.mxu1 %v5399_v33  ;;  %4038 = vmatpush2.bf16.msra.mxu0 %v5402_v34  ;;  %v5490_v33 = vld [vmem:[#allocation13 + $0x8] sm:$0xff]   ;;  %v5491_v34 = vld [vmem:[#allocation13 + $0x40] sm:$0xff]  }
 0x2e5   :  { %3998 = vmatprep.subr.bf16.mxu1 %v5407_v35  ;;  %4039 = vmatprep.subr.bf16.mxu0 %v5410_v20  ;;  %v5450_v35 = vld [vmem:[#allocation11 + $0x608] ss:$16 sps:$4 sm:$0xff]   ;;  %v5455_v20 = vld [vmem:[#allocation11 + $0x7ec] ss:$16 sps:$4 sm:$0xff]  }
 0x2e8   :  { %3999 = vmatpush2.bf16.msra.mxu1 %v5405_v37  ;;  %4040 = vmatpush2.bf16.msra.mxu0 %v5408_v38  ;;  %v5492_v37 = vld [vmem:[#allocation13] sm:$0xff]   ;;  %v5453_v38 = vld [vmem:[#allocation11 + $0x7e8] ss:$16 sps:$4 sm:$0xff]  }
 0x2e9   :  { %4000 = vmatprep.subr.bf16.mxu1 %v5413_v39  ;;  %4041 = vmatprep.subr.bf16.mxu0 %v5416_v40  ;;  %v5458_v39 = vld [vmem:[#allocation11 + $0x7cc] ss:$16 sps:$4 sm:$0xff]   ;;  %v5456_v40 = vld [vmem:[#allocation11 + $0x7c8] ss:$16 sps:$4 sm:$0xff]  }
 0x2eb   :  { %v3803_v48 = vpop.f32.mrf.mxu0 }
 0x2ec   :  { %4001 = vmatpush2.bf16.msra.mxu1 %v5411_v43  ;;  %4042 = vmatpush2.bf16.msra.mxu0 %v5414_v36  ;;  %v3804_v60 = vadd.f32 %v3803_v48, %v2472_v42  ;;  %v5461_v43 = vld [vmem:[#allocation11 + $0x7ac] ss:$16 sps:$4 sm:$0xff]   ;;  %v5459_v36 = vld [vmem:[#allocation11 + $0x7a8] ss:$16 sps:$4 sm:$0xff]  }
 0x2ed   :  { %v3805_v53 = vpop.f32.mrf.mxu0  ;;  %4002 = vmatprep.subr.bf16.mxu1 %v5419_v44  ;;  %4043 = vmatprep.subr.bf16.mxu0 %v5422_v46  ;;  %v5464_v44 = vld [vmem:[#allocation11 + $0x78c] ss:$16 sps:$4 sm:$0xff]   ;;  %v5462_v46 = vld [vmem:[#allocation11 + $0x788] ss:$16 sps:$4 sm:$0xff]  }
 0x2ee   :  { %v3806_v3 = vadd.f32 %v3805_v53, %v2476_v54  ;;  %v5467_v48 = vld [vmem:[#allocation11 + $0x76c] ss:$16 sps:$4 sm:$0xff]   ;;  %v5468_v53 = vld [vmem:[#allocation11 + $0x748] ss:$16 sps:$4 sm:$0xff]  }
 0x2ef   :  { %v3807_v57 = vpop.f32.mrf.mxu0  ;;  %v5493_v54 = vld [vmem:[#allocation13 + $0xf8] sm:$0xff]  }
 0x2f0   :  { %4003 = vmatpush2.bf16.msra.mxu1 %v5417_v51  ;;  %4044 = vmatpush2.bf16.msra.mxu0 %v5420_v50  ;;  %v5465_v51 = vld [vmem:[#allocation11 + $0x768] ss:$16 sps:$4 sm:$0xff]   ;;  %v5470_v50 = vld [vmem:[#allocation11 + $0x74c] ss:$16 sps:$4 sm:$0xff]  }
 0x2f1   :  { %v3808_v62 = vpop.f32.mrf.mxu0  ;;  %4004 = vmatprep.subr.bf16.mxu1 %v5425_v52  ;;  %4045 = vmatprep.subr.bf16.mxu0 %v5428_v56  ;;  %v5473_v52 = vld [vmem:[#allocation11 + $0x72c] ss:$16 sps:$4 sm:$0xff]   ;;  %v5471_v56 = vld [vmem:[#allocation11 + $0x728] ss:$16 sps:$4 sm:$0xff]  }
 0x2f2   :  { %v5476_v57 = vld [vmem:[#allocation11 + $0x70c] ss:$16 sps:$4 sm:$0xff]  }
 0x2f4   :  { %4005 = vmatpush2.bf16.msra.mxu1 %v5423_v41  ;;  %4046 = vmatpush2.bf16.msra.mxu0 %v5426_v58  ;;  %v5474_v41 = vld [vmem:[#allocation11 + $0x708] ss:$16 sps:$4 sm:$0xff]  }
 0x2f5   :  { %4056 = vmatprep.subr.bf16.mxu1 %v5431_v59  ;;  %5022 = vmatprep.subr.bf16.mxu0 %v5477_v61 }
 0x2f7   :  { %4007 = vmatmul.mubr.bf16.vlgmr.msra.gmra.mxu1 %v5837_v27  ;;  %4048 = vmatmul.mubr.bf16.vlgmr.msra.gmra.mxu0 %v5847_v55  ;;  %v3844_v2 = vpop.f32.mrf.mxu1  ;;  %v5435_v55 = vld [vmem:[#allocation11 + $0x6a8] ss:$16 sps:$4 sm:$0xff]  }
 0x2f8   :  { %v5876_v4 = vadd.f32 %v3844_v2, %v3804_v60  ;;  %4057 = vmatpush1.bf16.msra.mxu1 %v5429_v19  ;;  %4088 = vmatprep.mubr.bf16.mxu1 %v5856_v47  ;;  %v5483_v47 = vld [vmem:[#allocation13 + $0x60] sm:$0xff]   ;;  %v5494_v19 = vld [vmem:[#allocation13 + $0xb8] sm:$0xff]   ;;  %v5497_v60 = vld [vmem:[#allocation13 + $0xe8] sm:$0xff]  }
 0x2f9   :  { %v3846_v24 = vpop.f32.mrf.mxu1  ;;  %4058 = vmatprep.subr.bf16.mxu1 %v5434_v63  ;;  %5023 = vmatpush3.bf16.msra.mxu0 %v5478_v0  ;;  %v5495_v63 = vld [vmem:[#allocation13 + $0xf0] sm:$0xff]   ;;  %v5499_v2 = vld [vmem:[#allocation13 + $0xe0] sm:$0xff]  }
 0x2fa   :  { %v5879_v7 = vadd.f32 %v3846_v24, %v3806_v3  ;;  %5024 = vmatprep.subr.bf16.mxu0 %v5479_v1  ;;  %v5496_v0 = vld [vmem:[#allocation13 + $0xb0] sm:$0xff]   ;;  %v5498_v1 = vld [vmem:[#allocation13 + $0xa8] sm:$0xff]   ;;  %v5501_v3 = vld [vmem:[#allocation13 + $0xd8] sm:$0xff]  }
 0x2fb   :  { %v3848_v27 = vpop.f32.mrf.mxu1  ;;  %v5504_v24 = vld [vmem:[#allocation13 + $0x90] sm:$0xff]  }
 0x2fc   :  { %4059 = vmatpush1.bf16.msra.mxu1 %v5432_v21  ;;  %v5503_v21 = vld [vmem:[#allocation13 + $0xd0] sm:$0xff]  }
 0x2fd   :  { %v3849_v9 = vpop.f32.mrf.mxu1  ;;  %4060 = vmatprep.subr.bf16.mxu1 %v5437_v5  ;;  %5025 = vmatpush3.bf16.msra.mxu0 %v5480_v6 }
 0x2fe   :  { %5026 = vmatprep.subr.bf16.mxu0 %v5481_v8 }
 0x300   :  { %4061 = vmatpush1.bf16.msra.mxu1 %v5435_v55  ;;  %v5505_v55 = vld [vmem:[#allocation13 + $0xc8] sm:$0xff]  }
 0x301   :  { %4062 = vmatprep.subr.bf16.mxu1 %v5440_v10  ;;  %5027 = vmatpush3.bf16.msra.mxu0 %v5482_v11  ;;  %v5506_v11 = vld [vmem:[#allocation13 + $0x88] sm:$0xff]  }
 0x302   :  { %5028 = vmatprep.subr.bf16.mxu0 %v5483_v47 }
 0x304   :  { %4063 = vmatpush1.bf16.msra.mxu1 %v5438_v12 }
 0x305   :  { %4064 = vmatprep.subr.bf16.mxu1 %v5443_v13  ;;  %5029 = vmatpush3.bf16.msra.mxu0 %v5484_v14 }
 0x306   :  { %5030 = vmatprep.subr.bf16.mxu0 %v5485_v15 }
 0x308   :  { %4065 = vmatpush1.bf16.msra.mxu1 %v5441_v16  ;;  %v5507_v16 = vld [vmem:[#allocation13 + $0xc0] sm:$0xff]  }
 0x309   :  { %4066 = vmatprep.subr.bf16.mxu1 %v5446_v17  ;;  %5031 = vmatpush3.bf16.msra.mxu0 %v5486_v18 }
 0x30a   :  { %5032 = vmatprep.subr.bf16.mxu0 %v5487_v23  ;;  %v5508_v23 = vld [vmem:[#allocation13 + $0x80] sm:$0xff]  }
 0x30c   :  { %4067 = vmatpush1.bf16.msra.mxu1 %v5444_v26 }
 0x30d   :  { %4068 = vmatprep.subr.bf16.mxu1 %v5449_v28  ;;  %5033 = vmatpush3.bf16.msra.mxu0 %v5488_v29 }
 0x30e   :  { %5034 = vmatprep.subr.bf16.mxu0 %v5489_v30 }
 0x310   :  { %4069 = vmatpush1.bf16.msra.mxu1 %v5447_v31 }
 0x311   :  { %4070 = vmatprep.subr.bf16.mxu1 %v5452_v32  ;;  %5035 = vmatpush3.bf16.msra.mxu0 %v5490_v33 }
 0x312   :  { %5036 = vmatprep.subr.bf16.mxu0 %v5491_v34 }
 0x314   :  { %4071 = vmatpush1.bf16.msra.mxu1 %v5450_v35 }
 0x315   :  { %4072 = vmatprep.subr.bf16.mxu1 %v5455_v20  ;;  %5037 = vmatpush3.bf16.msra.mxu0 %v5492_v37 }
 0x318   :  { %4073 = vmatpush2.bf16.msra.mxu1 %v5453_v38 }
 0x319   :  { %4074 = vmatprep.subr.bf16.mxu1 %v5458_v39 }
 0x31c   :  { %4075 = vmatpush2.bf16.msra.mxu1 %v5456_v40  ;;  %v2484_v40 = vrot.slane %v5868_v45, %v5783_v25 }
 0x31d   :  { %4076 = vmatprep.subr.bf16.mxu1 %v5461_v43 }
 0x320   :  { %4077 = vmatpush2.bf16.msra.mxu1 %v5459_v36 }
 0x321   :  { %4078 = vmatprep.subr.bf16.mxu1 %v5464_v44 }
 0x324   :  { %4079 = vmatpush2.bf16.msra.mxu1 %v5462_v46 }
 0x325   :  { %4080 = vmatprep.subr.bf16.mxu1 %v5467_v48 }
 0x328   :  { %4081 = vmatpush2.bf16.msra.mxu1 %v5465_v51 }
 0x329   :  { %4082 = vmatprep.subr.bf16.mxu1 %v5470_v50 }
 0x32c   :  { %4083 = vmatpush2.bf16.msra.mxu1 %v5468_v53 }
 0x32d   :  { %4084 = vmatprep.subr.bf16.mxu1 %v5473_v52 }
 0x330   :  { %4085 = vmatpush2.bf16.msra.mxu1 %v5471_v56 }
 0x331   :  { %4086 = vmatprep.subr.bf16.mxu1 %v5476_v57 }
 0x334   :  { %4087 = vmatpush2.bf16.msra.mxu1 %v5474_v41 }
 0x335   :  { %5044 = vmatprep.subr.bf16.mxu1 %v5493_v54 }
 0x337   :  { %4089 = vmatmul.mubr.bf16.vlgmr.msra.gmra.mxu1 %v5858_v49  ;;  %v3885_v58 = vpop.f32.mrf.mxu0  ;;  %v5500_v49 = vld [vmem:[#allocation13 + $0xa0] sm:$0xff]  }
 0x338   :  { %v3886_v62 = vadd.f32 %v3885_v58, %v5876_v4  ;;  %5045 = vmatpush3.bf16.msra.mxu1 %v5494_v19  ;;  %v5502_v4 = vld [vmem:[#allocation13 + $0x98] sm:$0xff]  }
 0x339   :  { %v3887_v59 = vpop.f32.mrf.mxu0  ;;  %5046 = vmatprep.subr.bf16.mxu1 %v5495_v63 }
 0x33a   :  { %v3888_v8 = vadd.f32 %v3887_v59, %v5879_v7  ;;  %v2480_v7 = vrot.slane %v5868_v45, %v5777_v22  ;;  %v4989_v45 = vld [vmem:[%s5902_s8] ss:$0 sm:$0xff] }
 0x33b   :  { %v3889_v61 = vpop.f32.mrf.mxu0 }
 0x33c   :  { %5047 = vmatpush3.bf16.msra.mxu1 %v5496_v0 }
 0x33d   :  { %v3890_v42 = vpop.f32.mrf.mxu0  ;;  %5048 = vmatprep.subr.bf16.mxu1 %v5497_v60 }
 0x340   :  { %5049 = vmatpush3.bf16.msra.mxu1 %v5498_v1 }
 0x341   :  { %5050 = vmatprep.subr.bf16.mxu1 %v5499_v2 }
 0x344   :  { %5051 = vmatpush3.bf16.msra.mxu1 %v5500_v49 }
 0x345   :  { %5052 = vmatprep.subr.bf16.mxu1 %v5501_v3 }
 0x348   :  { %5053 = vmatpush3.bf16.msra.mxu1 %v5502_v4 }
 0x349   :  { %5054 = vmatprep.subr.bf16.mxu1 %v5503_v21 }
 0x34c   :  { %5055 = vmatpush3.bf16.msra.mxu1 %v5504_v24 }
 0x34d   :  { %5056 = vmatprep.subr.bf16.mxu1 %v5505_v55 }
 0x350   :  { %5057 = vmatpush3.bf16.msra.mxu1 %v5506_v11 }
 0x351   :  { %5058 = vmatprep.subr.bf16.mxu1 %v5507_v16 }
 0x354   :  { %5059 = vmatpush3.bf16.msra.mxu1 %v5508_v23 }
 0x377   :  { %v3967_v5 = vpop.f32.mrf.mxu0  ;;  %v3926_v6 = vpop.f32.mrf.mxu1 }
 0x378   :  { %v3927_v27 = vadd.f32 %v3926_v6, %v3886_v62  ;;  %v3968_v29 = vadd.f32 %v3967_v5, %v2480_v7 }
 0x379   :  { %v3969_v9 = vpop.f32.mrf.mxu0  ;;  %v3928_v10 = vpop.f32.mrf.mxu1 }
 0x37a   :  { %v3929_v47 = vadd.f32 %v3928_v10, %v3888_v8  ;;  %v4097_v12 = vmax.f32 %v3927_v27, 0.0  ;;  %v3970_v43 = vadd.f32 %v3969_v9, %v2484_v40 }
 0x37b   :  { %v3971_v13 = vpop.f32.mrf.mxu0  ;;  %v3930_v14 = vpop.f32.mrf.mxu1 }
 0x37c   :  { %v4098_v15 = vmax.f32 %v3929_v47, 0.0  ;;  %v4101_v28 = vpack.c.bf16 %v4097_v12, %v4097_v12 }
 0x37d   :  { %v3972_v17 = vpop.f32.mrf.mxu0  ;;  %v3931_v18 = vpop.f32.mrf.mxu1 }
 0x37e   :  { %v4102_v26 = vpack.c.bf16 %v4098_v15, %v4098_v15 }
 0x380   :  { %4400 = vmatprep.mubr.bf16.mxu0 %v4102_v26 }
 0x381   :  { %4401 = vmatmul.mubr.bf16.vlgmr.msra.gmra.mxu0 %v4101_v28 }
 0x3b7   :  { %v4008_v30 = vpop.f32.mrf.mxu1  ;;  %v4049_v31 = vpop.f32.mrf.mxu0 }
 0x3b8   :  { %v4009_v32 = vadd.f32 %v4008_v30, %v3968_v29 }
 0x3b9   :  { %v4010_v33 = vpop.f32.mrf.mxu1  ;;  %v4051_v34 = vpop.f32.mrf.mxu0 }
 0x3ba   :  { %v4050_v35 = vadd.f32 %v4049_v31, %v4009_v32  ;;  %v4011_v36 = vadd.f32 %v4010_v33, %v3970_v43 }
 0x3bb   :  { %v4012_v20 = vpop.f32.mrf.mxu1  ;;  %v4053_v37 = vpop.f32.mrf.mxu0 }
 0x3bc   :  { %v4052_v46 = vadd.f32 %v4051_v34, %v4011_v36 }
 0x3bd   :  { %v4013_v38 = vpop.f32.mrf.mxu1  ;;  %v4054_v39 = vpop.f32.mrf.mxu0 }
 0x3f7   :  { %v4090_v44 = vpop.f32.mrf.mxu1 }
 0x3f8   :  { %v4091_v48 = vadd.f32 %v4090_v44, %v4050_v35 }
 0x3f9   :  { %v4092_v22 = vpop.f32.mrf.mxu1 }
 0x3fa   :  { %v4093_v51 = vadd.f32 %v4092_v22, %v4052_v46  ;;  %v4099_v50 = vmax.f32 %v4091_v48, 0.0 }
 0x3fb   :  { %v4094_v53 = vpop.f32.mrf.mxu1 }
 0x3fc   :  { %v4100_v52 = vmax.f32 %v4093_v51, 0.0  ;;  %v4103_v41 = vpack.c.bf16 %v4099_v50, %v4099_v50 }
 0x3fd   :  { %v4095_v56 = vpop.f32.mrf.mxu1 }
 0x3fe   :  { %v4104_v57 = vpack.c.bf16 %v4100_v52, %v4100_v52 }
 0x400   :  { %4440 = vmatprep.mubr.bf16.mxu1 %v4104_v57 }
 0x401   :  { %4441 = vmatmul.mubr.bf16.vlgmr.msra.gmra.mxu1 %v4103_v41 }
 0x441   :  { %v5038_v58 = vpop.f32.mrf.mxu0 }
 0x443   :  { %v5039_v62 = vpop.f32.mrf.mxu0 }
 0x444   :  { %v5040_v59 = vadd.f32 %v5039_v62, %v5038_v58 }
 0x445   :  { %v5041_v61 = vpop.f32.mrf.mxu0 }
 0x446   :  { %v4403_v19 = vadd.f32 %v5040_v59, %v4989_v45 }
 0x447   :  { %v5042_v25 = vpop.f32.mrf.mxu0 }
 0x4c1   :  { %v5060_v42 = vpop.f32.mrf.mxu1 }
 0x4c3   :  { %v5061_v54 = vpop.f32.mrf.mxu1 }
 0x4c4   :  { %v5062_v63 = vadd.f32 %v5061_v54, %v5060_v42 }
 0x4c5   :  { %v5063_v0 = vpop.f32.mrf.mxu1 }
 0x4c6   :  { %v4443_v60 = vadd.f32 %v5062_v63, %v4403_v19 }
 0x4c7   :  { %v5064_v1 = vpop.f32.mrf.mxu1 }
 0x4c8   :  { %4448 = vst [vmem:[#allocation14] sm:$0xff] %v4443_v60 }
 0x4c9   :  { %5660 = shalt.err (!%p5657_p11)
}
 0x4ca   :  { %4458 = dma.vmem_to_hbm [thread:$0]  %s4456_s1, 128, %s5903_s9, [#allocation4]  }
 0x4cb   :  { %5677 = dma.done.wait [#allocation4], 128  }
 0x4cc   :  { %5678 = vsyncadd [#allocation4], 4294967168 }
 0x4cd   :  { %4462 = vsyncpa [#allocation3], 1 }
 0x4ce   :  { %4463 = vsyncpa [#allocation6], 1 }
 0x4cf   :  { %4464 = vsyncpa [#allocation9], 1 }
 0x4d0   :  { %4465 = vsyncpa [#allocation12], 1 }
 0x4d1   :  { %4466 = vsyncpa [#allocation4], 1 }

</bundles_post_ra>
